<compile_context>
chip_gen: v5e
topology: v5e:2x2
jax: 0.10.0
libtpu: 0.0.40
codegen_flags: <defaults>
</compile_context>

<pallas_src>
import math

import jax
import jax.numpy as jnp
from jax.experimental import pallas as pl
from jax.experimental.pallas import tpu as pltpu

# ---------------------------------------------------------------------------
# Model hyperparameters (non-debug config of LMCDecoderBERT)
# ---------------------------------------------------------------------------
BERT_DIM = 256            # hidden_size
EMB_SIZE = 128            # embedding_size
INTERMEDIATE = 256        # intermediate_size
NUM_LAYERS = 2            # num_hidden_layers (ALBERT: parameters shared across layers)
NUM_HEADS = max(1, BERT_DIM // 64)   # = 4
HEAD_DIM = BERT_DIM // NUM_HEADS     # = 64
HEAD_BLK = 128                       # per-head zero-padded lane block (128-lane aligned)
QKV_PAD = NUM_HEADS * 3 * HEAD_BLK   # = 1536  ([Q|pad|K|pad|V|pad] per head)
CTX_PAD = NUM_HEADS * HEAD_BLK       # = 512   (padded concatenated head contexts)
OUTPUT_DIM = 100
UV_PAD = 128              # lane-dense padded width for the fused u|v head
MAX_POS = 64
LN_EPS = 1e-12


# ---------------------------------------------------------------------------
# In-kernel helpers (f32 elementwise math on every TPU generation)
# ---------------------------------------------------------------------------
def _layernorm(x, g, b):
    mu = jnp.mean(x, axis=-1, keepdims=True)
    xc = x - mu
    var = jnp.mean(xc * xc, axis=-1, keepdims=True)
    return xc * jax.lax.rsqrt(var + LN_EPS) * g + b


def _gelu_new(y):
    return 0.5 * y * (1.0 + jnp.tanh(0.7978845608028654 * (y + 0.044715 * (y * y * y))))


# ---------------------------------------------------------------------------
# Fused forward kernel: one grid step == one sequence
# ---------------------------------------------------------------------------
def _fused_forward_kernel(
        emb_ref, attn_bias_ref, pool_bias_ref,
        emb_ln_g_ref, emb_ln_b_ref, emb_proj_w_ref, emb_proj_b_ref,
        qkv_w_ref, qkv_b_ref, attn_o_w_ref, attn_o_b_ref,
        attn_ln_g_ref, attn_ln_b_ref, ffn_w_ref, ffn_b_ref,
        ffn_o_w_ref, ffn_o_b_ref, ffn_ln_g_ref, ffn_ln_b_ref,
        att_w_ref, att_b_ref, uv_w_ref, uv_b_ref,
        out_ref, ctx_ref):
    bf16 = jnp.bfloat16
    f32 = jnp.float32

    emb = emb_ref[...]                 # (S, EMB_SIZE) f32 — this sequence's embeddings
    attn_bias = attn_bias_ref[0]       # (1, S) f32 — additive key-mask bias (-10000 on pad)
    pool_bias = pool_bias_ref[...]     # (S, 1) f32 — additive pooling-mask bias (-1e9 on pad)

    # Shared weights: constant index maps -> DMA'd once, resident across the batch grid.
    qkv_w = qkv_w_ref[...]             # (BERT_DIM, QKV_PAD)  bf16
    qkv_b = qkv_b_ref[...]             # (1, QKV_PAD)         f32
    attn_o_w = attn_o_w_ref[...]       # (CTX_PAD, BERT_DIM)  bf16
    attn_o_b = attn_o_b_ref[...]
    attn_ln_g = attn_ln_g_ref[...]
    attn_ln_b = attn_ln_b_ref[...]
    ffn_w = ffn_w_ref[...]
    ffn_b = ffn_b_ref[...]
    ffn_o_w = ffn_o_w_ref[...]
    ffn_o_b = ffn_o_b_ref[...]
    ffn_ln_g = ffn_ln_g_ref[...]
    ffn_ln_b = ffn_ln_b_ref[...]

    # ---- ALBERT embeddings: LayerNorm + embedding->hidden projection ----
    x = _layernorm(emb, emb_ln_g_ref[...], emb_ln_b_ref[...])
    x = jnp.dot(x.astype(bf16), emb_proj_w_ref[...],
                preferred_element_type=f32) + emb_proj_b_ref[...]          # (S, D) f32

    scale = jnp.float32(1.0 / math.sqrt(HEAD_DIM))

    # ---- ALBERT encoder: NUM_LAYERS shared-parameter layers, unrolled in-kernel ----
    for _ in range(NUM_LAYERS):
        # fused head-aligned Q|K|V projection: one lane-dense (D, 1536) matmul
        qkv = jnp.dot(x.astype(bf16), qkv_w,
                      preferred_element_type=f32) + qkv_b                  # (S, QKV_PAD)

        for h in range(NUM_HEADS):
            base = h * 3 * HEAD_BLK
            # 128-lane-aligned views; lanes [64,128) of each block are zeros by construction
            qh = qkv[:, base:base + HEAD_BLK].astype(bf16)                 # (S, 128)
            kh = qkv[:, base + HEAD_BLK:base + 2 * HEAD_BLK].astype(bf16)  # (S, 128)
            vh = qkv[:, base + 2 * HEAD_BLK:base + 3 * HEAD_BLK].astype(bf16)
            s = jax.lax.dot_general(qh, kh, (((1,), (1,)), ((), ())),
                                    preferred_element_type=f32)            # (S, S)
            s = s * scale + attn_bias
            s = s - jnp.max(s, axis=-1, keepdims=True)
            p = jnp.exp(s)
            p = p * pl.reciprocal(jnp.sum(p, axis=-1, keepdims=True), approx=True)
            ctx_h = jnp.dot(p.astype(bf16), vh, preferred_element_type=f32)  # (S, 128)
            # aligned lane-offset store into the padded context scratch
            ctx_ref[:, h * HEAD_BLK:(h + 1) * HEAD_BLK] = ctx_h

        # single K=512 output projection over the padded, concatenated head contexts
        attn_out = jnp.dot(ctx_ref[...].astype(bf16), attn_o_w,
                           preferred_element_type=f32) + attn_o_b          # (S, D)
        x = _layernorm(attn_out + x, attn_ln_g, attn_ln_b)

        ffn = _gelu_new(jnp.dot(x.astype(bf16), ffn_w,
                                preferred_element_type=f32) + ffn_b)
        ffn_out = jnp.dot(ffn.astype(bf16), ffn_o_w,
                          preferred_element_type=f32) + ffn_o_b
        x = _layernorm(ffn_out + x, ffn_ln_g, ffn_ln_b)

    # ---- encode(): masked attention pooling + fused lane-padded u / exp(v) head ----
    scores = (jnp.sum(x * att_w_ref[...], axis=-1, keepdims=True)
              + att_b_ref[...] + pool_bias)                                # (S, 1)
    scores = scores - jnp.max(scores, axis=0, keepdims=True)
    pw = jnp.exp(scores)
    pw = pw * pl.reciprocal(jnp.sum(pw, axis=0, keepdims=True), approx=True)
    pooled = jnp.sum(pw * x, axis=0, keepdims=True)                        # (1, D)
    # dropout(p=0.2) is an inference-time identity
    z = jnp.dot(pooled.astype(bf16), uv_w_ref[...],
                preferred_element_type=f32) + uv_b_ref[...]                # (1, UV_PAD)
    col = jax.lax.broadcasted_iota(jnp.int32, (1, UV_PAD), 1)
    z = jnp.where(col == OUTPUT_DIM, jnp.exp(z), z)    # exp only on the v column
    out_ref[0] = z


def _build_fused_call(batch, seq):
    act_specs = [
        pl.BlockSpec((seq, EMB_SIZE), lambda b: (b, 0)),      # embeddings of sequence b
        pl.BlockSpec((1, 1, seq), lambda b: (b, 0, 0)),       # attention-mask bias (row)
        pl.BlockSpec((seq, 1), lambda b: (b, 0)),             # pooling-mask bias (column)
    ]
    weight_shapes = [
        (1, EMB_SIZE), (1, EMB_SIZE),               # emb LN gamma / beta
        (EMB_SIZE, BERT_DIM), (1, BERT_DIM),        # emb -> hidden projection
        (BERT_DIM, QKV_PAD), (1, QKV_PAD),          # fused, head-aligned Q|K|V
        (CTX_PAD, BERT_DIM), (1, BERT_DIM),         # attn output projection (row-padded)
        (1, BERT_DIM), (1, BERT_DIM),               # attn LN
        (BERT_DIM, INTERMEDIATE), (1, INTERMEDIATE),  # FFN in
        (INTERMEDIATE, BERT_DIM), (1, BERT_DIM),    # FFN out
        (1, BERT_DIM), (1, BERT_DIM),               # FFN LN
        (1, BERT_DIM), (1, 1),                      # attention-pooling scorer
        (BERT_DIM, UV_PAD), (1, UV_PAD),            # fused u|v head
    ]
    # constant index maps -> weights fetched once, resident across the whole grid
    weight_specs = [pl.BlockSpec(shp, lambda b: (0, 0)) for shp in weight_shapes]

    return pl.pallas_call(
        _fused_forward_kernel,
        out_shape=jax.ShapeDtypeStruct((batch, 1, UV_PAD), jnp.float32),
        grid=(batch,),
        in_specs=act_specs + weight_specs,
        out_specs=pl.BlockSpec((1, 1, UV_PAD), lambda b: (b, 0, 0)),
        scratch_shapes=[pltpu.VMEM((seq, CTX_PAD), jnp.float32)],
        compiler_params=pltpu.CompilerParams(
            dimension_semantics=("parallel",)),      # 2-TC sharding on v7x, neutral elsewhere
    )


# ---------------------------------------------------------------------------
# Forward wrapper (only the embedding gather stays in XLA)
# ---------------------------------------------------------------------------
def lmc_decoder_forward(params, input_ids, attention_mask):
    b, s = input_ids.shape
    # ALBERT embedding lookup (word + position + token-type 0).
    # TODO(synk): fold the word-embedding gather into the kernel (needs per-row dynamic
    # VMEM loads); kept as a single XLA take() for robustness.
    emb = (jnp.take(params["word_emb"], input_ids, axis=0)
           + params["pos_emb"][:s][None, :, :]
           + params["tok_emb"][0][None, None, :])
    emb = emb.reshape(b * s, EMB_SIZE).astype(jnp.float32)

    mask = attention_mask.astype(jnp.float32)
    attn_bias = ((1.0 - mask) * jnp.float32(-10000.0)).reshape(b, 1, s)
    pool_bias = jnp.where(mask > 0.5, jnp.float32(0.0),
                          jnp.float32(-1e9)).reshape(b * s, 1)

    out = _build_fused_call(b, s)(
        emb, attn_bias, pool_bias,
        params["emb_ln_g"], params["emb_ln_b"],
        params["emb_proj_w"], params["emb_proj_b"],
        params["qkv_w"], params["qkv_b"],
        params["attn_o_w"], params["attn_o_b"],
        params["attn_ln_g"], params["attn_ln_b"],
        params["ffn_w"], params["ffn_b"],
        params["ffn_o_w"], params["ffn_o_b"],
        params["ffn_ln_g"], params["ffn_ln_b"],
        params["att_w"], params["att_b"],
        params["uv_w"], params["uv_b"])

    out = out.reshape(b, UV_PAD)
    u_out = out[:, :OUTPUT_DIM]
    v_out = out[:, OUTPUT_DIM:OUTPUT_DIM + 1]
    return u_out, v_out


# ---------------------------------------------------------------------------
# Deterministic parameter initialization
#   * matmul weights stored bf16 (halves weight DMA); LN/bias/scorer params stay f32
#   * Q|K|V fused & per-head zero-padded to 128-lane boundaries
#   * attention output projection row-padded to match the padded context layout
#   * u|v head fused & zero-padded to 128 lanes (cols [0,100)=u, col 100=v)
# ---------------------------------------------------------------------------
def init_params(key, vocab_size):
    std = 0.02
    keys = iter(jax.random.split(key, 16))

    def nrm(shape):
        return jax.random.normal(next(keys), shape, jnp.float32) * std

    q_w = nrm((BERT_DIM, BERT_DIM))
    k_w = nrm((BERT_DIM, BERT_DIM))
    v_w = nrm((BERT_DIM, BERT_DIM))          # layer V projection (distinct from head v below)
    attn_o_w = nrm((BERT_DIM, BERT_DIM))
    u_w = nrm((BERT_DIM, OUTPUT_DIM))
    v_head_w = nrm((BERT_DIM, 1))

    # head-aligned fused Q|K|V: per head -> [Q(64)|0(64)|K(64)|0(64)|V(64)|0(64)]
    qkv_w = jnp.zeros((BERT_DIM, QKV_PAD), jnp.float32)
    for h in range(NUM_HEADS):
        base = h * 3 * HEAD_BLK
        src = slice(h * HEAD_DIM, (h + 1) * HEAD_DIM)
        qkv_w = qkv_w.at[:, base:base + HEAD_DIM].set(q_w[:, src])
        qkv_w = qkv_w.at[:, base + HEAD_BLK:base + HEAD_BLK + HEAD_DIM].set(k_w[:, src])
        qkv_w = qkv_w.at[:, base + 2 * HEAD_BLK:base + 2 * HEAD_BLK + HEAD_DIM].set(v_w[:, src])

    # output projection with rows moved to the padded per-head context layout
    attn_o_w_pad = jnp.zeros((CTX_PAD, BERT_DIM), jnp.float32)
    for h in range(NUM_HEADS):
        attn_o_w_pad = attn_o_w_pad.at[h * HEAD_BLK:h * HEAD_BLK + HEAD_DIM, :].set(
            attn_o_w[h * HEAD_DIM:(h + 1) * HEAD_DIM, :])

    uv_w = (jnp.zeros((BERT_DIM, UV_PAD), jnp.float32)
            .at[:, :OUTPUT_DIM].set(u_w)
            .at[:, OUTPUT_DIM:OUTPUT_DIM + 1].set(v_head_w))

    bf16 = jnp.bfloat16
    p = {
        "word_emb": nrm((vocab_size, EMB_SIZE)),
        "pos_emb": nrm((MAX_POS, EMB_SIZE)),
        "tok_emb": nrm((2, EMB_SIZE)),
        "emb_ln_g": jnp.ones((1, EMB_SIZE), jnp.float32),
        "emb_ln_b": jnp.zeros((1, EMB_SIZE), jnp.float32),
        "emb_proj_w": nrm((EMB_SIZE, BERT_DIM)).astype(bf16),
        "emb_proj_b": jnp.zeros((1, BERT_DIM), jnp.float32),
        "qkv_w": qkv_w.astype(bf16),
        "qkv_b": jnp.zeros((1, QKV_PAD), jnp.float32),
        "attn_o_w": attn_o_w_pad.astype(bf16),
        "attn_o_b": jnp.zeros((1, BERT_DIM), jnp.float32),
        "attn_ln_g": jnp.ones((1, BERT_DIM), jnp.float32),
        "attn_ln_b": jnp.zeros((1, BERT_DIM), jnp.float32),
        "ffn_w": nrm((BERT_DIM, INTERMEDIATE)).astype(bf16),
        "ffn_b": jnp.zeros((1, INTERMEDIATE), jnp.float32),
        "ffn_o_w": nrm((INTERMEDIATE, BERT_DIM)).astype(bf16),
        "ffn_o_b": jnp.zeros((1, BERT_DIM), jnp.float32),
        "ffn_ln_g": jnp.ones((1, BERT_DIM), jnp.float32),
        "ffn_ln_b": jnp.zeros((1, BERT_DIM), jnp.float32),
        # attention-pooling scorer (used elementwise -> f32)
        "att_w": nrm((1, BERT_DIM)),
        "att_b": jnp.zeros((1, 1), jnp.float32),
        "uv_w": uv_w.astype(bf16),
        "uv_b": jnp.zeros((1, UV_PAD), jnp.float32),
    }
    return p


if __name__ == "__main__":
    key = jax.random.PRNGKey(0)
    k_params, k_ids = jax.random.split(key)

    B, S, VOCAB = 2, 8, 50
    params = init_params(k_params, VOCAB)
    input_ids = jax.random.randint(k_ids, (B, S), 0, VOCAB, dtype=jnp.int32)
    attention_mask = jnp.ones((B, S), jnp.float32).at[1, 6:].set(0.0)  # pad last 2 of seq 1

    fwd = jax.jit(lmc_decoder_forward)
    u_out, v_out = fwd(params, input_ids, attention_mask)
    jax.block_until_ready((u_out, v_out))

    assert u_out.shape == (B, OUTPUT_DIM) and u_out.dtype == jnp.float32
    assert v_out.shape == (B, 1) and v_out.dtype == jnp.float32
    assert bool(jnp.all(v_out > 0.0))          # v(h).exp() must be strictly positive
    assert bool(jnp.all(jnp.isfinite(u_out)))
    print("KERNEL_OK")
</pallas_src>

<mosaic_0001>
module attributes {stable_mosaic.version = 11 : i64} {
  func.func @_fused_forward_kernel(%arg0: i32, %arg1: memref<8x128xf32, #tpu.memory_space<vmem>>, %arg2: memref<1x1x8xf32, #tpu.memory_space<vmem>>, %arg3: memref<8x1xf32, #tpu.memory_space<vmem>>, %arg4: memref<1x128xf32, #tpu.memory_space<vmem>>, %arg5: memref<1x128xf32, #tpu.memory_space<vmem>>, %arg6: memref<128x256xbf16, #tpu.memory_space<vmem>>, %arg7: memref<1x256xf32, #tpu.memory_space<vmem>>, %arg8: memref<256x1536xbf16, #tpu.memory_space<vmem>>, %arg9: memref<1x1536xf32, #tpu.memory_space<vmem>>, %arg10: memref<512x256xbf16, #tpu.memory_space<vmem>>, %arg11: memref<1x256xf32, #tpu.memory_space<vmem>>, %arg12: memref<1x256xf32, #tpu.memory_space<vmem>>, %arg13: memref<1x256xf32, #tpu.memory_space<vmem>>, %arg14: memref<256x256xbf16, #tpu.memory_space<vmem>>, %arg15: memref<1x256xf32, #tpu.memory_space<vmem>>, %arg16: memref<256x256xbf16, #tpu.memory_space<vmem>>, %arg17: memref<1x256xf32, #tpu.memory_space<vmem>>, %arg18: memref<1x256xf32, #tpu.memory_space<vmem>>, %arg19: memref<1x256xf32, #tpu.memory_space<vmem>>, %arg20: memref<1x256xf32, #tpu.memory_space<vmem>>, %arg21: memref<1x1xf32, #tpu.memory_space<vmem>>, %arg22: memref<256x128xbf16, #tpu.memory_space<vmem>>, %arg23: memref<1x128xf32, #tpu.memory_space<vmem>>, %arg24: memref<1x1x128xf32, #tpu.memory_space<vmem>>, %arg25: memref<8x512xf32, #tpu.memory_space<vmem>>) attributes {dimension_semantics = [#tpu.dimension_semantics<parallel>], iteration_bounds = array<i64: 2>, scalar_prefetch = 0 : i64, scratch_operands = 1 : i64, tpu.core_type = #tpu.core_type<tc>, window_params = [{transform_indices = @transform_0, window_bounds = array<i64: 8, 128>}, {transform_indices = @transform_1, window_bounds = array<i64: 1, 1, 8>}, {transform_indices = @transform_2, window_bounds = array<i64: 8, 1>}, {pipeline_mode = #tpu.pipeline_mode<synchronous>, transform_indices = @transform_3, window_bounds = array<i64: 1, 128>}, {pipeline_mode = #tpu.pipeline_mode<synchronous>, transform_indices = @transform_4, window_bounds = array<i64: 1, 128>}, {pipeline_mode = #tpu.pipeline_mode<synchronous>, transform_indices = @transform_5, window_bounds = array<i64: 128, 256>}, {pipeline_mode = #tpu.pipeline_mode<synchronous>, transform_indices = @transform_6, window_bounds = array<i64: 1, 256>}, {pipeline_mode = #tpu.pipeline_mode<synchronous>, transform_indices = @transform_7, window_bounds = array<i64: 256, 1536>}, {pipeline_mode = #tpu.pipeline_mode<synchronous>, transform_indices = @transform_8, window_bounds = array<i64: 1, 1536>}, {pipeline_mode = #tpu.pipeline_mode<synchronous>, transform_indices = @transform_9, window_bounds = array<i64: 512, 256>}, {pipeline_mode = #tpu.pipeline_mode<synchronous>, transform_indices = @transform_10, window_bounds = array<i64: 1, 256>}, {pipeline_mode = #tpu.pipeline_mode<synchronous>, transform_indices = @transform_11, window_bounds = array<i64: 1, 256>}, {pipeline_mode = #tpu.pipeline_mode<synchronous>, transform_indices = @transform_12, window_bounds = array<i64: 1, 256>}, {pipeline_mode = #tpu.pipeline_mode<synchronous>, transform_indices = @transform_13, window_bounds = array<i64: 256, 256>}, {pipeline_mode = #tpu.pipeline_mode<synchronous>, transform_indices = @transform_14, window_bounds = array<i64: 1, 256>}, {pipeline_mode = #tpu.pipeline_mode<synchronous>, transform_indices = @transform_15, window_bounds = array<i64: 256, 256>}, {pipeline_mode = #tpu.pipeline_mode<synchronous>, transform_indices = @transform_16, window_bounds = array<i64: 1, 256>}, {pipeline_mode = #tpu.pipeline_mode<synchronous>, transform_indices = @transform_17, window_bounds = array<i64: 1, 256>}, {pipeline_mode = #tpu.pipeline_mode<synchronous>, transform_indices = @transform_18, window_bounds = array<i64: 1, 256>}, {pipeline_mode = #tpu.pipeline_mode<synchronous>, transform_indices = @transform_19, window_bounds = array<i64: 1, 256>}, {pipeline_mode = #tpu.pipeline_mode<synchronous>, transform_indices = @transform_20, window_bounds = array<i64: 1, 1>}, {pipeline_mode = #tpu.pipeline_mode<synchronous>, transform_indices = @transform_21, window_bounds = array<i64: 256, 128>}, {pipeline_mode = #tpu.pipeline_mode<synchronous>, transform_indices = @transform_22, window_bounds = array<i64: 1, 128>}, {transform_indices = @transform_23, window_bounds = array<i64: 1, 1, 128>}]} {
    %c0 = arith.constant 0 : index
    %c0_0 = arith.constant 0 : index
    %0 = vector.load %arg1[%c0, %c0_0] : memref<8x128xf32, #tpu.memory_space<vmem>>, vector<8x128xf32>
    %c0_1 = arith.constant 0 : index
    %c0_2 = arith.constant 0 : index
    %c0_3 = arith.constant 0 : index
    %1 = vector.load %arg2[%c0_1, %c0_2, %c0_3] : memref<1x1x8xf32, #tpu.memory_space<vmem>>, vector<1x1x8xf32>
    %2 = vector.shape_cast %1 : vector<1x1x8xf32> to vector<1x8xf32>
    %c0_4 = arith.constant 0 : index
    %c0_5 = arith.constant 0 : index
    %3 = vector.load %arg3[%c0_4, %c0_5] : memref<8x1xf32, #tpu.memory_space<vmem>>, vector<8x1xf32>
    %c0_6 = arith.constant 0 : index
    %c0_7 = arith.constant 0 : index
    %4 = vector.load %arg8[%c0_6, %c0_7] : memref<256x1536xbf16, #tpu.memory_space<vmem>>, vector<256x1536xbf16>
    %c0_8 = arith.constant 0 : index
    %c0_9 = arith.constant 0 : index
    %5 = vector.load %arg9[%c0_8, %c0_9] : memref<1x1536xf32, #tpu.memory_space<vmem>>, vector<1x1536xf32>
    %c0_10 = arith.constant 0 : index
    %c0_11 = arith.constant 0 : index
    %6 = vector.load %arg10[%c0_10, %c0_11] : memref<512x256xbf16, #tpu.memory_space<vmem>>, vector<512x256xbf16>
    %c0_12 = arith.constant 0 : index
    %c0_13 = arith.constant 0 : index
    %7 = vector.load %arg11[%c0_12, %c0_13] : memref<1x256xf32, #tpu.memory_space<vmem>>, vector<1x256xf32>
    %c0_14 = arith.constant 0 : index
    %c0_15 = arith.constant 0 : index
    %8 = vector.load %arg12[%c0_14, %c0_15] : memref<1x256xf32, #tpu.memory_space<vmem>>, vector<1x256xf32>
    %c0_16 = arith.constant 0 : index
    %c0_17 = arith.constant 0 : index
    %9 = vector.load %arg13[%c0_16, %c0_17] : memref<1x256xf32, #tpu.memory_space<vmem>>, vector<1x256xf32>
    %c0_18 = arith.constant 0 : index
    %c0_19 = arith.constant 0 : index
    %10 = vector.load %arg14[%c0_18, %c0_19] : memref<256x256xbf16, #tpu.memory_space<vmem>>, vector<256x256xbf16>
    %c0_20 = arith.constant 0 : index
    %c0_21 = arith.constant 0 : index
    %11 = vector.load %arg15[%c0_20, %c0_21] : memref<1x256xf32, #tpu.memory_space<vmem>>, vector<1x256xf32>
    %c0_22 = arith.constant 0 : index
    %c0_23 = arith.constant 0 : index
    %12 = vector.load %arg16[%c0_22, %c0_23] : memref<256x256xbf16, #tpu.memory_space<vmem>>, vector<256x256xbf16>
    %c0_24 = arith.constant 0 : index
    %c0_25 = arith.constant 0 : index
    %13 = vector.load %arg17[%c0_24, %c0_25] : memref<1x256xf32, #tpu.memory_space<vmem>>, vector<1x256xf32>
    %c0_26 = arith.constant 0 : index
    %c0_27 = arith.constant 0 : index
    %14 = vector.load %arg18[%c0_26, %c0_27] : memref<1x256xf32, #tpu.memory_space<vmem>>, vector<1x256xf32>
    %c0_28 = arith.constant 0 : index
    %c0_29 = arith.constant 0 : index
    %15 = vector.load %arg19[%c0_28, %c0_29] : memref<1x256xf32, #tpu.memory_space<vmem>>, vector<1x256xf32>
    %c0_30 = arith.constant 0 : index
    %c0_31 = arith.constant 0 : index
    %16 = vector.load %arg4[%c0_30, %c0_31] : memref<1x128xf32, #tpu.memory_space<vmem>>, vector<1x128xf32>
    %c0_32 = arith.constant 0 : index
    %c0_33 = arith.constant 0 : index
    %17 = vector.load %arg5[%c0_32, %c0_33] : memref<1x128xf32, #tpu.memory_space<vmem>>, vector<1x128xf32>
    %cst = arith.constant dense<0.000000e+00> : vector<8xf32>
    %18 = vector.multi_reduction <add>, %0, %cst [1] : vector<8x128xf32> to vector<8xf32>
    %19 = vector.shape_cast %18 : vector<8xf32> to vector<8x1xf32>
    %cst_34 = arith.constant 1.280000e+02 : f32
    %20 = vector.broadcast %cst_34 : f32 to vector<8x1xf32>
    %21 = arith.divf %19, %20 : vector<8x1xf32>
    %22 = vector.broadcast %21 : vector<8x1xf32> to vector<8x128xf32>
    %23 = arith.subf %0, %22 : vector<8x128xf32>
    %24 = arith.mulf %23, %23 : vector<8x128xf32>
    %cst_35 = arith.constant dense<0.000000e+00> : vector<8xf32>
    %25 = vector.multi_reduction <add>, %24, %cst_35 [1] : vector<8x128xf32> to vector<8xf32>
    %26 = vector.shape_cast %25 : vector<8xf32> to vector<8x1xf32>
    %cst_36 = arith.constant 1.280000e+02 : f32
    %27 = vector.broadcast %cst_36 : f32 to vector<8x1xf32>
    %28 = arith.divf %26, %27 : vector<8x1xf32>
    %cst_37 = arith.constant 9.99999996E-13 : f32
    %29 = vector.broadcast %cst_37 : f32 to vector<8x1xf32>
    %30 = arith.addf %28, %29 : vector<8x1xf32>
    %31 = math.rsqrt %30 : vector<8x1xf32>
    %32 = vector.broadcast %31 : vector<8x1xf32> to vector<8x128xf32>
    %33 = arith.mulf %23, %32 : vector<8x128xf32>
    %34 = vector.broadcast %16 : vector<1x128xf32> to vector<8x128xf32>
    %35 = arith.mulf %33, %34 : vector<8x128xf32>
    %36 = vector.broadcast %17 : vector<1x128xf32> to vector<8x128xf32>
    %37 = arith.addf %35, %36 : vector<8x128xf32>
    %38 = arith.truncf %37 : vector<8x128xf32> to vector<8x128xbf16>
    %c0_38 = arith.constant 0 : index
    %c0_39 = arith.constant 0 : index
    %39 = vector.load %arg6[%c0_38, %c0_39] : memref<128x256xbf16, #tpu.memory_space<vmem>>, vector<128x256xbf16>
    %cst_40 = arith.constant dense<0.000000e+00> : vector<8x256xf32>
    %40 = tpu.matmul %38, %39, %cst_40 {dimension_numbers = #tpu.dot_dimension_numbers<[1], [0], [0], [1], [0, 0, 1, 1], [], []>} : vector<8x128xbf16>, vector<128x256xbf16>, vector<8x256xf32> -> vector<8x256xf32>
    %c0_41 = arith.constant 0 : index
    %c0_42 = arith.constant 0 : index
    %41 = vector.load %arg7[%c0_41, %c0_42] : memref<1x256xf32, #tpu.memory_space<vmem>>, vector<1x256xf32>
    %42 = vector.broadcast %41 : vector<1x256xf32> to vector<8x256xf32>
    %43 = arith.addf %40, %42 : vector<8x256xf32>
    %44 = arith.truncf %43 : vector<8x256xf32> to vector<8x256xbf16>
    %cst_43 = arith.constant dense<0.000000e+00> : vector<8x1536xf32>
    %45 = tpu.matmul %44, %4, %cst_43 {dimension_numbers = #tpu.dot_dimension_numbers<[1], [0], [0], [1], [0, 0, 1, 1], [], []>} : vector<8x256xbf16>, vector<256x1536xbf16>, vector<8x1536xf32> -> vector<8x1536xf32>
    %46 = vector.broadcast %5 : vector<1x1536xf32> to vector<8x1536xf32>
    %47 = arith.addf %45, %46 : vector<8x1536xf32>
    %48 = vector.extract_strided_slice %47 {offsets = [0, 0], sizes = [8, 128], strides = [1, 1]} : vector<8x1536xf32> to vector<8x128xf32>
    %49 = arith.truncf %48 : vector<8x128xf32> to vector<8x128xbf16>
    %50 = vector.extract_strided_slice %47 {offsets = [0, 128], sizes = [8, 128], strides = [1, 1]} : vector<8x1536xf32> to vector<8x128xf32>
    %51 = arith.truncf %50 : vector<8x128xf32> to vector<8x128xbf16>
    %52 = vector.extract_strided_slice %47 {offsets = [0, 256], sizes = [8, 128], strides = [1, 1]} : vector<8x1536xf32> to vector<8x128xf32>
    %53 = arith.truncf %52 : vector<8x128xf32> to vector<8x128xbf16>
    %cst_44 = arith.constant dense<0.000000e+00> : vector<8x8xf32>
    %54 = tpu.matmul %49, %51, %cst_44 {dimension_numbers = #tpu.dot_dimension_numbers<[1], [1], [0], [0], [0, 0, 1, 0], [], []>} : vector<8x128xbf16>, vector<8x128xbf16>, vector<8x8xf32> -> vector<8x8xf32>
    %cst_45 = arith.constant 1.250000e-01 : f32
    %55 = vector.broadcast %cst_45 : f32 to vector<8x8xf32>
    %56 = arith.mulf %54, %55 : vector<8x8xf32>
    %57 = vector.broadcast %2 : vector<1x8xf32> to vector<8x8xf32>
    %58 = arith.addf %56, %57 : vector<8x8xf32>
    %cst_46 = arith.constant dense<0xFF800000> : vector<8xf32>
    %59 = vector.multi_reduction <maximumf>, %58, %cst_46 [1] : vector<8x8xf32> to vector<8xf32>
    %60 = vector.shape_cast %59 : vector<8xf32> to vector<8x1xf32>
    %61 = vector.broadcast %60 : vector<8x1xf32> to vector<8x8xf32>
    %62 = arith.subf %58, %61 : vector<8x8xf32>
    %63 = math.exp %62 : vector<8x8xf32>
    %cst_47 = arith.constant dense<0.000000e+00> : vector<8xf32>
    %64 = vector.multi_reduction <add>, %63, %cst_47 [1] : vector<8x8xf32> to vector<8xf32>
    %65 = vector.shape_cast %64 : vector<8xf32> to vector<8x1xf32>
    %66 = tpu.reciprocal %65 {approx = true} : vector<8x1xf32> -> vector<8x1xf32>
    %67 = vector.broadcast %66 : vector<8x1xf32> to vector<8x8xf32>
    %68 = arith.mulf %63, %67 : vector<8x8xf32>
    %69 = arith.truncf %68 : vector<8x8xf32> to vector<8x8xbf16>
    %cst_48 = arith.constant dense<0.000000e+00> : vector<8x128xf32>
    %70 = tpu.matmul %69, %53, %cst_48 {dimension_numbers = #tpu.dot_dimension_numbers<[1], [0], [0], [1], [0, 0, 1, 1], [], []>} : vector<8x8xbf16>, vector<8x128xbf16>, vector<8x128xf32> -> vector<8x128xf32>
    %c0_49 = arith.constant 0 : index
    %c0_50 = arith.constant 0 : index
    %71 = vector.load %arg25[%c0_49, %c0_50] : memref<8x512xf32, #tpu.memory_space<vmem>>, vector<8x128xf32>
    tpu.vector_store %arg25[%c0_49, %c0_50], %70 {strides = array<i32>} : memref<8x512xf32, #tpu.memory_space<vmem>>, vector<8x128xf32>,
    %72 = vector.extract_strided_slice %47 {offsets = [0, 384], sizes = [8, 128], strides = [1, 1]} : vector<8x1536xf32> to vector<8x128xf32>
    %73 = arith.truncf %72 : vector<8x128xf32> to vector<8x128xbf16>
    %74 = vector.extract_strided_slice %47 {offsets = [0, 512], sizes = [8, 128], strides = [1, 1]} : vector<8x1536xf32> to vector<8x128xf32>
    %75 = arith.truncf %74 : vector<8x128xf32> to vector<8x128xbf16>
    %76 = vector.extract_strided_slice %47 {offsets = [0, 640], sizes = [8, 128], strides = [1, 1]} : vector<8x1536xf32> to vector<8x128xf32>
    %77 = arith.truncf %76 : vector<8x128xf32> to vector<8x128xbf16>
    %cst_51 = arith.constant dense<0.000000e+00> : vector<8x8xf32>
    %78 = tpu.matmul %73, %75, %cst_51 {dimension_numbers = #tpu.dot_dimension_numbers<[1], [1], [0], [0], [0, 0, 1, 0], [], []>} : vector<8x128xbf16>, vector<8x128xbf16>, vector<8x8xf32> -> vector<8x8xf32>
    %cst_52 = arith.constant 1.250000e-01 : f32
    %79 = vector.broadcast %cst_52 : f32 to vector<8x8xf32>
    %80 = arith.mulf %78, %79 : vector<8x8xf32>
    %81 = vector.broadcast %2 : vector<1x8xf32> to vector<8x8xf32>
    %82 = arith.addf %80, %81 : vector<8x8xf32>
    %cst_53 = arith.constant dense<0xFF800000> : vector<8xf32>
    %83 = vector.multi_reduction <maximumf>, %82, %cst_53 [1] : vector<8x8xf32> to vector<8xf32>
    %84 = vector.shape_cast %83 : vector<8xf32> to vector<8x1xf32>
    %85 = vector.broadcast %84 : vector<8x1xf32> to vector<8x8xf32>
    %86 = arith.subf %82, %85 : vector<8x8xf32>
    %87 = math.exp %86 : vector<8x8xf32>
    %cst_54 = arith.constant dense<0.000000e+00> : vector<8xf32>
    %88 = vector.multi_reduction <add>, %87, %cst_54 [1] : vector<8x8xf32> to vector<8xf32>
    %89 = vector.shape_cast %88 : vector<8xf32> to vector<8x1xf32>
    %90 = tpu.reciprocal %89 {approx = true} : vector<8x1xf32> -> vector<8x1xf32>
    %91 = vector.broadcast %90 : vector<8x1xf32> to vector<8x8xf32>
    %92 = arith.mulf %87, %91 : vector<8x8xf32>
    %93 = arith.truncf %92 : vector<8x8xf32> to vector<8x8xbf16>
    %cst_55 = arith.constant dense<0.000000e+00> : vector<8x128xf32>
    %94 = tpu.matmul %93, %77, %cst_55 {dimension_numbers = #tpu.dot_dimension_numbers<[1], [0], [0], [1], [0, 0, 1, 1], [], []>} : vector<8x8xbf16>, vector<8x128xbf16>, vector<8x128xf32> -> vector<8x128xf32>
    %c0_56 = arith.constant 0 : index
    %c128 = arith.constant 128 : index
    %95 = vector.load %arg25[%c0_56, %c128] : memref<8x512xf32, #tpu.memory_space<vmem>>, vector<8x128xf32>
    tpu.vector_store %arg25[%c0_56, %c128], %94 {strides = array<i32>} : memref<8x512xf32, #tpu.memory_space<vmem>>, vector<8x128xf32>,
    %96 = vector.extract_strided_slice %47 {offsets = [0, 768], sizes = [8, 128], strides = [1, 1]} : vector<8x1536xf32> to vector<8x128xf32>
    %97 = arith.truncf %96 : vector<8x128xf32> to vector<8x128xbf16>
    %98 = vector.extract_strided_slice %47 {offsets = [0, 896], sizes = [8, 128], strides = [1, 1]} : vector<8x1536xf32> to vector<8x128xf32>
    %99 = arith.truncf %98 : vector<8x128xf32> to vector<8x128xbf16>
    %100 = vector.extract_strided_slice %47 {offsets = [0, 1024], sizes = [8, 128], strides = [1, 1]} : vector<8x1536xf32> to vector<8x128xf32>
    %101 = arith.truncf %100 : vector<8x128xf32> to vector<8x128xbf16>
    %cst_57 = arith.constant dense<0.000000e+00> : vector<8x8xf32>
    %102 = tpu.matmul %97, %99, %cst_57 {dimension_numbers = #tpu.dot_dimension_numbers<[1], [1], [0], [0], [0, 0, 1, 0], [], []>} : vector<8x128xbf16>, vector<8x128xbf16>, vector<8x8xf32> -> vector<8x8xf32>
    %cst_58 = arith.constant 1.250000e-01 : f32
    %103 = vector.broadcast %cst_58 : f32 to vector<8x8xf32>
    %104 = arith.mulf %102, %103 : vector<8x8xf32>
    %105 = vector.broadcast %2 : vector<1x8xf32> to vector<8x8xf32>
    %106 = arith.addf %104, %105 : vector<8x8xf32>
    %cst_59 = arith.constant dense<0xFF800000> : vector<8xf32>
    %107 = vector.multi_reduction <maximumf>, %106, %cst_59 [1] : vector<8x8xf32> to vector<8xf32>
    %108 = vector.shape_cast %107 : vector<8xf32> to vector<8x1xf32>
    %109 = vector.broadcast %108 : vector<8x1xf32> to vector<8x8xf32>
    %110 = arith.subf %106, %109 : vector<8x8xf32>
    %111 = math.exp %110 : vector<8x8xf32>
    %cst_60 = arith.constant dense<0.000000e+00> : vector<8xf32>
    %112 = vector.multi_reduction <add>, %111, %cst_60 [1] : vector<8x8xf32> to vector<8xf32>
    %113 = vector.shape_cast %112 : vector<8xf32> to vector<8x1xf32>
    %114 = tpu.reciprocal %113 {approx = true} : vector<8x1xf32> -> vector<8x1xf32>
    %115 = vector.broadcast %114 : vector<8x1xf32> to vector<8x8xf32>
    %116 = arith.mulf %111, %115 : vector<8x8xf32>
    %117 = arith.truncf %116 : vector<8x8xf32> to vector<8x8xbf16>
    %cst_61 = arith.constant dense<0.000000e+00> : vector<8x128xf32>
    %118 = tpu.matmul %117, %101, %cst_61 {dimension_numbers = #tpu.dot_dimension_numbers<[1], [0], [0], [1], [0, 0, 1, 1], [], []>} : vector<8x8xbf16>, vector<8x128xbf16>, vector<8x128xf32> -> vector<8x128xf32>
    %c0_62 = arith.constant 0 : index
    %c256 = arith.constant 256 : index
    %119 = vector.load %arg25[%c0_62, %c256] : memref<8x512xf32, #tpu.memory_space<vmem>>, vector<8x128xf32>
    tpu.vector_store %arg25[%c0_62, %c256], %118 {strides = array<i32>} : memref<8x512xf32, #tpu.memory_space<vmem>>, vector<8x128xf32>,
    %120 = vector.extract_strided_slice %47 {offsets = [0, 1152], sizes = [8, 128], strides = [1, 1]} : vector<8x1536xf32> to vector<8x128xf32>
    %121 = arith.truncf %120 : vector<8x128xf32> to vector<8x128xbf16>
    %122 = vector.extract_strided_slice %47 {offsets = [0, 1280], sizes = [8, 128], strides = [1, 1]} : vector<8x1536xf32> to vector<8x128xf32>
    %123 = arith.truncf %122 : vector<8x128xf32> to vector<8x128xbf16>
    %124 = vector.extract_strided_slice %47 {offsets = [0, 1408], sizes = [8, 128], strides = [1, 1]} : vector<8x1536xf32> to vector<8x128xf32>
    %125 = arith.truncf %124 : vector<8x128xf32> to vector<8x128xbf16>
    %cst_63 = arith.constant dense<0.000000e+00> : vector<8x8xf32>
    %126 = tpu.matmul %121, %123, %cst_63 {dimension_numbers = #tpu.dot_dimension_numbers<[1], [1], [0], [0], [0, 0, 1, 0], [], []>} : vector<8x128xbf16>, vector<8x128xbf16>, vector<8x8xf32> -> vector<8x8xf32>
    %cst_64 = arith.constant 1.250000e-01 : f32
    %127 = vector.broadcast %cst_64 : f32 to vector<8x8xf32>
    %128 = arith.mulf %126, %127 : vector<8x8xf32>
    %129 = vector.broadcast %2 : vector<1x8xf32> to vector<8x8xf32>
    %130 = arith.addf %128, %129 : vector<8x8xf32>
    %cst_65 = arith.constant dense<0xFF800000> : vector<8xf32>
    %131 = vector.multi_reduction <maximumf>, %130, %cst_65 [1] : vector<8x8xf32> to vector<8xf32>
    %132 = vector.shape_cast %131 : vector<8xf32> to vector<8x1xf32>
    %133 = vector.broadcast %132 : vector<8x1xf32> to vector<8x8xf32>
    %134 = arith.subf %130, %133 : vector<8x8xf32>
    %135 = math.exp %134 : vector<8x8xf32>
    %cst_66 = arith.constant dense<0.000000e+00> : vector<8xf32>
    %136 = vector.multi_reduction <add>, %135, %cst_66 [1] : vector<8x8xf32> to vector<8xf32>
    %137 = vector.shape_cast %136 : vector<8xf32> to vector<8x1xf32>
    %138 = tpu.reciprocal %137 {approx = true} : vector<8x1xf32> -> vector<8x1xf32>
    %139 = vector.broadcast %138 : vector<8x1xf32> to vector<8x8xf32>
    %140 = arith.mulf %135, %139 : vector<8x8xf32>
    %141 = arith.truncf %140 : vector<8x8xf32> to vector<8x8xbf16>
    %cst_67 = arith.constant dense<0.000000e+00> : vector<8x128xf32>
    %142 = tpu.matmul %141, %125, %cst_67 {dimension_numbers = #tpu.dot_dimension_numbers<[1], [0], [0], [1], [0, 0, 1, 1], [], []>} : vector<8x8xbf16>, vector<8x128xbf16>, vector<8x128xf32> -> vector<8x128xf32>
    %c0_68 = arith.constant 0 : index
    %c384 = arith.constant 384 : index
    %143 = vector.load %arg25[%c0_68, %c384] : memref<8x512xf32, #tpu.memory_space<vmem>>, vector<8x128xf32>
    tpu.vector_store %arg25[%c0_68, %c384], %142 {strides = array<i32>} : memref<8x512xf32, #tpu.memory_space<vmem>>, vector<8x128xf32>,
    %c0_69 = arith.constant 0 : index
    %c0_70 = arith.constant 0 : index
    %144 = vector.load %arg25[%c0_69, %c0_70] : memref<8x512xf32, #tpu.memory_space<vmem>>, vector<8x512xf32>
    %145 = arith.truncf %144 : vector<8x512xf32> to vector<8x512xbf16>
    %cst_71 = arith.constant dense<0.000000e+00> : vector<8x256xf32>
    %146 = tpu.matmul %145, %6, %cst_71 {dimension_numbers = #tpu.dot_dimension_numbers<[1], [0], [0], [1], [0, 0, 1, 1], [], []>} : vector<8x512xbf16>, vector<512x256xbf16>, vector<8x256xf32> -> vector<8x256xf32>
    %147 = vector.broadcast %7 : vector<1x256xf32> to vector<8x256xf32>
    %148 = arith.addf %146, %147 : vector<8x256xf32>
    %149 = arith.addf %148, %43 : vector<8x256xf32>
    %cst_72 = arith.constant dense<0.000000e+00> : vector<8xf32>
    %150 = vector.multi_reduction <add>, %149, %cst_72 [1] : vector<8x256xf32> to vector<8xf32>
    %151 = vector.shape_cast %150 : vector<8xf32> to vector<8x1xf32>
    %cst_73 = arith.constant 2.560000e+02 : f32
    %152 = vector.broadcast %cst_73 : f32 to vector<8x1xf32>
    %153 = arith.divf %151, %152 : vector<8x1xf32>
    %154 = vector.broadcast %153 : vector<8x1xf32> to vector<8x256xf32>
    %155 = arith.subf %149, %154 : vector<8x256xf32>
    %156 = arith.mulf %155, %155 : vector<8x256xf32>
    %cst_74 = arith.constant dense<0.000000e+00> : vector<8xf32>
    %157 = vector.multi_reduction <add>, %156, %cst_74 [1] : vector<8x256xf32> to vector<8xf32>
    %158 = vector.shape_cast %157 : vector<8xf32> to vector<8x1xf32>
    %cst_75 = arith.constant 2.560000e+02 : f32
    %159 = vector.broadcast %cst_75 : f32 to vector<8x1xf32>
    %160 = arith.divf %158, %159 : vector<8x1xf32>
    %cst_76 = arith.constant 9.99999996E-13 : f32
    %161 = vector.broadcast %cst_76 : f32 to vector<8x1xf32>
    %162 = arith.addf %160, %161 : vector<8x1xf32>
    %163 = math.rsqrt %162 : vector<8x1xf32>
    %164 = vector.broadcast %163 : vector<8x1xf32> to vector<8x256xf32>
    %165 = arith.mulf %155, %164 : vector<8x256xf32>
    %166 = vector.broadcast %8 : vector<1x256xf32> to vector<8x256xf32>
    %167 = arith.mulf %165, %166 : vector<8x256xf32>
    %168 = vector.broadcast %9 : vector<1x256xf32> to vector<8x256xf32>
    %169 = arith.addf %167, %168 : vector<8x256xf32>
    %170 = arith.truncf %169 : vector<8x256xf32> to vector<8x256xbf16>
    %cst_77 = arith.constant dense<0.000000e+00> : vector<8x256xf32>
    %171 = tpu.matmul %170, %10, %cst_77 {dimension_numbers = #tpu.dot_dimension_numbers<[1], [0], [0], [1], [0, 0, 1, 1], [], []>} : vector<8x256xbf16>, vector<256x256xbf16>, vector<8x256xf32> -> vector<8x256xf32>
    %172 = vector.broadcast %11 : vector<1x256xf32> to vector<8x256xf32>
    %173 = arith.addf %171, %172 : vector<8x256xf32>
    %cst_78 = arith.constant 5.000000e-01 : f32
    %174 = vector.broadcast %cst_78 : f32 to vector<8x256xf32>
    %175 = arith.mulf %174, %173 : vector<8x256xf32>
    %176 = arith.mulf %173, %173 : vector<8x256xf32>
    %177 = arith.mulf %176, %173 : vector<8x256xf32>
    %cst_79 = arith.constant 4.471500e-02 : f32
    %178 = vector.broadcast %cst_79 : f32 to vector<8x256xf32>
    %179 = arith.mulf %178, %177 : vector<8x256xf32>
    %180 = arith.addf %173, %179 : vector<8x256xf32>
    %cst_80 = arith.constant 0.797884583 : f32
    %181 = vector.broadcast %cst_80 : f32 to vector<8x256xf32>
    %182 = arith.mulf %181, %180 : vector<8x256xf32>
    %183 = math.tanh %182 : vector<8x256xf32>
    %cst_81 = arith.constant 1.000000e+00 : f32
    %184 = vector.broadcast %cst_81 : f32 to vector<8x256xf32>
    %185 = arith.addf %184, %183 : vector<8x256xf32>
    %186 = arith.mulf %175, %185 : vector<8x256xf32>
    %187 = arith.truncf %186 : vector<8x256xf32> to vector<8x256xbf16>
    %cst_82 = arith.constant dense<0.000000e+00> : vector<8x256xf32>
    %188 = tpu.matmul %187, %12, %cst_82 {dimension_numbers = #tpu.dot_dimension_numbers<[1], [0], [0], [1], [0, 0, 1, 1], [], []>} : vector<8x256xbf16>, vector<256x256xbf16>, vector<8x256xf32> -> vector<8x256xf32>
    %189 = vector.broadcast %13 : vector<1x256xf32> to vector<8x256xf32>
    %190 = arith.addf %188, %189 : vector<8x256xf32>
    %191 = arith.addf %190, %169 : vector<8x256xf32>
    %cst_83 = arith.constant dense<0.000000e+00> : vector<8xf32>
    %192 = vector.multi_reduction <add>, %191, %cst_83 [1] : vector<8x256xf32> to vector<8xf32>
    %193 = vector.shape_cast %192 : vector<8xf32> to vector<8x1xf32>
    %cst_84 = arith.constant 2.560000e+02 : f32
    %194 = vector.broadcast %cst_84 : f32 to vector<8x1xf32>
    %195 = arith.divf %193, %194 : vector<8x1xf32>
    %196 = vector.broadcast %195 : vector<8x1xf32> to vector<8x256xf32>
    %197 = arith.subf %191, %196 : vector<8x256xf32>
    %198 = arith.mulf %197, %197 : vector<8x256xf32>
    %cst_85 = arith.constant dense<0.000000e+00> : vector<8xf32>
    %199 = vector.multi_reduction <add>, %198, %cst_85 [1] : vector<8x256xf32> to vector<8xf32>
    %200 = vector.shape_cast %199 : vector<8xf32> to vector<8x1xf32>
    %cst_86 = arith.constant 2.560000e+02 : f32
    %201 = vector.broadcast %cst_86 : f32 to vector<8x1xf32>
    %202 = arith.divf %200, %201 : vector<8x1xf32>
    %cst_87 = arith.constant 9.99999996E-13 : f32
    %203 = vector.broadcast %cst_87 : f32 to vector<8x1xf32>
    %204 = arith.addf %202, %203 : vector<8x1xf32>
    %205 = math.rsqrt %204 : vector<8x1xf32>
    %206 = vector.broadcast %205 : vector<8x1xf32> to vector<8x256xf32>
    %207 = arith.mulf %197, %206 : vector<8x256xf32>
    %208 = vector.broadcast %14 : vector<1x256xf32> to vector<8x256xf32>
    %209 = arith.mulf %207, %208 : vector<8x256xf32>
    %210 = vector.broadcast %15 : vector<1x256xf32> to vector<8x256xf32>
    %211 = arith.addf %209, %210 : vector<8x256xf32>
    %212 = arith.truncf %211 : vector<8x256xf32> to vector<8x256xbf16>
    %cst_88 = arith.constant dense<0.000000e+00> : vector<8x1536xf32>
    %213 = tpu.matmul %212, %4, %cst_88 {dimension_numbers = #tpu.dot_dimension_numbers<[1], [0], [0], [1], [0, 0, 1, 1], [], []>} : vector<8x256xbf16>, vector<256x1536xbf16>, vector<8x1536xf32> -> vector<8x1536xf32>
    %214 = vector.broadcast %5 : vector<1x1536xf32> to vector<8x1536xf32>
    %215 = arith.addf %213, %214 : vector<8x1536xf32>
    %216 = vector.extract_strided_slice %215 {offsets = [0, 0], sizes = [8, 128], strides = [1, 1]} : vector<8x1536xf32> to vector<8x128xf32>
    %217 = arith.truncf %216 : vector<8x128xf32> to vector<8x128xbf16>
    %218 = vector.extract_strided_slice %215 {offsets = [0, 128], sizes = [8, 128], strides = [1, 1]} : vector<8x1536xf32> to vector<8x128xf32>
    %219 = arith.truncf %218 : vector<8x128xf32> to vector<8x128xbf16>
    %220 = vector.extract_strided_slice %215 {offsets = [0, 256], sizes = [8, 128], strides = [1, 1]} : vector<8x1536xf32> to vector<8x128xf32>
    %221 = arith.truncf %220 : vector<8x128xf32> to vector<8x128xbf16>
    %cst_89 = arith.constant dense<0.000000e+00> : vector<8x8xf32>
    %222 = tpu.matmul %217, %219, %cst_89 {dimension_numbers = #tpu.dot_dimension_numbers<[1], [1], [0], [0], [0, 0, 1, 0], [], []>} : vector<8x128xbf16>, vector<8x128xbf16>, vector<8x8xf32> -> vector<8x8xf32>
    %cst_90 = arith.constant 1.250000e-01 : f32
    %223 = vector.broadcast %cst_90 : f32 to vector<8x8xf32>
    %224 = arith.mulf %222, %223 : vector<8x8xf32>
    %225 = vector.broadcast %2 : vector<1x8xf32> to vector<8x8xf32>
    %226 = arith.addf %224, %225 : vector<8x8xf32>
    %cst_91 = arith.constant dense<0xFF800000> : vector<8xf32>
    %227 = vector.multi_reduction <maximumf>, %226, %cst_91 [1] : vector<8x8xf32> to vector<8xf32>
    %228 = vector.shape_cast %227 : vector<8xf32> to vector<8x1xf32>
    %229 = vector.broadcast %228 : vector<8x1xf32> to vector<8x8xf32>
    %230 = arith.subf %226, %229 : vector<8x8xf32>
    %231 = math.exp %230 : vector<8x8xf32>
    %cst_92 = arith.constant dense<0.000000e+00> : vector<8xf32>
    %232 = vector.multi_reduction <add>, %231, %cst_92 [1] : vector<8x8xf32> to vector<8xf32>
    %233 = vector.shape_cast %232 : vector<8xf32> to vector<8x1xf32>
    %234 = tpu.reciprocal %233 {approx = true} : vector<8x1xf32> -> vector<8x1xf32>
    %235 = vector.broadcast %234 : vector<8x1xf32> to vector<8x8xf32>
    %236 = arith.mulf %231, %235 : vector<8x8xf32>
    %237 = arith.truncf %236 : vector<8x8xf32> to vector<8x8xbf16>
    %cst_93 = arith.constant dense<0.000000e+00> : vector<8x128xf32>
    %238 = tpu.matmul %237, %221, %cst_93 {dimension_numbers = #tpu.dot_dimension_numbers<[1], [0], [0], [1], [0, 0, 1, 1], [], []>} : vector<8x8xbf16>, vector<8x128xbf16>, vector<8x128xf32> -> vector<8x128xf32>
    %c0_94 = arith.constant 0 : index
    %c0_95 = arith.constant 0 : index
    %239 = vector.load %arg25[%c0_94, %c0_95] : memref<8x512xf32, #tpu.memory_space<vmem>>, vector<8x128xf32>
    tpu.vector_store %arg25[%c0_94, %c0_95], %238 {strides = array<i32>} : memref<8x512xf32, #tpu.memory_space<vmem>>, vector<8x128xf32>,
    %240 = vector.extract_strided_slice %215 {offsets = [0, 384], sizes = [8, 128], strides = [1, 1]} : vector<8x1536xf32> to vector<8x128xf32>
    %241 = arith.truncf %240 : vector<8x128xf32> to vector<8x128xbf16>
    %242 = vector.extract_strided_slice %215 {offsets = [0, 512], sizes = [8, 128], strides = [1, 1]} : vector<8x1536xf32> to vector<8x128xf32>
    %243 = arith.truncf %242 : vector<8x128xf32> to vector<8x128xbf16>
    %244 = vector.extract_strided_slice %215 {offsets = [0, 640], sizes = [8, 128], strides = [1, 1]} : vector<8x1536xf32> to vector<8x128xf32>
    %245 = arith.truncf %244 : vector<8x128xf32> to vector<8x128xbf16>
    %cst_96 = arith.constant dense<0.000000e+00> : vector<8x8xf32>
    %246 = tpu.matmul %241, %243, %cst_96 {dimension_numbers = #tpu.dot_dimension_numbers<[1], [1], [0], [0], [0, 0, 1, 0], [], []>} : vector<8x128xbf16>, vector<8x128xbf16>, vector<8x8xf32> -> vector<8x8xf32>
    %cst_97 = arith.constant 1.250000e-01 : f32
    %247 = vector.broadcast %cst_97 : f32 to vector<8x8xf32>
    %248 = arith.mulf %246, %247 : vector<8x8xf32>
    %249 = vector.broadcast %2 : vector<1x8xf32> to vector<8x8xf32>
    %250 = arith.addf %248, %249 : vector<8x8xf32>
    %cst_98 = arith.constant dense<0xFF800000> : vector<8xf32>
    %251 = vector.multi_reduction <maximumf>, %250, %cst_98 [1] : vector<8x8xf32> to vector<8xf32>
    %252 = vector.shape_cast %251 : vector<8xf32> to vector<8x1xf32>
    %253 = vector.broadcast %252 : vector<8x1xf32> to vector<8x8xf32>
    %254 = arith.subf %250, %253 : vector<8x8xf32>
    %255 = math.exp %254 : vector<8x8xf32>
    %cst_99 = arith.constant dense<0.000000e+00> : vector<8xf32>
    %256 = vector.multi_reduction <add>, %255, %cst_99 [1] : vector<8x8xf32> to vector<8xf32>
    %257 = vector.shape_cast %256 : vector<8xf32> to vector<8x1xf32>
    %258 = tpu.reciprocal %257 {approx = true} : vector<8x1xf32> -> vector<8x1xf32>
    %259 = vector.broadcast %258 : vector<8x1xf32> to vector<8x8xf32>
    %260 = arith.mulf %255, %259 : vector<8x8xf32>
    %261 = arith.truncf %260 : vector<8x8xf32> to vector<8x8xbf16>
    %cst_100 = arith.constant dense<0.000000e+00> : vector<8x128xf32>
    %262 = tpu.matmul %261, %245, %cst_100 {dimension_numbers = #tpu.dot_dimension_numbers<[1], [0], [0], [1], [0, 0, 1, 1], [], []>} : vector<8x8xbf16>, vector<8x128xbf16>, vector<8x128xf32> -> vector<8x128xf32>
    %c0_101 = arith.constant 0 : index
    %c128_102 = arith.constant 128 : index
    %263 = vector.load %arg25[%c0_101, %c128_102] : memref<8x512xf32, #tpu.memory_space<vmem>>, vector<8x128xf32>
    tpu.vector_store %arg25[%c0_101, %c128_102], %262 {strides = array<i32>} : memref<8x512xf32, #tpu.memory_space<vmem>>, vector<8x128xf32>,
    %264 = vector.extract_strided_slice %215 {offsets = [0, 768], sizes = [8, 128], strides = [1, 1]} : vector<8x1536xf32> to vector<8x128xf32>
    %265 = arith.truncf %264 : vector<8x128xf32> to vector<8x128xbf16>
    %266 = vector.extract_strided_slice %215 {offsets = [0, 896], sizes = [8, 128], strides = [1, 1]} : vector<8x1536xf32> to vector<8x128xf32>
    %267 = arith.truncf %266 : vector<8x128xf32> to vector<8x128xbf16>
    %268 = vector.extract_strided_slice %215 {offsets = [0, 1024], sizes = [8, 128], strides = [1, 1]} : vector<8x1536xf32> to vector<8x128xf32>
    %269 = arith.truncf %268 : vector<8x128xf32> to vector<8x128xbf16>
    %cst_103 = arith.constant dense<0.000000e+00> : vector<8x8xf32>
    %270 = tpu.matmul %265, %267, %cst_103 {dimension_numbers = #tpu.dot_dimension_numbers<[1], [1], [0], [0], [0, 0, 1, 0], [], []>} : vector<8x128xbf16>, vector<8x128xbf16>, vector<8x8xf32> -> vector<8x8xf32>
    %cst_104 = arith.constant 1.250000e-01 : f32
    %271 = vector.broadcast %cst_104 : f32 to vector<8x8xf32>
    %272 = arith.mulf %270, %271 : vector<8x8xf32>
    %273 = vector.broadcast %2 : vector<1x8xf32> to vector<8x8xf32>
    %274 = arith.addf %272, %273 : vector<8x8xf32>
    %cst_105 = arith.constant dense<0xFF800000> : vector<8xf32>
    %275 = vector.multi_reduction <maximumf>, %274, %cst_105 [1] : vector<8x8xf32> to vector<8xf32>
    %276 = vector.shape_cast %275 : vector<8xf32> to vector<8x1xf32>
    %277 = vector.broadcast %276 : vector<8x1xf32> to vector<8x8xf32>
    %278 = arith.subf %274, %277 : vector<8x8xf32>
    %279 = math.exp %278 : vector<8x8xf32>
    %cst_106 = arith.constant dense<0.000000e+00> : vector<8xf32>
    %280 = vector.multi_reduction <add>, %279, %cst_106 [1] : vector<8x8xf32> to vector<8xf32>
    %281 = vector.shape_cast %280 : vector<8xf32> to vector<8x1xf32>
    %282 = tpu.reciprocal %281 {approx = true} : vector<8x1xf32> -> vector<8x1xf32>
    %283 = vector.broadcast %282 : vector<8x1xf32> to vector<8x8xf32>
    %284 = arith.mulf %279, %283 : vector<8x8xf32>
    %285 = arith.truncf %284 : vector<8x8xf32> to vector<8x8xbf16>
    %cst_107 = arith.constant dense<0.000000e+00> : vector<8x128xf32>
    %286 = tpu.matmul %285, %269, %cst_107 {dimension_numbers = #tpu.dot_dimension_numbers<[1], [0], [0], [1], [0, 0, 1, 1], [], []>} : vector<8x8xbf16>, vector<8x128xbf16>, vector<8x128xf32> -> vector<8x128xf32>
    %c0_108 = arith.constant 0 : index
    %c256_109 = arith.constant 256 : index
    %287 = vector.load %arg25[%c0_108, %c256_109] : memref<8x512xf32, #tpu.memory_space<vmem>>, vector<8x128xf32>
    tpu.vector_store %arg25[%c0_108, %c256_109], %286 {strides = array<i32>} : memref<8x512xf32, #tpu.memory_space<vmem>>, vector<8x128xf32>,
    %288 = vector.extract_strided_slice %215 {offsets = [0, 1152], sizes = [8, 128], strides = [1, 1]} : vector<8x1536xf32> to vector<8x128xf32>
    %289 = arith.truncf %288 : vector<8x128xf32> to vector<8x128xbf16>
    %290 = vector.extract_strided_slice %215 {offsets = [0, 1280], sizes = [8, 128], strides = [1, 1]} : vector<8x1536xf32> to vector<8x128xf32>
    %291 = arith.truncf %290 : vector<8x128xf32> to vector<8x128xbf16>
    %292 = vector.extract_strided_slice %215 {offsets = [0, 1408], sizes = [8, 128], strides = [1, 1]} : vector<8x1536xf32> to vector<8x128xf32>
    %293 = arith.truncf %292 : vector<8x128xf32> to vector<8x128xbf16>
    %cst_110 = arith.constant dense<0.000000e+00> : vector<8x8xf32>
    %294 = tpu.matmul %289, %291, %cst_110 {dimension_numbers = #tpu.dot_dimension_numbers<[1], [1], [0], [0], [0, 0, 1, 0], [], []>} : vector<8x128xbf16>, vector<8x128xbf16>, vector<8x8xf32> -> vector<8x8xf32>
    %cst_111 = arith.constant 1.250000e-01 : f32
    %295 = vector.broadcast %cst_111 : f32 to vector<8x8xf32>
    %296 = arith.mulf %294, %295 : vector<8x8xf32>
    %297 = vector.broadcast %2 : vector<1x8xf32> to vector<8x8xf32>
    %298 = arith.addf %296, %297 : vector<8x8xf32>
    %cst_112 = arith.constant dense<0xFF800000> : vector<8xf32>
    %299 = vector.multi_reduction <maximumf>, %298, %cst_112 [1] : vector<8x8xf32> to vector<8xf32>
    %300 = vector.shape_cast %299 : vector<8xf32> to vector<8x1xf32>
    %301 = vector.broadcast %300 : vector<8x1xf32> to vector<8x8xf32>
    %302 = arith.subf %298, %301 : vector<8x8xf32>
    %303 = math.exp %302 : vector<8x8xf32>
    %cst_113 = arith.constant dense<0.000000e+00> : vector<8xf32>
    %304 = vector.multi_reduction <add>, %303, %cst_113 [1] : vector<8x8xf32> to vector<8xf32>
    %305 = vector.shape_cast %304 : vector<8xf32> to vector<8x1xf32>
    %306 = tpu.reciprocal %305 {approx = true} : vector<8x1xf32> -> vector<8x1xf32>
    %307 = vector.broadcast %306 : vector<8x1xf32> to vector<8x8xf32>
    %308 = arith.mulf %303, %307 : vector<8x8xf32>
    %309 = arith.truncf %308 : vector<8x8xf32> to vector<8x8xbf16>
    %cst_114 = arith.constant dense<0.000000e+00> : vector<8x128xf32>
    %310 = tpu.matmul %309, %293, %cst_114 {dimension_numbers = #tpu.dot_dimension_numbers<[1], [0], [0], [1], [0, 0, 1, 1], [], []>} : vector<8x8xbf16>, vector<8x128xbf16>, vector<8x128xf32> -> vector<8x128xf32>
    %c0_115 = arith.constant 0 : index
    %c384_116 = arith.constant 384 : index
    %311 = vector.load %arg25[%c0_115, %c384_116] : memref<8x512xf32, #tpu.memory_space<vmem>>, vector<8x128xf32>
    tpu.vector_store %arg25[%c0_115, %c384_116], %310 {strides = array<i32>} : memref<8x512xf32, #tpu.memory_space<vmem>>, vector<8x128xf32>,
    %c0_117 = arith.constant 0 : index
    %c0_118 = arith.constant 0 : index
    %312 = vector.load %arg25[%c0_117, %c0_118] : memref<8x512xf32, #tpu.memory_space<vmem>>, vector<8x512xf32>
    %313 = arith.truncf %312 : vector<8x512xf32> to vector<8x512xbf16>
    %cst_119 = arith.constant dense<0.000000e+00> : vector<8x256xf32>
    %314 = tpu.matmul %313, %6, %cst_119 {dimension_numbers = #tpu.dot_dimension_numbers<[1], [0], [0], [1], [0, 0, 1, 1], [], []>} : vector<8x512xbf16>, vector<512x256xbf16>, vector<8x256xf32> -> vector<8x256xf32>
    %315 = vector.broadcast %7 : vector<1x256xf32> to vector<8x256xf32>
    %316 = arith.addf %314, %315 : vector<8x256xf32>
    %317 = arith.addf %316, %211 : vector<8x256xf32>
    %cst_120 = arith.constant dense<0.000000e+00> : vector<8xf32>
    %318 = vector.multi_reduction <add>, %317, %cst_120 [1] : vector<8x256xf32> to vector<8xf32>
    %319 = vector.shape_cast %318 : vector<8xf32> to vector<8x1xf32>
    %cst_121 = arith.constant 2.560000e+02 : f32
    %320 = vector.broadcast %cst_121 : f32 to vector<8x1xf32>
    %321 = arith.divf %319, %320 : vector<8x1xf32>
    %322 = vector.broadcast %321 : vector<8x1xf32> to vector<8x256xf32>
    %323 = arith.subf %317, %322 : vector<8x256xf32>
    %324 = arith.mulf %323, %323 : vector<8x256xf32>
    %cst_122 = arith.constant dense<0.000000e+00> : vector<8xf32>
    %325 = vector.multi_reduction <add>, %324, %cst_122 [1] : vector<8x256xf32> to vector<8xf32>
    %326 = vector.shape_cast %325 : vector<8xf32> to vector<8x1xf32>
    %cst_123 = arith.constant 2.560000e+02 : f32
    %327 = vector.broadcast %cst_123 : f32 to vector<8x1xf32>
    %328 = arith.divf %326, %327 : vector<8x1xf32>
    %cst_124 = arith.constant 9.99999996E-13 : f32
    %329 = vector.broadcast %cst_124 : f32 to vector<8x1xf32>
    %330 = arith.addf %328, %329 : vector<8x1xf32>
    %331 = math.rsqrt %330 : vector<8x1xf32>
    %332 = vector.broadcast %331 : vector<8x1xf32> to vector<8x256xf32>
    %333 = arith.mulf %323, %332 : vector<8x256xf32>
    %334 = vector.broadcast %8 : vector<1x256xf32> to vector<8x256xf32>
    %335 = arith.mulf %333, %334 : vector<8x256xf32>
    %336 = vector.broadcast %9 : vector<1x256xf32> to vector<8x256xf32>
    %337 = arith.addf %335, %336 : vector<8x256xf32>
    %338 = arith.truncf %337 : vector<8x256xf32> to vector<8x256xbf16>
    %cst_125 = arith.constant dense<0.000000e+00> : vector<8x256xf32>
    %339 = tpu.matmul %338, %10, %cst_125 {dimension_numbers = #tpu.dot_dimension_numbers<[1], [0], [0], [1], [0, 0, 1, 1], [], []>} : vector<8x256xbf16>, vector<256x256xbf16>, vector<8x256xf32> -> vector<8x256xf32>
    %340 = vector.broadcast %11 : vector<1x256xf32> to vector<8x256xf32>
    %341 = arith.addf %339, %340 : vector<8x256xf32>
    %cst_126 = arith.constant 5.000000e-01 : f32
    %342 = vector.broadcast %cst_126 : f32 to vector<8x256xf32>
    %343 = arith.mulf %342, %341 : vector<8x256xf32>
    %344 = arith.mulf %341, %341 : vector<8x256xf32>
    %345 = arith.mulf %344, %341 : vector<8x256xf32>
    %cst_127 = arith.constant 4.471500e-02 : f32
    %346 = vector.broadcast %cst_127 : f32 to vector<8x256xf32>
    %347 = arith.mulf %346, %345 : vector<8x256xf32>
    %348 = arith.addf %341, %347 : vector<8x256xf32>
    %cst_128 = arith.constant 0.797884583 : f32
    %349 = vector.broadcast %cst_128 : f32 to vector<8x256xf32>
    %350 = arith.mulf %349, %348 : vector<8x256xf32>
    %351 = math.tanh %350 : vector<8x256xf32>
    %cst_129 = arith.constant 1.000000e+00 : f32
    %352 = vector.broadcast %cst_129 : f32 to vector<8x256xf32>
    %353 = arith.addf %352, %351 : vector<8x256xf32>
    %354 = arith.mulf %343, %353 : vector<8x256xf32>
    %355 = arith.truncf %354 : vector<8x256xf32> to vector<8x256xbf16>
    %cst_130 = arith.constant dense<0.000000e+00> : vector<8x256xf32>
    %356 = tpu.matmul %355, %12, %cst_130 {dimension_numbers = #tpu.dot_dimension_numbers<[1], [0], [0], [1], [0, 0, 1, 1], [], []>} : vector<8x256xbf16>, vector<256x256xbf16>, vector<8x256xf32> -> vector<8x256xf32>
    %357 = vector.broadcast %13 : vector<1x256xf32> to vector<8x256xf32>
    %358 = arith.addf %356, %357 : vector<8x256xf32>
    %359 = arith.addf %358, %337 : vector<8x256xf32>
    %cst_131 = arith.constant dense<0.000000e+00> : vector<8xf32>
    %360 = vector.multi_reduction <add>, %359, %cst_131 [1] : vector<8x256xf32> to vector<8xf32>
    %361 = vector.shape_cast %360 : vector<8xf32> to vector<8x1xf32>
    %cst_132 = arith.constant 2.560000e+02 : f32
    %362 = vector.broadcast %cst_132 : f32 to vector<8x1xf32>
    %363 = arith.divf %361, %362 : vector<8x1xf32>
    %364 = vector.broadcast %363 : vector<8x1xf32> to vector<8x256xf32>
    %365 = arith.subf %359, %364 : vector<8x256xf32>
    %366 = arith.mulf %365, %365 : vector<8x256xf32>
    %cst_133 = arith.constant dense<0.000000e+00> : vector<8xf32>
    %367 = vector.multi_reduction <add>, %366, %cst_133 [1] : vector<8x256xf32> to vector<8xf32>
    %368 = vector.shape_cast %367 : vector<8xf32> to vector<8x1xf32>
    %cst_134 = arith.constant 2.560000e+02 : f32
    %369 = vector.broadcast %cst_134 : f32 to vector<8x1xf32>
    %370 = arith.divf %368, %369 : vector<8x1xf32>
    %cst_135 = arith.constant 9.99999996E-13 : f32
    %371 = vector.broadcast %cst_135 : f32 to vector<8x1xf32>
    %372 = arith.addf %370, %371 : vector<8x1xf32>
    %373 = math.rsqrt %372 : vector<8x1xf32>
    %374 = vector.broadcast %373 : vector<8x1xf32> to vector<8x256xf32>
    %375 = arith.mulf %365, %374 : vector<8x256xf32>
    %376 = vector.broadcast %14 : vector<1x256xf32> to vector<8x256xf32>
    %377 = arith.mulf %375, %376 : vector<8x256xf32>
    %378 = vector.broadcast %15 : vector<1x256xf32> to vector<8x256xf32>
    %379 = arith.addf %377, %378 : vector<8x256xf32>
    %c0_136 = arith.constant 0 : index
    %c0_137 = arith.constant 0 : index
    %380 = vector.load %arg20[%c0_136, %c0_137] : memref<1x256xf32, #tpu.memory_space<vmem>>, vector<1x256xf32>
    %381 = vector.broadcast %380 : vector<1x256xf32> to vector<8x256xf32>
    %382 = arith.mulf %379, %381 : vector<8x256xf32>
    %cst_138 = arith.constant dense<0.000000e+00> : vector<8xf32>
    %383 = vector.multi_reduction <add>, %382, %cst_138 [1] : vector<8x256xf32> to vector<8xf32>
    %384 = vector.shape_cast %383 : vector<8xf32> to vector<8x1xf32>
    %c0_139 = arith.constant 0 : index
    %c0_140 = arith.constant 0 : index
    %385 = vector.load %arg21[%c0_139, %c0_140] : memref<1x1xf32, #tpu.memory_space<vmem>>, vector<1x1xf32>
    %386 = vector.broadcast %385 : vector<1x1xf32> to vector<8x1xf32>
    %387 = arith.addf %384, %386 : vector<8x1xf32>
    %388 = arith.addf %387, %3 : vector<8x1xf32>
    %cst_141 = arith.constant dense<0xFF800000> : vector<1xf32>
    %389 = vector.multi_reduction <maximumf>, %388, %cst_141 [0] : vector<8x1xf32> to vector<1xf32>
    %390 = vector.shape_cast %389 : vector<1xf32> to vector<1x1xf32>
    %391 = vector.broadcast %390 : vector<1x1xf32> to vector<8x1xf32>
    %392 = arith.subf %388, %391 : vector<8x1xf32>
    %393 = math.exp %392 : vector<8x1xf32>
    %cst_142 = arith.constant dense<0.000000e+00> : vector<1xf32>
    %394 = vector.multi_reduction <add>, %393, %cst_142 [0] : vector<8x1xf32> to vector<1xf32>
    %395 = vector.shape_cast %394 : vector<1xf32> to vector<1x1xf32>
    %396 = tpu.reciprocal %395 {approx = true} : vector<1x1xf32> -> vector<1x1xf32>
    %397 = vector.broadcast %396 : vector<1x1xf32> to vector<8x1xf32>
    %398 = arith.mulf %393, %397 : vector<8x1xf32>
    %399 = vector.broadcast %398 : vector<8x1xf32> to vector<8x256xf32>
    %400 = arith.mulf %399, %379 : vector<8x256xf32>
    %cst_143 = arith.constant dense<0.000000e+00> : vector<256xf32>
    %401 = vector.multi_reduction <add>, %400, %cst_143 [0] : vector<8x256xf32> to vector<256xf32>
    %402 = vector.shape_cast %401 : vector<256xf32> to vector<1x256xf32>
    %403 = arith.truncf %402 : vector<1x256xf32> to vector<1x256xbf16>
    %c0_144 = arith.constant 0 : index
    %c0_145 = arith.constant 0 : index
    %404 = vector.load %arg22[%c0_144, %c0_145] : memref<256x128xbf16, #tpu.memory_space<vmem>>, vector<256x128xbf16>
    %cst_146 = arith.constant dense<0.000000e+00> : vector<1x128xf32>
    %405 = tpu.matmul %403, %404, %cst_146 {dimension_numbers = #tpu.dot_dimension_numbers<[1], [0], [0], [1], [0, 0, 1, 1], [], []>} : vector<1x256xbf16>, vector<256x128xbf16>, vector<1x128xf32> -> vector<1x128xf32>
    %c0_147 = arith.constant 0 : index
    %c0_148 = arith.constant 0 : index
    %406 = vector.load %arg23[%c0_147, %c0_148] : memref<1x128xf32, #tpu.memory_space<vmem>>, vector<1x128xf32>
    %407 = arith.addf %405, %406 : vector<1x128xf32>
    %408 = tpu.iota {dimensions = array<i32: 1>} : vector<1x128xi32>
    %c100_i32 = arith.constant 100 : i32
    %409 = vector.broadcast %c100_i32 : i32 to vector<1x128xi32>
    %410 = arith.cmpi eq, %408, %409 : vector<1x128xi32>
    %411 = math.exp %407 : vector<1x128xf32>
    %412 = arith.select %410, %411, %407 : vector<1x128xi1>, vector<1x128xf32>
    %c0_149 = arith.constant 0 : index
    %c0_150 = arith.constant 0 : index
    %c0_151 = arith.constant 0 : index
    %413 = vector.load %arg24[%c0_149, %c0_150, %c0_151] : memref<1x1x128xf32, #tpu.memory_space<vmem>>, vector<1x1x128xf32>
    %414 = vector.shape_cast %413 : vector<1x1x128xf32> to vector<1x128xf32>
    %415 = vector.shape_cast %412 : vector<1x128xf32> to vector<1x1x128xf32>
    tpu.vector_store %arg24[%c0_149, %c0_150, %c0_151], %415 {strides = array<i32>} : memref<1x1x128xf32, #tpu.memory_space<vmem>>, vector<1x1x128xf32>,
    return
  }
  func.func @transform_0(%arg0: i32) -> (i32, i32) {
    %c0_i32 = arith.constant 0 : i32
    %c0_i32_0 = arith.constant 0 : i32
    return %arg0, %c0_i32 : i32, i32
  }
  func.func @transform_1(%arg0: i32) -> (i32, i32, i32) {
    %c0_i32 = arith.constant 0 : i32
    %c0_i32_0 = arith.constant 0 : i32
    %c0_i32_1 = arith.constant 0 : i32
    return %arg0, %c0_i32, %c0_i32_0 : i32, i32, i32
  }
  func.func @transform_2(%arg0: i32) -> (i32, i32) {
    %c0_i32 = arith.constant 0 : i32
    %c0_i32_0 = arith.constant 0 : i32
    return %arg0, %c0_i32 : i32, i32
  }
  func.func @transform_3(%arg0: i32) -> (i32, i32) {
    %c0_i32 = arith.constant 0 : i32
    %c0_i32_0 = arith.constant 0 : i32
    %c0_i32_1 = arith.constant 0 : i32
    return %c0_i32, %c0_i32_0 : i32, i32
  }
  func.func @transform_4(%arg0: i32) -> (i32, i32) {
    %c0_i32 = arith.constant 0 : i32
    %c0_i32_0 = arith.constant 0 : i32
    %c0_i32_1 = arith.constant 0 : i32
    return %c0_i32, %c0_i32_0 : i32, i32
  }
  func.func @transform_5(%arg0: i32) -> (i32, i32) {
    %c0_i32 = arith.constant 0 : i32
    %c0_i32_0 = arith.constant 0 : i32
    %c0_i32_1 = arith.constant 0 : i32
    return %c0_i32, %c0_i32_0 : i32, i32
  }
  func.func @transform_6(%arg0: i32) -> (i32, i32) {
    %c0_i32 = arith.constant 0 : i32
    %c0_i32_0 = arith.constant 0 : i32
    %c0_i32_1 = arith.constant 0 : i32
    return %c0_i32, %c0_i32_0 : i32, i32
  }
  func.func @transform_7(%arg0: i32) -> (i32, i32) {
    %c0_i32 = arith.constant 0 : i32
    %c0_i32_0 = arith.constant 0 : i32
    %c0_i32_1 = arith.constant 0 : i32
    return %c0_i32, %c0_i32_0 : i32, i32
  }
  func.func @transform_8(%arg0: i32) -> (i32, i32) {
    %c0_i32 = arith.constant 0 : i32
    %c0_i32_0 = arith.constant 0 : i32
    %c0_i32_1 = arith.constant 0 : i32
    return %c0_i32, %c0_i32_0 : i32, i32
  }
  func.func @transform_9(%arg0: i32) -> (i32, i32) {
    %c0_i32 = arith.constant 0 : i32
    %c0_i32_0 = arith.constant 0 : i32
    %c0_i32_1 = arith.constant 0 : i32
    return %c0_i32, %c0_i32_0 : i32, i32
  }
  func.func @transform_10(%arg0: i32) -> (i32, i32) {
    %c0_i32 = arith.constant 0 : i32
    %c0_i32_0 = arith.constant 0 : i32
    %c0_i32_1 = arith.constant 0 : i32
    return %c0_i32, %c0_i32_0 : i32, i32
  }
  func.func @transform_11(%arg0: i32) -> (i32, i32) {
    %c0_i32 = arith.constant 0 : i32
    %c0_i32_0 = arith.constant 0 : i32
    %c0_i32_1 = arith.constant 0 : i32
    return %c0_i32, %c0_i32_0 : i32, i32
  }
  func.func @transform_12(%arg0: i32) -> (i32, i32) {
    %c0_i32 = arith.constant 0 : i32
    %c0_i32_0 = arith.constant 0 : i32
    %c0_i32_1 = arith.constant 0 : i32
    return %c0_i32, %c0_i32_0 : i32, i32
  }
  func.func @transform_13(%arg0: i32) -> (i32, i32) {
    %c0_i32 = arith.constant 0 : i32
    %c0_i32_0 = arith.constant 0 : i32
    %c0_i32_1 = arith.constant 0 : i32
    return %c0_i32, %c0_i32_0 : i32, i32
  }
  func.func @transform_14(%arg0: i32) -> (i32, i32) {
    %c0_i32 = arith.constant 0 : i32
    %c0_i32_0 = arith.constant 0 : i32
    %c0_i32_1 = arith.constant 0 : i32
    return %c0_i32, %c0_i32_0 : i32, i32
  }
  func.func @transform_15(%arg0: i32) -> (i32, i32) {
    %c0_i32 = arith.constant 0 : i32
    %c0_i32_0 = arith.constant 0 : i32
    %c0_i32_1 = arith.constant 0 : i32
    return %c0_i32, %c0_i32_0 : i32, i32
  }
  func.func @transform_16(%arg0: i32) -> (i32, i32) {
    %c0_i32 = arith.constant 0 : i32
    %c0_i32_0 = arith.constant 0 : i32
    %c0_i32_1 = arith.constant 0 : i32
    return %c0_i32, %c0_i32_0 : i32, i32
  }
  func.func @transform_17(%arg0: i32) -> (i32, i32) {
    %c0_i32 = arith.constant 0 : i32
    %c0_i32_0 = arith.constant 0 : i32
    %c0_i32_1 = arith.constant 0 : i32
    return %c0_i32, %c0_i32_0 : i32, i32
  }
  func.func @transform_18(%arg0: i32) -> (i32, i32) {
    %c0_i32 = arith.constant 0 : i32
    %c0_i32_0 = arith.constant 0 : i32
    %c0_i32_1 = arith.constant 0 : i32
    return %c0_i32, %c0_i32_0 : i32, i32
  }
  func.func @transform_19(%arg0: i32) -> (i32, i32) {
    %c0_i32 = arith.constant 0 : i32
    %c0_i32_0 = arith.constant 0 : i32
    %c0_i32_1 = arith.constant 0 : i32
    return %c0_i32, %c0_i32_0 : i32, i32
  }
  func.func @transform_20(%arg0: i32) -> (i32, i32) {
    %c0_i32 = arith.constant 0 : i32
    %c0_i32_0 = arith.constant 0 : i32
    %c0_i32_1 = arith.constant 0 : i32
    return %c0_i32, %c0_i32_0 : i32, i32
  }
  func.func @transform_21(%arg0: i32) -> (i32, i32) {
    %c0_i32 = arith.constant 0 : i32
    %c0_i32_0 = arith.constant 0 : i32
    %c0_i32_1 = arith.constant 0 : i32
    return %c0_i32, %c0_i32_0 : i32, i32
  }
  func.func @transform_22(%arg0: i32) -> (i32, i32) {
    %c0_i32 = arith.constant 0 : i32
    %c0_i32_0 = arith.constant 0 : i32
    %c0_i32_1 = arith.constant 0 : i32
    return %c0_i32, %c0_i32_0 : i32, i32
  }
  func.func @transform_23(%arg0: i32) -> (i32, i32, i32) {
    %c0_i32 = arith.constant 0 : i32
    %c0_i32_0 = arith.constant 0 : i32
    %c0_i32_1 = arith.constant 0 : i32
    return %arg0, %c0_i32, %c0_i32_0 : i32, i32, i32
  }
}

</mosaic_0001>

<bundles_post_ra>
// kernel: lmc_decoder_forward.1
= control target key start
LH: loop header
LB: loop body
LE: loop exit
PB: predicated region body
PF: predicated region fallthrough
CT: control target
= control target key end

     0   :  { %s9019_s0 = inlined_call_operand.vmem [shape: f32[16,128], index: 0, kind: input, shape index: {}]   ;;  %s9020_s1 = inlined_call_operand.vmem [shape: f32[2,1,8], index: 1, kind: input, shape index: {}]   ;;  %s9021_s2 = inlined_call_operand.vmem [shape: f32[16,1], index: 2, kind: input, shape index: {}]   ;;  %s9022_s3 = inlined_call_operand.vmem [shape: f32[1,128], index: 3, kind: input, shape index: {}]   ;;  %s9023_s4 = inlined_call_operand.vmem [shape: f32[1,128], index: 4, kind: input, shape index: {}]   ;;  %s9024_s5 = inlined_call_operand.vmem [shape: bf16[128,256], index: 5, kind: input, shape index: {}]   ;;  %s9025_s6 = inlined_call_operand.vmem [shape: f32[1,256], index: 6, kind: input, shape index: {}]   ;;  %s9026_s7 = inlined_call_operand.hbm [shape: bf16[256,1536], index: 7, kind: input, shape index: {}]   ;;  %s9027_s8 = inlined_call_operand.vmem [shape: f32[1,1536], index: 8, kind: input, shape index: {}]   ;;  %s9028_s9 = inlined_call_operand.hbm [shape: bf16[512,256], index: 9, kind: input, shape index: {}]   ;;  %s9029_s10 = inlined_call_operand.vmem [shape: f32[1,256], index: 10, kind: input, shape index: {}]   ;;  %s9030_s11 = inlined_call_operand.vmem [shape: f32[1,256], index: 11, kind: input, shape index: {}]   ;;  %s9031_s12 = inlined_call_operand.vmem [shape: f32[1,256], index: 12, kind: input, shape index: {}]   ;;  %s9032_s13 = inlined_call_operand.hbm [shape: bf16[256,256], index: 13, kind: input, shape index: {}]   ;;  %s9033_s14 = inlined_call_operand.vmem [shape: f32[1,256], index: 14, kind: input, shape index: {}]   ;;  %s9034_s15 = inlined_call_operand.hbm [shape: bf16[256,256], index: 15, kind: input, shape index: {}]   ;;  %s9035_s16 = inlined_call_operand.vmem [shape: f32[1,256], index: 16, kind: input, shape index: {}]   ;;  %s9036_s17 = inlined_call_operand.vmem [shape: f32[1,256], index: 17, kind: input, shape index: {}]   ;;  %s9037_s18 = inlined_call_operand.vmem [shape: f32[1,256], index: 18, kind: input, shape index: {}]   ;;  %s9038_s19 = inlined_call_operand.vmem [shape: f32[1,256], index: 19, kind: input, shape index: {}]   ;;  %s9039_s20 = inlined_call_operand.<no memory space> [shape: f32[1,1], index: 20, kind: input, shape index: {}]   ;;  %s9040_s21 = inlined_call_operand.hbm [shape: bf16[256,128], index: 21, kind: input, shape index: {}]   ;;  %s9041_s22 = inlined_call_operand.vmem [shape: f32[1,128], index: 22, kind: input, shape index: {}]   ;;  %s9042_s23 = inlined_call_operand.vmem [shape: f32[2,1,128], index: 23, kind: output, shape index: {}]  }
   0x1   :  { %9340 = sst [smem:[#allocation288_spill]] %s9019_s0  ;;  %v28_v0 = vstv %s9039_s20 }
   0x2   :  { %9341 = sst [smem:[#allocation289_spill]] %s9020_s1  ;;  %29 = vst [vmem:[#allocation3] sm:$0x1] %v28_v0 }
   0x3   :  { %9342 = sst [smem:[#allocation290_spill]] %s9021_s2 }
   0x4   :  { %9343 = sst [smem:[#allocation291_spill]] %s9022_s3 }
   0x5   :  { %9344 = sst [smem:[#allocation292_spill]] %s9023_s4 }
   0x6   :  { %9345 = sst [smem:[#allocation293_spill]] %s9024_s5 }
   0x7   :  { %9346 = sst [smem:[#allocation294_spill]] %s9025_s6 }
   0x8   :  { %9347 = sst [smem:[#allocation295_spill]] %s9026_s7 }
   0x9   :  { %9348 = sst [smem:[#allocation296_spill]] %s9028_s9 }
   0xa   :  { %9349 = sst [smem:[#allocation297_spill]] %s9034_s15 }
   0xb   :  { %9350 = sst [smem:[#allocation298_spill]] %s9041_s22 }
   0xc   :  { %9351 = sst [smem:[#allocation299_spill]] %s9042_s23 }
   0xd   :  { %30 = vsyncpa [#allocation5], 0 }
   0xe   :  { %31 = vsyncpa [#allocation7], 0 }
   0xf   :  { %32 = vsyncpa [#allocation10], 0  ;;  %s7186_s24 = smov 0  }
  0x10 LB: > { %9352 = sst [smem:[#allocation15_spill]] %s7047_s24  ;;  %s7195_s20 = sadd.s32 4294967295, %s7047_s24   ;;  %s7047_s24 = sphi %s7186_s24, %s38_s24  }
  0x11   : > { %s9353_s9 = sld [smem:[#allocation296_spill]]  ;;  %p4960_p0 = scmp.ge.s32.totalorder %s7047_s24, 1 }
  0x12   : > { %p567_p1 = scmp.lt.s32.totalorder %s7047_s24, 3  ;;  %p6781_p2 = scmp.eq.s32.totalorder %s7195_s20, 0 }
  0x13   : > { %s7049_s2 = smov [#allocation6]   ;;  %s9355_s15 = sld [smem:[#allocation297_spill]] }
  0x14   : > { %p7200_p3 = pnand %p4960_p0, %p567_p1  ;;  %s609_s6 = sshll.u32 %s7049_s2, 4  ;;  %s610_s6 = int_to_ptr.vmem [resolvable:$true] %s609_s6 }
  0x15   : > { %s7050_s3 = smov [#allocation9]   ;;  %s9357_s25 = sld [smem:[#allocation295_spill]] }
  0x16   : > { %p6765_p4 = pneg %p7200_p3  ;;  %s649_s0 = sshll.u32 %s7050_s3, 4  ;;  %s650_s0 = int_to_ptr.vmem [resolvable:$true] %s649_s0 }
  0x17   : > { %s607_s1 = sshll.u32 %s9353_s9, 4  ;;  %s7051_s2 = smov 128   ;;  %s608_s1 = int_to_ptr.hbm [resolvable:$true] %s607_s1 }
  0x18   : > { %p7211_p5 = pnand %p6781_p2, %p6765_p4  ;;  %s7052_s9 = smov 8  }
  0x19   : > { %s647_s28 = sshll.u32 %s9355_s15, 4  ;;  %s7053_s27 = smov [#allocation4]   ;;  %s648_s28 = int_to_ptr.hbm [resolvable:$true] %s647_s28 }
  0x1a   : > { %6771 = dma.hbm_to_vmem [thread:$0]  (!%p7211_p5), %s608_s1, 8192, %s610_s6, [#allocation7], %s7051_s2, %s7051_s2, %s7052_s9  }
  0x1b   : > { %s590_s5 = sshll.u32 %s9357_s25, 4  ;;  %s592_s7 = sshll.u32 %s7053_s27, 4  ;;  %s591_s5 = int_to_ptr.hbm [resolvable:$true] %s590_s5  ;;  %s593_s7 = int_to_ptr.vmem [resolvable:$true] %s592_s7 }
  0x1c   : > { %6777 = dma.hbm_to_vmem [thread:$0]  (!%p7211_p5), %s648_s28, 4096, %s650_s0, [#allocation10], %s7051_s2, %s7051_s2, %s7052_s9  }
  0x1d   : > { %s7054_s15 = smov 768   ;;  %s7055_s24 = smov 48  }
  0x1e   : > { %6768 = dma.hbm_to_vmem [thread:$0]  (!%p7211_p5), %s591_s5, 24576, %s593_s7, [#allocation5], %s7054_s15, %s7054_s15, %s7055_s24  }
  0x1f   : > { %s630_s30 = sshll.u32 %s9032_s13, 4  ;;  %s7056_s25 = smov [#allocation8]   ;;  %s631_s30 = int_to_ptr.hbm [resolvable:$true] %s630_s30 }
  0x20   : > { %s632_s23 = sshll.u32 %s7056_s25, 4  ;;  %s676_s28 = sshll.u32 %s9040_s21, 4  ;;  %s633_s23 = int_to_ptr.vmem [resolvable:$true] %s632_s23  ;;  %s677_s28 = int_to_ptr.hbm [resolvable:$true] %s676_s28 }
  0x21   : > { %6774 = dma.hbm_to_vmem [thread:$0]  (!%p7211_p5), %s631_s30, 4096, %s633_s23, [#allocation7], %s7051_s2, %s7051_s2, %s7052_s9  }
  0x22   : > { %s7057_s0 = smov [#allocation11]   ;;  %s7058_s22 = smov 64  }
  0x23   : > { %s678_s27 = sshll.u32 %s7057_s0, 4  ;;  %s7059_s15 = smov 4   ;;  %s679_s27 = int_to_ptr.vmem [resolvable:$true] %s678_s27 }
  0x24   : > { %6780 = dma.hbm_to_vmem [thread:$0]  (!%p7211_p5), %s677_s28, 2048, %s679_s27, [#allocation10], %s7058_s22, %s7058_s22, %s7059_s15  }
  0x25   : > { %717 = sbr.rel (%p7200_p3) target bundleno = 4471 (0x1177), region = 112 }
  0x2a   : > { %7034 = dma.done.wait (%p6781_p2), [#allocation5], 24576  }
  0x2b   : > { %7036 = vsyncadd (%p6781_p2), [#allocation5], 4294942720 }
  0x2c   : > { %7038 = dma.done.wait (%p6781_p2), [#allocation7], 12288  }
  0x2d   : > { %7040 = vsyncadd (%p6781_p2), [#allocation7], 4294955008 }
  0x2e   : > { %7042 = dma.done.wait (%p6781_p2), [#allocation10], 6144  }
  0x2f   : > { %7044 = vsyncadd (%p6781_p2), [#allocation10], 4294961152  ;;  %p806_p6 = scmp.lt.s32.totalorder %s7195_s20, 1  ;;  %s9358_s24 = sld [smem:[#allocation288_spill]]  ;;  %v7060_v2 = vmov 128.0   ;;  %vm2656_vm4 = vcmask 1043456  }
  0x30   : > { %s9359_s2 = sld [smem:[#allocation289_spill]]  ;;  %6818 = vrcp.f32 %v7060_v2  ;;  %v5377_v61 = vld [vmem:[#allocation4 + $0x2a0] sm:$0xf]  ;;  %v6483_v62 = vld [vmem:[#allocation4 + $0x2cc] sm:$0xf0]  ;;  %vm2640_vm5 = vcmask 64512  }
  0x31   : > { %s9931_s20 = smov (!%p806_p6, %s7195_s20), 1  ;;  %s9360_s30 = sld [smem:[#allocation293_spill]]  ;;  %v5761_v63 = vld [vmem:[#allocation4 + $0x5a0] sm:$0xf]  ;;  %v6579_v2 = vld [vmem:[#allocation4 + $0x5cc] sm:$0xf0] }
  0x32   : > { %s4973_s9 = sshll.u32 %s9931_s20, 3  ;;  %s9361_s25 = sld [smem:[#allocation291_spill]] }
  0x33   : > { %s9362_s28 = sld [smem:[#allocation292_spill]] }
  0x34   : > { %s9394_s15 = sld [smem:[#allocation294_spill]] }
  0x35   : > { %s809_s26 = scalar_lea.vmem %s9358_s24, %s4973_s9  ;;  %s9926_s5 = sld [smem:[#allocation290_spill]] }
  0x36   : > { %s7262_s7 = scalar_lea.vmem %s9359_s2, %s9931_s20  ;;  %v821_v1 = vld [vmem:[%s809_s26] sm:$0xff]  ;;  %v6819_v9 = vpop.eup %6818  ;;  %s9927_s4 = sld [smem:[#allocation298_spill]] }
  0x37   : > { %1155 = vadd.xlane.f32.xlu0 %v821_v1  ;;  %v5033_v3 = vld [vmem:[%s9360_s30 + $0x70] sm:$0xf]  ;;  %v6728_v4 = vld [vmem:[%s9360_s30 + $0x74] sm:$0xf0]  ;;  %v6727_v5 = vld [vmem:[%s9360_s30 + $0x74] sm:$0xf]  ;;  %vm1162_vm0 = vweird.f32 %v6819_v9 }
  0x38   : > { %v5034_v6 = vor.u32 %v6728_v4, %v5033_v3  ;;  %v5035_v7 = vld [vmem:[%s9360_s30 + $0x78] sm:$0xf0]  ;;  %v1158_v10 = vmul.f32 128.0, %v6819_v9  ;;  %v5025_v19 = vld [vmem:[%s9360_s30 + $0x60] sm:$0xf]  ;;  %s9928_s6 = sld [smem:[#allocation299_spill]] }
  0x39   : > { %v5038_v8 = vor.u32 %v6727_v5, %v5035_v7  ;;  %v6726_v20 = vld [vmem:[%s9360_s30 + $0x64] sm:$0xf0]  ;;  %v6725_v21 = vld [vmem:[%s9360_s30 + $0x64] sm:$0xf]  ;;  %v5027_v23 = vld [vmem:[%s9360_s30 + $0x68] sm:$0xf0] }
  0x3a   : > { %1293 = vmatpush.bf16.msra.mxu0 %v5034_v6  ;;  %v1159_v11 = vsub.f32 1.0, %v1158_v10  ;;  %v5026_v22 = vor.u32 %v6726_v20, %v5025_v19  ;;  %v5030_v24 = vor.u32 %v6725_v21, %v5027_v23  ;;  %v5017_v25 = vld [vmem:[%s9360_s30 + $0x50] sm:$0xf]  ;;  %v6724_v26 = vld [vmem:[%s9360_s30 + $0x54] sm:$0xf0]  ;;  %v7370_v6 = vor.u32 %v6579_v2, %v5761_v63 }
  0x3b   : > { %1306 = vmatpush.bf16.msra.mxu1 %v5038_v8  ;;  %v6723_v27 = vld [vmem:[%s9360_s30 + $0x54] sm:$0xf]  ;;  %v5018_v28 = vor.u32 %v6724_v26, %v5017_v25  ;;  %v5019_v29 = vld [vmem:[%s9360_s30 + $0x58] sm:$0xf0]  ;;  %v5009_v31 = vld [vmem:[%s9360_s30 + $0x40] sm:$0xf]  ;;  %s816_s2 = scalar_lea.vmem %s9926_s5, %s4973_s9 }
  0x3c   : > { %v1160_v12 = vmul.f32 %v6819_v9, %v1159_v11  ;;  %v5022_v30 = vor.u32 %v6723_v27, %v5019_v29  ;;  %v6722_v32 = vld [vmem:[%s9360_s30 + $0x44] sm:$0xf0]  ;;  %v6721_v33 = vld [vmem:[%s9360_s30 + $0x44] sm:$0xf]  ;;  %v5011_v35 = vld [vmem:[%s9360_s30 + $0x48] sm:$0xf0]  ;;  %2320 = vmatpush.bf16.msra.mxu3 %v7370_v6 }
  0x3d   : > { %v5010_v34 = vor.u32 %v6722_v32, %v5009_v31  ;;  %v5014_v36 = vor.u32 %v6721_v33, %v5011_v35  ;;  %v5001_v37 = vld [vmem:[%s9360_s30 + $0x30] sm:$0xf]  ;;  %v6720_v38 = vld [vmem:[%s9360_s30 + $0x34] sm:$0xf0]  ;;  %v6719_v39 = vld [vmem:[%s9360_s30 + $0x34] sm:$0xf] }
  0x3e   : > { %v1161_v13 = vadd.f32 %v6819_v9, %v1160_v12  ;;  %1294 = vmatpush.bf16.msra.mxu0 %v5026_v22  ;;  %v5002_v40 = vor.u32 %v6720_v38, %v5001_v37  ;;  %v5003_v41 = vld [vmem:[%s9360_s30 + $0x38] sm:$0xf0]  ;;  %v4993_v43 = vld [vmem:[%s9360_s30 + $0x20] sm:$0xf]  ;;  %v6718_v44 = vld [vmem:[%s9360_s30 + $0x24] sm:$0xf0] }
  0x3f   : > { %1307 = vmatpush.bf16.msra.mxu1 %v5030_v24  ;;  %v5006_v42 = vor.u32 %v6719_v39, %v5003_v41  ;;  %v6717_v45 = vld [vmem:[%s9360_s30 + $0x24] sm:$0xf]  ;;  %v4994_v46 = vor.u32 %v6718_v44, %v4993_v43  ;;  %v4995_v47 = vld [vmem:[%s9360_s30 + $0x28] sm:$0xf0]  ;;  %v4985_v49 = vld [vmem:[%s9360_s30 + $0x10] sm:$0xf] }
  0x40   : > { %v7276_v14 = vsel %vm1162_vm0, %v6819_v9, %v1161_v13  ;;  %v4998_v48 = vor.u32 %v6717_v45, %v4995_v47  ;;  %v6716_v50 = vld [vmem:[%s9360_s30 + $0x14] sm:$0xf0]  ;;  %v6715_v51 = vld [vmem:[%s9360_s30 + $0x14] sm:$0xf]  ;;  %v4987_v53 = vld [vmem:[%s9360_s30 + $0x18] sm:$0xf0] }
  0x41   : > { %v4986_v52 = vor.u32 %v6716_v50, %v4985_v49  ;;  %v4977_v54 = vld [vmem:[%s9360_s30] sm:$0xf]  ;;  %v6714_v55 = vld [vmem:[%s9360_s30 + $0x4] sm:$0xf0]  ;;  %v4990_v56 = vor.u32 %v6715_v51, %v4987_v53  ;;  %v6713_v57 = vld [vmem:[%s9360_s30 + $0x4] sm:$0xf] }
  0x42   : > { %1295 = vmatpush.bf16.msra.mxu0 %v5018_v28  ;;  %v4979_v58 = vld [vmem:[%s9360_s30 + $0x8] sm:$0xf0]  ;;  %v4978_v59 = vor.u32 %v6714_v55, %v4977_v54  ;;  %v6477_v3 = vld [vmem:[#allocation4 + $0x2a4] sm:$0xf]  ;;  %v5379_v4 = vld [vmem:[#allocation4 + $0x2d0] sm:$0xf0] }
  0x43   : > { %1308 = vmatpush.bf16.msra.mxu1 %v5022_v30  ;;  %v4982_v60 = vor.u32 %v6713_v57, %v4979_v58  ;;  %v7372_v7 = vor.u32 %v6477_v3, %v5379_v4  ;;  %v6573_v8 = vld [vmem:[#allocation4 + $0x5a4] sm:$0xf]  ;;  %v5763_v9 = vld [vmem:[#allocation4 + $0x5d0] sm:$0xf0]  ;;  %v5329_v10 = vld [vmem:[#allocation4 + $0x240] sm:$0xf] }
  0x44   : > { %v7375_v11 = vor.u32 %v6573_v8, %v5763_v9  ;;  %v6471_v12 = vld [vmem:[#allocation4 + $0x26c] sm:$0xf0]  ;;  %v5713_v13 = vld [vmem:[#allocation4 + $0x540] sm:$0xf]  ;;  %v6465_v19 = vld [vmem:[#allocation4 + $0x244] sm:$0xf] }
  0x45   : > { %v5331_v20 = vld [vmem:[#allocation4 + $0x270] sm:$0xf0]  ;;  %v6561_v22 = vld [vmem:[#allocation4 + $0x544] sm:$0xf]  ;;  %v5281_v24 = vld [vmem:[#allocation4 + $0x1e0] sm:$0xf] }
  0x46   : > { %1296 = vmatpush.bf16.msra.mxu0 %v5010_v34  ;;  %v7386_v21 = vor.u32 %v6465_v19, %v5331_v20  ;;  %v5715_v23 = vld [vmem:[#allocation4 + $0x570] sm:$0xf0]  ;;  %v6459_v26 = vld [vmem:[#allocation4 + $0x20c] sm:$0xf0]  ;;  %v5665_v27 = vld [vmem:[#allocation4 + $0x4e0] sm:$0xf] }
  0x47   : > { %1309 = vmatpush.bf16.msra.mxu1 %v5014_v36  ;;  %v7389_v25 = vor.u32 %v6561_v22, %v5715_v23  ;;  %v6555_v28 = vld [vmem:[#allocation4 + $0x50c] sm:$0xf0]  ;;  %v7392_v29 = vor.u32 %v6459_v26, %v5281_v24  ;;  %v6453_v30 = vld [vmem:[#allocation4 + $0x1e4] sm:$0xf]  ;;  %v5283_v31 = vld [vmem:[#allocation4 + $0x210] sm:$0xf0] }
  0x48   : > { %v6549_v32 = vld [vmem:[#allocation4 + $0x4e4] sm:$0xf]  ;;  %v7396_v33 = vor.u32 %v6555_v28, %v5665_v27  ;;  %v7398_v34 = vor.u32 %v6453_v30, %v5283_v31  ;;  %v5667_v35 = vld [vmem:[#allocation4 + $0x510] sm:$0xf0]  ;;  %v5233_v36 = vld [vmem:[#allocation4 + $0x180] sm:$0xf] }
  0x49   : > { %v6447_v37 = vld [vmem:[#allocation4 + $0x1ac] sm:$0xf0]  ;;  %v7401_v38 = vor.u32 %v6549_v32, %v5667_v35  ;;  %v5617_v39 = vld [vmem:[#allocation4 + $0x480] sm:$0xf]  ;;  %v6441_v41 = vld [vmem:[#allocation4 + $0x184] sm:$0xf] }
  0x4a   : > { %1297 = vmatpush.bf16.msra.mxu0 %v5002_v40  ;;  %v6543_v40 = vld [vmem:[#allocation4 + $0x4ac] sm:$0xf0]  ;;  %v6537_v43 = vld [vmem:[#allocation4 + $0x484] sm:$0xf]  ;;  %v5619_v44 = vld [vmem:[#allocation4 + $0x4b0] sm:$0xf0]  ;;  %v7404_v45 = vor.u32 %v6447_v37, %v5233_v36 }
  0x4b   : > { %1310 = vmatpush.bf16.msra.mxu1 %v5006_v42  ;;  %v5235_v42 = vld [vmem:[#allocation4 + $0x1b0] sm:$0xf0]  ;;  %v7408_v47 = vor.u32 %v6543_v40, %v5617_v39  ;;  %v5185_v49 = vld [vmem:[#allocation4 + $0x120] sm:$0xf]  ;;  %v6435_v50 = vld [vmem:[#allocation4 + $0x14c] sm:$0xf0]  ;;  %v7414_v53 = vor.u32 %v6537_v43, %v5619_v44 }
  0x4c   : > { %v5569_v51 = vld [vmem:[#allocation4 + $0x420] sm:$0xf]  ;;  %v6531_v54 = vld [vmem:[#allocation4 + $0x44c] sm:$0xf0]  ;;  %v6429_v55 = vld [vmem:[#allocation4 + $0x124] sm:$0xf] }
  0x4d   : > { %v6525_v57 = vld [vmem:[#allocation4 + $0x424] sm:$0xf]  ;;  %v5571_v58 = vld [vmem:[#allocation4 + $0x450] sm:$0xf0]  ;;  %v5521_v2 = vld [vmem:[#allocation4 + $0x3c0] sm:$0xf] }
  0x4e   : > { %1298 = vmatpush.bf16.msra.mxu0 %v4994_v46  ;;  %v6519_v3 = vld [vmem:[#allocation4 + $0x3ec] sm:$0xf0]  ;;  %v6417_v8 = vld [vmem:[#allocation4 + $0xc4] sm:$0xf]  ;;  %v5139_v9 = vld [vmem:[#allocation4 + $0xf0] sm:$0xf0] }
  0x4f   : > { %1311 = vmatpush.bf16.msra.mxu1 %v4998_v48  ;;  %v7410_v48 = vor.u32 %v6441_v41, %v5235_v42  ;;  %v6815_v19 = vld [vmem:[%s9361_s25] ss:$0 sm:$0xff]  ;;  %v7436_v20 = vor.u32 %v6519_v3, %v5521_v2  ;;  %v7438_v22 = vor.u32 %v6417_v8, %v5139_v9  ;;  %v5089_v23 = vld [vmem:[#allocation4 + $0x60] sm:$0xf]  ;;  %v6411_v24 = vld [vmem:[#allocation4 + $0x8c] sm:$0xf0] }
  0x50   : > { %v5473_v26 = vld [vmem:[#allocation4 + $0x360] sm:$0xf]  ;;  %v6507_v30 = vld [vmem:[#allocation4 + $0x38c] sm:$0xf0]  ;;  %v6405_v31 = vld [vmem:[#allocation4 + $0x64] sm:$0xf]  ;;  %v7446_v39 = vor.u32 %v6411_v24, %v5089_v23 }
  0x51   : > { %v5091_v32 = vld [vmem:[#allocation4 + $0x90] sm:$0xf0]  ;;  %v6501_v35 = vld [vmem:[#allocation4 + $0x364] sm:$0xf]  ;;  %v7454_v41 = vor.u32 %v6507_v30, %v5473_v26  ;;  %v5041_v43 = vld [vmem:[#allocation4] sm:$0xf] }
  0x52   : > { %1299 = vmatpush.bf16.msra.mxu0 %v4986_v52  ;;  %v5475_v36 = vld [vmem:[#allocation4 + $0x390] sm:$0xf0]  ;;  %v7456_v42 = vor.u32 %v6405_v31, %v5091_v32  ;;  %v6399_v44 = vld [vmem:[#allocation4 + $0x2c] sm:$0xf0]  ;;  %v6478_v2 = vld [vmem:[#allocation4 + $0x2ac] sm:$0xf] }
  0x53   : > { %1312 = vmatpush.bf16.msra.mxu1 %v4990_v56  ;;  %v5187_v56 = vld [vmem:[#allocation4 + $0x150] sm:$0xf0]  ;;  %v5387_v3 = vld [vmem:[#allocation4 + $0x2d8] sm:$0xf0]  ;;  %v6574_v9 = vld [vmem:[#allocation4 + $0x5ac] sm:$0xf] }
  0x54   : > { %v7423_v63 = vor.u32 %v6429_v55, %v5187_v56  ;;  %v5427_v55 = vld [vmem:[#allocation4 + $0x330] sm:$0xf0]  ;;  %v7462_v56 = vor.u32 %v6399_v44, %v5041_v43  ;;  %v7478_v24 = vor.u32 %v6478_v2, %v5387_v3  ;;  %v5337_v26 = vld [vmem:[#allocation4 + $0x248] sm:$0xf]  ;;  %v6568_v32 = vld [vmem:[#allocation4 + $0x574] sm:$0xf0] }
  0x55   : > { %v5721_v30 = vld [vmem:[#allocation4 + $0x548] sm:$0xf]  ;;  %v6448_v3 = vld [vmem:[#allocation4 + $0x1b4] sm:$0xf0] }
  0x56   : > { %1300 = vmatpush.bf16.msra.mxu0 %v4978_v59  ;;  %9364 = vst [vmem:[#allocation17_spill] sm:$0xff] %v7478_v24  ;;  %v7490_v43 = vor.u32 %v6568_v32, %v5721_v30  ;;  %v5241_v2 = vld [vmem:[#allocation4 + $0x188] sm:$0xf]  ;;  %v6538_v30 = vld [vmem:[#allocation4 + $0x48c] sm:$0xf] }
  0x57   : > { %1313 = vmatpush.bf16.msra.mxu1 %v4982_v60  ;;  %v7417_v60 = vor.u32 %v6435_v50, %v5185_v49  ;;  %v5425_v49 = vld [vmem:[#allocation4 + $0x300] sm:$0xf]  ;;  %v6393_v50 = vld [vmem:[#allocation4 + $0x4] sm:$0xf]  ;;  %v5627_v32 = vld [vmem:[#allocation4 + $0x4b8] sm:$0xf0] }
  0x58   : > { %9367 = vst [vmem:[#allocation20_spill] sm:$0xff] %v7490_v43 }
  0x5a   : > { %2333 = vmatpush.bf16.msrb.mxu0 %v7372_v7 }
  0x5b   : > { %2346 = vmatpush.bf16.msrb.mxu1 %v7375_v11 }
  0x5e   : > { %2334 = vmatpush.bf16.msrb.mxu0 %v7386_v21 }
  0x5f   : > { %2347 = vmatpush.bf16.msrb.mxu1 %v7389_v25 }
  0x62   : > { %2335 = vmatpush.bf16.msrb.mxu0 %v7398_v34 }
  0x63   : > { %2348 = vmatpush.bf16.msrb.mxu1 %v7401_v38 }
  0x66   : > { %2336 = vmatpush.bf16.msrb.mxu0 %v7410_v48 }
  0x67   : > { %2349 = vmatpush.bf16.msrb.mxu1 %v7414_v53 }
  0x6a   : > { %2337 = vmatpush.bf16.msrb.mxu0 %v7423_v63 }
  0x6e   : > { %2338 = vmatpush.bf16.msrb.mxu0 %v7438_v22 }
  0x72   : > { %2339 = vmatpush.bf16.msrb.mxu0 %v7456_v42 }
  0xaa   : > { %v1156_v15 = vpop.xlane.xlu0 %1155 }
  0xab   : > { %v1164_v16 = vmul.f32 %v7276_v14, %v1156_v15  ;;  %v6567_v15 = vld [vmem:[#allocation4 + $0x56c] sm:$0xf0] }
  0xad   : > { %v7279_v17 = vsub.f32 %v821_v1, %v1164_v16  ;;  %v7367_v1 = vor.u32 %v6483_v62, %v5377_v61  ;;  %v5137_v61 = vld [vmem:[#allocation4 + $0xc0] sm:$0xf]  ;;  %v7421_v62 = vor.u32 %v6531_v54, %v5569_v51  ;;  %v6489_v54 = vld [vmem:[#allocation4 + $0x304] sm:$0xf] }
  0xaf   : > { %v1166_v18 = vmul.f32 %v7279_v17, %v7279_v17  ;;  %2307 = vmatpush.bf16.msra.mxu2 %v7367_v1 }
  0xb1   : > { %1167 = vadd.xlane.f32.xlu0 %v1166_v18  ;;  %v7383_v18 = vor.u32 %v6567_v15, %v5713_v13 }
  0xb3   : > { %2321 = vmatpush.bf16.msra.mxu3 %v7383_v18 }
  0xb7   : > { %2322 = vmatpush.bf16.msra.mxu3 %v7396_v33 }
  0xbb   : > { %2323 = vmatpush.bf16.msra.mxu3 %v7408_v47 }
  0xbf   : > { %2324 = vmatpush.bf16.msra.mxu3 %v7421_v62 }
  0xc3   : > { %2325 = vmatpush.bf16.msra.mxu3 %v7436_v20 }
  0xc7   : > { %2326 = vmatpush.bf16.msra.mxu3 %v7454_v41 }
 0x124   : > { %v1168_v0 = vpop.xlane.xlu0 %1167 }
 0x125   : > { %v1169_v5 = vmul.f32 %v1168_v0, %v7276_v14  ;;  %v7381_v14 = vor.u32 %v6471_v12, %v5329_v10  ;;  %v6423_v0 = vld [vmem:[#allocation4 + $0xec] sm:$0xf0]  ;;  %v6513_v10 = vld [vmem:[#allocation4 + $0x3c4] sm:$0xf]  ;;  %v5523_v12 = vld [vmem:[#allocation4 + $0x3f0] sm:$0xf0] }
 0x126   : > { %v7429_v15 = vor.u32 %v6423_v0, %v5137_v61  ;;  %v7442_v28 = vor.u32 %v6513_v10, %v5523_v12  ;;  %v6580_v0 = vld [vmem:[#allocation4 + $0x5d4] sm:$0xf0]  ;;  %v5771_v10 = vld [vmem:[#allocation4 + $0x5d8] sm:$0xf0] }
 0x127   : > { %v7377_v16 = vadd.f32 1e-12, %v1169_v5  ;;  %2308 = vmatpush.bf16.msra.mxu2 %v7381_v14  ;;  %v7426_v5 = vor.u32 %v6525_v57, %v5571_v58  ;;  %v5385_v57 = vld [vmem:[#allocation4 + $0x2a8] sm:$0xf]  ;;  %v6484_v58 = vld [vmem:[#allocation4 + $0x2d4] sm:$0xf0]  ;;  %v7480_v31 = vor.u32 %v6574_v9, %v5771_v10 }
 0x128   : > { %v5625_v9 = vld [vmem:[#allocation4 + $0x488] sm:$0xf] }
 0x129   : > { %6820 = vrsqrt.f32 %v7377_v16  ;;  %vm1177_vm2 = vweird.f32 %v7377_v16  ;;  %2350 = vmatpush.bf16.msrb.mxu1 %v7426_v5  ;;  %9365 = vst [vmem:[#allocation18_spill] sm:$0xff] %v7480_v31 }
 0x12b   : > { %2309 = vmatpush.bf16.msra.mxu2 %v7392_v29 }
 0x12d   : > { %2351 = vmatpush.bf16.msrb.mxu1 %v7442_v28 }
 0x12f   : > { %v6821_v46 = vpop.eup %6820  ;;  %2310 = vmatpush.bf16.msra.mxu2 %v7404_v45 }
 0x130   : > { %v1172_v52 = vmul.f32 %v6821_v46, %v7377_v16  ;;  %vm1178_vm1 = vweird.f32 %v6821_v46  ;;  %v6816_v16 = vld [vmem:[%s9362_s28] ss:$0 sm:$0xff]  ;;  %s819_s28 = scalar_lea.vmem %s9928_s6, %s9931_s20 }
 0x131   : > { %vm1179_vm3 = vmor %vm1177_vm2, %vm1178_vm1 }
 0x132   : > { %v1173_v59 = vmul.f32 %v6821_v46, %v1172_v52  ;;  %v5043_v52 = vld [vmem:[#allocation4 + $0x30] sm:$0xf0] }
 0x133   : > { %2311 = vmatpush.bf16.msra.mxu2 %v7417_v60  ;;  %v7469_v8 = vor.u32 %v6393_v50, %v5043_v52  ;;  %v5673_v50 = vld [vmem:[#allocation4 + $0x4e8] sm:$0xf]  ;;  %v6556_v52 = vld [vmem:[#allocation4 + $0x514] sm:$0xf0] }
 0x134   : > { %v1174_v4 = vmul.f32 0.5, %v1173_v59  ;;  %v5769_v59 = vld [vmem:[#allocation4 + $0x5a8] sm:$0xf] }
 0x135   : > { %v7476_v23 = vor.u32 %v6580_v0, %v5769_v59  ;;  %2340 = vmatpush.bf16.msrb.mxu0 %v7469_v8 }
 0x136   : > { %v1175_v13 = vsub.f32 1.5, %v1174_v4 }
 0x137   : > { %2312 = vmatpush.bf16.msra.mxu2 %v7429_v15  ;;  %9363 = vst [vmem:[#allocation16_spill] sm:$0xff] %v7476_v23 }
 0x138   : > { %v1176_v27 = vmul.f32 %v6821_v46, %v1175_v13  ;;  %v7471_v13 = vor.u32 %v6489_v54, %v5427_v55  ;;  %v6454_v54 = vld [vmem:[#allocation4 + $0x1ec] sm:$0xf]  ;;  %v5291_v55 = vld [vmem:[#allocation4 + $0x218] sm:$0xf0] }
 0x139   : > { %v7504_v0 = vor.u32 %v6454_v54, %v5291_v55  ;;  %v6430_v54 = vld [vmem:[#allocation4 + $0x12c] sm:$0xf]  ;;  %v5195_v55 = vld [vmem:[#allocation4 + $0x158] sm:$0xf0] }
 0x13a   : > { %v1180_v37 = vsel %vm1179_vm3, %v6821_v46, %v1176_v27  ;;  %v7459_v46 = vor.u32 %v6501_v35, %v5475_v36  ;;  %v6472_v27 = vld [vmem:[#allocation4 + $0x274] sm:$0xf0]  ;;  %v6466_v35 = vld [vmem:[#allocation4 + $0x24c] sm:$0xf]  ;;  %v5339_v36 = vld [vmem:[#allocation4 + $0x278] sm:$0xf0] }
 0x13b   : > { %v1181_v40 = vmul.f32 %v1180_v37, %v7279_v17  ;;  %v6495_v17 = vld [vmem:[#allocation4 + $0x32c] sm:$0xf0]  ;;  %2313 = vmatpush.bf16.msra.mxu2 %v7446_v39  ;;  %v6562_v37 = vld [vmem:[#allocation4 + $0x54c] sm:$0xf]  ;;  %v7492_v44 = vor.u32 %v6466_v35, %v5339_v36  ;;  %9372 = vst [vmem:[#allocation25_spill] sm:$0xff] %v7504_v0  ;;  %v7510_v35 = vor.u32 %v6448_v3, %v5241_v2  ;;  %vm4637_vm3 = vcmask 7168  }
 0x13c   : > { %2352 = vmatpush.bf16.msrb.mxu1 %v7459_v46  ;;  %v7467_v4 = vor.u32 %v6495_v17, %v5425_v49  ;;  %v5289_v49 = vld [vmem:[#allocation4 + $0x1e8] sm:$0xf]  ;;  %v6460_v17 = vld [vmem:[#allocation4 + $0x214] sm:$0xf0] }
 0x13d   : > { %v1185_v51 = vmul.f32 %v6815_v19, %v1181_v40  ;;  %v7473_v19 = vor.u32 %v6484_v58, %v5385_v57  ;;  %v5723_v40 = vld [vmem:[#allocation4 + $0x578] sm:$0xf0]  ;;  %9368 = vst [vmem:[#allocation21_spill] sm:$0xff] %v7492_v44  ;;  %v6550_v57 = vld [vmem:[#allocation4 + $0x4ec] sm:$0xf]  ;;  %v7498_v59 = vor.u32 %v6460_v17, %v5289_v49 }
 0x13e   : > { %2327 = vmatpush.bf16.msra.mxu3 %v7467_v4  ;;  %v5675_v58 = vld [vmem:[#allocation4 + $0x518] sm:$0xf0]  ;;  %9374 = vst [vmem:[#allocation27_spill] sm:$0xff] %v7510_v35  ;;  %v6436_v49 = vld [vmem:[#allocation4 + $0x154] sm:$0xf0] }
 0x13f   : > { %v1189_v61 = vadd.f32 %v6816_v16, %v1185_v51  ;;  %2314 = vmatpush.bf16.msra.mxu2 %v7462_v56  ;;  %v7486_v16 = vor.u32 %v6472_v27, %v5337_v26  ;;  %v7495_v51 = vor.u32 %v6562_v37, %v5723_v40  ;;  %9370 = vst [vmem:[#allocation23_spill] sm:$0xff] %v7498_v59  ;;  %v6442_v26 = vld [vmem:[#allocation4 + $0x18c] sm:$0xf]  ;;  %v5243_v27 = vld [vmem:[#allocation4 + $0x1b8] sm:$0xf0] }
 0x140   : > { %2353 = vmatpush.bf16.msrb.mxu1 %v7471_v13  ;;  %v7507_v10 = vor.u32 %v6550_v57, %v5675_v58  ;;  %v7516_v37 = vor.u32 %v6442_v26, %v5243_v27  ;;  %v5193_v40 = vld [vmem:[#allocation4 + $0x128] sm:$0xf]  ;;  %v6526_v57 = vld [vmem:[#allocation4 + $0x42c] sm:$0xf]  ;;  %v5579_v58 = vld [vmem:[#allocation4 + $0x458] sm:$0xf0] }
 0x141   : > { %v1190_v12 = vpack.c.bf16 %v1189_v61, %v1189_v61  ;;  %9366 = vst [vmem:[#allocation19_spill] sm:$0xff] %v7486_v16  ;;  %v7502_v61 = vor.u32 %v6556_v52, %v5673_v50  ;;  %v5577_v17 = vld [vmem:[#allocation4 + $0x428] sm:$0xf]  ;;  %v7519_v50 = vor.u32 %v6538_v30, %v5627_v32  ;;  %v6532_v52 = vld [vmem:[#allocation4 + $0x454] sm:$0xf0]  ;;  %v7522_v2 = vor.u32 %v6436_v49, %v5193_v40 }
 0x142   : > { %2372 = vmatpush.bf16.msrb.mxu3 %v7476_v23  ;;  %9369 = vst [vmem:[#allocation22_spill] sm:$0xff] %v7495_v51  ;;  %v7526_v3 = vor.u32 %v6532_v52, %v5577_v17  ;;  %v6424_v26 = vld [vmem:[#allocation4 + $0xf4] sm:$0xf0]  ;;  %v5529_v27 = vld [vmem:[#allocation4 + $0x3c8] sm:$0xf]  ;;  %v7531_v30 = vor.u32 %v6526_v57, %v5579_v58 }
 0x143   : > { %1301 = vmatmul.bf16.vlgmr.msra.gmra.mxu0 %v1190_v12  ;;  %1314 = vmatmul.bf16.vlgmr.msra.gmra.mxu1 %v1190_v12  ;;  %9371 = vst [vmem:[#allocation24_spill] sm:$0xff] %v7502_v61  ;;  %v6544_v12 = vld [vmem:[#allocation4 + $0x4b4] sm:$0xf0]  ;;  %v6514_v40 = vld [vmem:[#allocation4 + $0x3cc] sm:$0xf] }
 0x144   : > { %2359 = vmatpush.bf16.msrb.mxu2 %v7473_v19  ;;  %2385 = vmatpush.bf16.msra.mxu0 %v7478_v24  ;;  %9373 = vst [vmem:[#allocation26_spill] sm:$0xff] %v7507_v10  ;;  %v7514_v36 = vor.u32 %v6544_v12, %v5625_v9  ;;  %v7528_v9 = vor.u32 %v6430_v54, %v5195_v55  ;;  %v5145_v12 = vld [vmem:[#allocation4 + $0xc8] sm:$0xf]  ;;  %v6520_v32 = vld [vmem:[#allocation4 + $0x3f4] sm:$0xf0] }
 0x145   : > { %2398 = vmatpush.bf16.msra.mxu1 %v7480_v31  ;;  %9376 = vst [vmem:[#allocation29_spill] sm:$0xff] %v7516_v37  ;;  %v5531_v49 = vld [vmem:[#allocation4 + $0x3f8] sm:$0xf0]  ;;  %v7538_v17 = vor.u32 %v6520_v32, %v5529_v27  ;;  %v5097_v55 = vld [vmem:[#allocation4 + $0x68] sm:$0xf] }
 0x146   : > { %2373 = vmatpush.bf16.msrb.mxu3 %v7490_v43  ;;  %9375 = vst [vmem:[#allocation28_spill] sm:$0xff] %v7514_v36  ;;  %v7543_v54 = vor.u32 %v6514_v40, %v5531_v49  ;;  %v6412_v57 = vld [vmem:[#allocation4 + $0x94] sm:$0xf0]  ;;  %v5481_v58 = vld [vmem:[#allocation4 + $0x368] sm:$0xf] }
 0x147   : > { %9377 = vst [vmem:[#allocation30_spill] sm:$0xff] %v7519_v50  ;;  %v6502_v40 = vld [vmem:[#allocation4 + $0x36c] sm:$0xf]  ;;  %v5483_v49 = vld [vmem:[#allocation4 + $0x398] sm:$0xf0] }
 0x148   : > { %2360 = vmatpush.bf16.msrb.mxu2 %v7486_v16  ;;  %2386 = vmatpush.bf16.msra.mxu0 %v7492_v44  ;;  %9378 = vst [vmem:[#allocation31_spill] sm:$0xff] %v7522_v2  ;;  %v5731_v43 = vld [vmem:[#allocation4 + $0x580] sm:$0xf0]  ;;  %v6570_v16 = vld [vmem:[#allocation4 + $0x584] sm:$0xf0] }
 0x149   : > { %2399 = vmatpush.bf16.msra.mxu1 %v7495_v51  ;;  %9379 = vst [vmem:[#allocation32_spill] sm:$0xff] %v7526_v3  ;;  %v6563_v51 = vld [vmem:[#allocation4 + $0x554] sm:$0xf]  ;;  %v5443_v31 = vld [vmem:[#allocation4 + $0x340] sm:$0xf0] }
 0x14a   : > { %2374 = vmatpush.bf16.msrb.mxu3 %v7502_v61  ;;  %9380 = vst [vmem:[#allocation33_spill] sm:$0xff] %v7528_v9  ;;  %v5147_v61 = vld [vmem:[#allocation4 + $0xf8] sm:$0xf0] }
 0x14b   : > { %9381 = vst [vmem:[#allocation34_spill] sm:$0xff] %v7531_v30  ;;  %v6468_v24 = vld [vmem:[#allocation4 + $0x25c] sm:$0xf] }
 0x14c   : > { %2361 = vmatpush.bf16.msrb.mxu2 %v7498_v59  ;;  %2387 = vmatpush.bf16.msra.mxu0 %v7504_v0  ;;  %9383 = vst [vmem:[#allocation36_spill] sm:$0xff] %v7538_v17  ;;  %v5681_v0 = vld [vmem:[#allocation4 + $0x4f0] sm:$0xf]  ;;  %v6455_v59 = vld [vmem:[#allocation4 + $0x1f4] sm:$0xf] }
 0x14d   : > { %2400 = vmatpush.bf16.msra.mxu1 %v7507_v10  ;;  %v6418_v10 = vld [vmem:[#allocation4 + $0xcc] sm:$0xf]  ;;  %9385 = vst [vmem:[#allocation38_spill] sm:$0xff] %v7543_v54 }
 0x14e   : > { %2375 = vmatpush.bf16.msrb.mxu3 %v7514_v36  ;;  %v7534_v36 = vor.u32 %v6424_v26, %v5145_v12  ;;  %v7540_v52 = vor.u32 %v6418_v10, %v5147_v61  ;;  %v7549_v12 = vor.u32 %v6412_v57, %v5097_v55  ;;  %v6508_v26 = vld [vmem:[#allocation4 + $0x394] sm:$0xf0]  ;;  %v6406_v61 = vld [vmem:[#allocation4 + $0x6c] sm:$0xf]  ;;  %v5099_v10 = vld [vmem:[#allocation4 + $0x98] sm:$0xf0] }
 0x14f   : > { %v7551_v27 = vor.u32 %v6508_v26, %v5481_v58  ;;  %v7553_v32 = vor.u32 %v6406_v61, %v5099_v10  ;;  %v6400_v55 = vld [vmem:[#allocation4 + $0x34] sm:$0xf0]  ;;  %v5433_v57 = vld [vmem:[#allocation4 + $0x308] sm:$0xf]  ;;  %v6394_v26 = vld [vmem:[#allocation4 + $0xc] sm:$0xf] }
 0x150   : > { %2362 = vmatpush.bf16.msrb.mxu2 %v7510_v35  ;;  %2388 = vmatpush.bf16.msra.mxu0 %v7516_v37  ;;  %9382 = vst [vmem:[#allocation35_spill] sm:$0xff] %v7534_v36  ;;  %v6496_v58 = vld [vmem:[#allocation4 + $0x334] sm:$0xf0]  ;;  %v5051_v61 = vld [vmem:[#allocation4 + $0x38] sm:$0xf0] }
 0x151   : > { %2401 = vmatpush.bf16.msra.mxu1 %v7519_v50  ;;  %9384 = vst [vmem:[#allocation37_spill] sm:$0xff] %v7540_v52  ;;  %v7563_v10 = vor.u32 %v6496_v58, %v5433_v57  ;;  %v5393_v58 = vld [vmem:[#allocation4 + $0x2b0] sm:$0xf]  ;;  %v6467_v37 = vld [vmem:[#allocation4 + $0x254] sm:$0xf] }
 0x152   : > { %2376 = vmatpush.bf16.msrb.mxu3 %v7526_v3  ;;  %9386 = vst [vmem:[#allocation39_spill] sm:$0xff] %v7549_v12  ;;  %v7565_v3 = vor.u32 %v6394_v26, %v5051_v61  ;;  %v6485_v26 = vld [vmem:[#allocation4 + $0x2dc] sm:$0xf0]  ;;  %v5347_v35 = vld [vmem:[#allocation4 + $0x280] sm:$0xf0] }
 0x153   : > { %9387 = vst [vmem:[#allocation40_spill] sm:$0xff] %v7551_v27 }
 0x154   : > { %2363 = vmatpush.bf16.msrb.mxu2 %v7522_v2  ;;  %2389 = vmatpush.bf16.msra.mxu0 %v7528_v9  ;;  %9388 = vst [vmem:[#allocation41_spill] sm:$0xff] %v7553_v32  ;;  %v5345_v9 = vld [vmem:[#allocation4 + $0x250] sm:$0xf]  ;;  %v6569_v2 = vld [vmem:[#allocation4 + $0x57c] sm:$0xf0] }
 0x155   : > { %2402 = vmatpush.bf16.msra.mxu1 %v7531_v30  ;;  %9391 = vst [vmem:[#allocation44_spill] sm:$0xff] %v7563_v10 }
 0x156   : > { %2377 = vmatpush.bf16.msrb.mxu3 %v7538_v17  ;;  %v7556_v17 = vor.u32 %v6502_v40, %v5483_v49  ;;  %9392 = vst [vmem:[#allocation45_spill] sm:$0xff] %v7565_v3  ;;  %v6490_v40 = vld [vmem:[#allocation4 + $0x30c] sm:$0xf]  ;;  %v5435_v49 = vld [vmem:[#allocation4 + $0x338] sm:$0xf0] }
 0x158   : > { %2364 = vmatpush.bf16.msrb.mxu2 %v7534_v36  ;;  %2390 = vmatpush.bf16.msra.mxu0 %v7540_v52  ;;  %9389 = vst [vmem:[#allocation42_spill] sm:$0xff] %v7556_v17  ;;  %v7588_v36 = vor.u32 %v6485_v26, %v5393_v58  ;;  %v7608_v26 = vor.u32 %v6467_v37, %v5347_v35  ;;  %v5633_v35 = vld [vmem:[#allocation4 + $0x490] sm:$0xf]  ;;  %v6545_v37 = vld [vmem:[#allocation4 + $0x4bc] sm:$0xf0] }
 0x159   : > { %2403 = vmatpush.bf16.msra.mxu1 %v7543_v54  ;;  %v5049_v54 = vld [vmem:[#allocation4 + $0x8] sm:$0xf] }
 0x15a   : > { %2378 = vmatpush.bf16.msrb.mxu3 %v7551_v27  ;;  %v7561_v30 = vor.u32 %v6400_v55, %v5049_v54  ;;  %v7568_v27 = vor.u32 %v6490_v40, %v5435_v49  ;;  %v1207_v54 = vld [vmem:[%s9394_s15] sm:$0x3]  ;;  %v6479_v40 = vld [vmem:[#allocation4 + $0x2b4] sm:$0xf]  ;;  %9395 = vst [vmem:[#allocation47_spill] sm:$0xff] %v7588_v36 }
 0x15b   : > { %v1209_v55 = vperm.slane %v1207_v54, 0  ;;  %v1210_v57 = vperm.slane %v1207_v54, 1  ;;  %9401 = vst [vmem:[#allocation53_spill] sm:$0xff] %v7608_v26 }
 0x15c   : > { %2365 = vmatpush.bf16.msrb.mxu2 %v7549_v12  ;;  %2391 = vmatpush.bf16.msra.mxu0 %v7553_v32  ;;  %9390 = vst [vmem:[#allocation43_spill] sm:$0xff] %v7561_v30  ;;  %v5777_v32 = vld [vmem:[#allocation4 + $0x5b0] sm:$0xf]  ;;  %v6575_v12 = vld [vmem:[#allocation4 + $0x5b4] sm:$0xf] }
 0x15d   : > { %2404 = vmatpush.bf16.msra.mxu1 %v7556_v17  ;;  %9393 = vst [vmem:[#allocation46_spill] sm:$0xff] %v7568_v27 }
 0x15e   : > { %2379 = vmatpush.bf16.msrb.mxu3 %v7563_v10 }
 0x160   : > { %2366 = vmatpush.bf16.msrb.mxu2 %v7561_v30  ;;  %2392 = vmatpush.bf16.msra.mxu0 %v7565_v3  ;;  %v6581_v30 = vld [vmem:[#allocation4 + $0x5dc] sm:$0xf0]  ;;  %v5395_v3 = vld [vmem:[#allocation4 + $0x2e0] sm:$0xf0] }
 0x161   : > { %2405 = vmatpush.bf16.msra.mxu1 %v7568_v27  ;;  %v5779_v27 = vld [vmem:[#allocation4 + $0x5e0] sm:$0xf0]  ;;  %v7590_v50 = vor.u32 %v6581_v30, %v5777_v32 }
 0x163   : > { %9396 = vst [vmem:[#allocation48_spill] sm:$0xff] %v7590_v50 }
 0x1c0   : > { %v1302_v61 = vpop.f32.mrf.mxu0  ;;  %v1315_v17 = vpop.f32.mrf.mxu1 }
 0x1c1   : > { %v7576_v49 = vadd.f32 %v1302_v61, %v1209_v55  ;;  %v7578_v10 = vadd.f32 %v1315_v17, %v1210_v57  ;;  %v6473_v55 = vld [vmem:[#allocation4 + $0x27c] sm:$0xf0]  ;;  %v7592_v61 = vor.u32 %v6479_v40, %v5395_v3  ;;  %v7594_v17 = vor.u32 %v6575_v12, %v5779_v27  ;;  %v5729_v57 = vld [vmem:[#allocation4 + $0x550] sm:$0xf] }
 0x1c2   : > { %v7602_v3 = vor.u32 %v6473_v55, %v5345_v9  ;;  %v7604_v30 = vor.u32 %v6569_v2, %v5729_v57  ;;  %v5297_v12 = vld [vmem:[#allocation4 + $0x1f0] sm:$0xf]  ;;  %v6461_v27 = vld [vmem:[#allocation4 + $0x21c] sm:$0xf0]  ;;  %v7610_v40 = vor.u32 %v6563_v51, %v5731_v43  ;;  %v6551_v9 = vld [vmem:[#allocation4 + $0x4f4] sm:$0xf] }
 0x1c3   : > { %v7582_v52 = vpack.c.bf16 %v7576_v49, %v7576_v49  ;;  %v7586_v54 = vpack.c.bf16 %v7578_v10, %v7578_v10  ;;  %9397 = vst [vmem:[#allocation49_spill] sm:$0xff] %v7592_v61  ;;  %v5683_v55 = vld [vmem:[#allocation4 + $0x520] sm:$0xf0]  ;;  %v7614_v2 = vor.u32 %v6461_v27, %v5297_v12  ;;  %v5201_v12 = vld [vmem:[#allocation4 + $0x130] sm:$0xf] }
 0x1c4   : > { %9398 = vst [vmem:[#allocation50_spill] sm:$0xff] %v7594_v17  ;;  %v7622_v51 = vor.u32 %v6551_v9, %v5683_v55  ;;  %v6437_v27 = vld [vmem:[#allocation4 + $0x15c] sm:$0xf0]  ;;  %v5585_v9 = vld [vmem:[#allocation4 + $0x430] sm:$0xf] }
 0x1c5   : > { %2315 = vmatmul.bf16.vlgmr.msra.gmra.mxu2 %v7582_v52  ;;  %2328 = vmatmul.bf16.vlgmr.msra.gmra.mxu3 %v7586_v54  ;;  %9399 = vst [vmem:[#allocation51_spill] sm:$0xff] %v7602_v3  ;;  %v6533_v55 = vld [vmem:[#allocation4 + $0x45c] sm:$0xf0] }
 0x1c6   : > { %2341 = vmatmul.bf16.vlgmr.msrb.gmra.mxu0 %v7582_v52  ;;  %2354 = vmatmul.bf16.vlgmr.msrb.gmra.mxu1 %v7586_v54  ;;  %9400 = vst [vmem:[#allocation52_spill] sm:$0xff] %v7604_v30 }
 0x1c7   : > { %2411 = vmatpush.bf16.msra.mxu2 %v7588_v36  ;;  %2424 = vmatpush.bf16.msra.mxu3 %v7590_v50  ;;  %9402 = vst [vmem:[#allocation54_spill] sm:$0xff] %v7610_v40  ;;  %v6557_v36 = vld [vmem:[#allocation4 + $0x51c] sm:$0xf0]  ;;  %v5299_v50 = vld [vmem:[#allocation4 + $0x220] sm:$0xf0] }
 0x1c8   : > { %2437 = vmatpush.bf16.msrb.mxu0 %v7592_v61  ;;  %2450 = vmatpush.bf16.msrb.mxu1 %v7594_v17  ;;  %v1304_v32 = vpop.f32.mrf.mxu0  ;;  %v1317_v58 = vpop.f32.mrf.mxu1  ;;  %9403 = vst [vmem:[#allocation55_spill] sm:$0xff] %v7614_v2  ;;  %v7616_v57 = vor.u32 %v6557_v36, %v5681_v0  ;;  %v7620_v43 = vor.u32 %v6455_v59, %v5299_v50  ;;  %v6443_v17 = vld [vmem:[#allocation4 + $0x194] sm:$0xf] }
 0x1c9   : > { %v5249_v32 = vld [vmem:[#allocation4 + $0x190] sm:$0xf]  ;;  %v6449_v58 = vld [vmem:[#allocation4 + $0x1bc] sm:$0xf0]  ;;  %9406 = vst [vmem:[#allocation58_spill] sm:$0xff] %v7622_v51  ;;  %v7628_v36 = vor.u32 %v6545_v37, %v5633_v35 }
 0x1ca   : > { %9404 = vst [vmem:[#allocation56_spill] sm:$0xff] %v7616_v57  ;;  %v6539_v61 = vld [vmem:[#allocation4 + $0x494] sm:$0xf]  ;;  %v7626_v0 = vor.u32 %v6449_v58, %v5249_v32  ;;  %v7638_v32 = vor.u32 %v6437_v27, %v5201_v12  ;;  %v7640_v58 = vor.u32 %v6533_v55, %v5585_v9  ;;  %v5153_v35 = vld [vmem:[#allocation4 + $0xd0] sm:$0xf] }
 0x1cb   : > { %2412 = vmatpush.bf16.msra.mxu2 %v7602_v3  ;;  %2425 = vmatpush.bf16.msra.mxu3 %v7604_v30  ;;  %9405 = vst [vmem:[#allocation57_spill] sm:$0xff] %v7620_v43  ;;  %v5251_v3 = vld [vmem:[#allocation4 + $0x1c0] sm:$0xf0]  ;;  %v6425_v37 = vld [vmem:[#allocation4 + $0xfc] sm:$0xf0] }
 0x1cc   : > { %2438 = vmatpush.bf16.msrb.mxu0 %v7608_v26  ;;  %2451 = vmatpush.bf16.msrb.mxu1 %v7610_v40  ;;  %v5635_v30 = vld [vmem:[#allocation4 + $0x4c0] sm:$0xf0]  ;;  %9407 = vst [vmem:[#allocation59_spill] sm:$0xff] %v7626_v0  ;;  %v7632_v59 = vor.u32 %v6443_v17, %v5251_v3  ;;  %v6431_v40 = vld [vmem:[#allocation4 + $0x134] sm:$0xf] }
 0x1cd   : > { %9408 = vst [vmem:[#allocation60_spill] sm:$0xff] %v7628_v36  ;;  %v7634_v50 = vor.u32 %v6539_v61, %v5635_v30  ;;  %v6527_v26 = vld [vmem:[#allocation4 + $0x434] sm:$0xf]  ;;  %v5537_v3 = vld [vmem:[#allocation4 + $0x3d0] sm:$0xf] }
 0x1ce   : > { %9409 = vst [vmem:[#allocation61_spill] sm:$0xff] %v7632_v59  ;;  %v6521_v30 = vld [vmem:[#allocation4 + $0x3fc] sm:$0xf0]  ;;  %v5155_v12 = vld [vmem:[#allocation4 + $0x100] sm:$0xf0] }
 0x1cf   : > { %2413 = vmatpush.bf16.msra.mxu2 %v7614_v2  ;;  %2426 = vmatpush.bf16.msra.mxu3 %v7616_v57  ;;  %9410 = vst [vmem:[#allocation62_spill] sm:$0xff] %v7634_v50  ;;  %v5203_v2 = vld [vmem:[#allocation4 + $0x160] sm:$0xf0]  ;;  %v6515_v27 = vld [vmem:[#allocation4 + $0x3d4] sm:$0xf] }
 0x1d0   : > { %2439 = vmatpush.bf16.msrb.mxu0 %v7620_v43  ;;  %2452 = vmatpush.bf16.msrb.mxu1 %v7622_v51  ;;  %v5587_v57 = vld [vmem:[#allocation4 + $0x460] sm:$0xf0]  ;;  %9411 = vst [vmem:[#allocation63_spill] sm:$0xff] %v7638_v32  ;;  %v7644_v61 = vor.u32 %v6431_v40, %v5203_v2  ;;  %v6419_v51 = vld [vmem:[#allocation4 + $0xd4] sm:$0xf]  ;;  %v7656_v40 = vor.u32 %v6521_v30, %v5537_v3 }
 0x1d1   : > { %9412 = vst [vmem:[#allocation64_spill] sm:$0xff] %v7640_v58  ;;  %v7646_v17 = vor.u32 %v6527_v26, %v5587_v57  ;;  %v5539_v9 = vld [vmem:[#allocation4 + $0x400] sm:$0xf0]  ;;  %v7654_v26 = vor.u32 %v6425_v37, %v5153_v35  ;;  %v5105_v2 = vld [vmem:[#allocation4 + $0x70] sm:$0xf]  ;;  %v7660_v55 = vor.u32 %v6419_v51, %v5155_v12 }
 0x1d2   : > { %9413 = vst [vmem:[#allocation65_spill] sm:$0xff] %v7644_v61  ;;  %v6413_v57 = vld [vmem:[#allocation4 + $0x9c] sm:$0xf0]  ;;  %v6503_v43 = vld [vmem:[#allocation4 + $0x374] sm:$0xf] }
 0x1d3   : > { %2414 = vmatpush.bf16.msra.mxu2 %v7626_v0  ;;  %2427 = vmatpush.bf16.msra.mxu3 %v7628_v36  ;;  %9414 = vst [vmem:[#allocation66_spill] sm:$0xff] %v7646_v17  ;;  %v6509_v36 = vld [vmem:[#allocation4 + $0x39c] sm:$0xf0]  ;;  %v6407_v0 = vld [vmem:[#allocation4 + $0x74] sm:$0xf]  ;;  %v7666_v37 = vor.u32 %v6413_v57, %v5105_v2 }
 0x1d4   : > { %2440 = vmatpush.bf16.msrb.mxu0 %v7632_v59  ;;  %2453 = vmatpush.bf16.msrb.mxu1 %v7634_v50  ;;  %9415 = vst [vmem:[#allocation67_spill] sm:$0xff] %v7654_v26  ;;  %v7662_v50 = vor.u32 %v6515_v27, %v5539_v9  ;;  %v5489_v59 = vld [vmem:[#allocation4 + $0x370] sm:$0xf]  ;;  %v6401_v30 = vld [vmem:[#allocation4 + $0x3c] sm:$0xf0] }
 0x1d5   : > { %2367 = vmatmul.bf16.vlgmr.msrb.gmra.mxu2 %v7582_v52  ;;  %2380 = vmatmul.bf16.vlgmr.msrb.gmra.mxu3 %v7586_v54  ;;  %9416 = vst [vmem:[#allocation68_spill] sm:$0xff] %v7656_v40  ;;  %v5057_v35 = vld [vmem:[#allocation4 + $0x10] sm:$0xf]  ;;  %v7668_v3 = vor.u32 %v6509_v36, %v5489_v59  ;;  %v6497_v12 = vld [vmem:[#allocation4 + $0x33c] sm:$0xf0] }
 0x1d6   : > { %2393 = vmatmul.bf16.vlgmr.msra.gmra.mxu0 %v7582_v52  ;;  %2406 = vmatmul.bf16.vlgmr.msra.gmra.mxu1 %v7586_v54  ;;  %9417 = vst [vmem:[#allocation69_spill] sm:$0xff] %v7660_v55  ;;  %v5441_v51 = vld [vmem:[#allocation4 + $0x310] sm:$0xf]  ;;  %v6486_v2 = vld [vmem:[#allocation4 + $0x2e4] sm:$0xf0] }
 0x1d7   : > { %2415 = vmatpush.bf16.msra.mxu2 %v7638_v32  ;;  %2428 = vmatpush.bf16.msra.mxu3 %v7640_v58  ;;  %9418 = vst [vmem:[#allocation70_spill] sm:$0xff] %v7662_v50  ;;  %v5107_v32 = vld [vmem:[#allocation4 + $0xa0] sm:$0xf0]  ;;  %v5785_v57 = vld [vmem:[#allocation4 + $0x5b8] sm:$0xf] }
 0x1d8   : > { %2441 = vmatpush.bf16.msrb.mxu0 %v7644_v61  ;;  %2454 = vmatpush.bf16.msrb.mxu1 %v7646_v17  ;;  %v5491_v58 = vld [vmem:[#allocation4 + $0x3a0] sm:$0xf0]  ;;  %9419 = vst [vmem:[#allocation71_spill] sm:$0xff] %v7666_v37  ;;  %v7672_v27 = vor.u32 %v6407_v0, %v5107_v32  ;;  %v6395_v17 = vld [vmem:[#allocation4 + $0x14] sm:$0xf] }
 0x1d9   : > { %9420 = vst [vmem:[#allocation72_spill] sm:$0xff] %v7668_v3  ;;  %v7674_v9 = vor.u32 %v6503_v43, %v5491_v58  ;;  %v5059_v61 = vld [vmem:[#allocation4 + $0x40] sm:$0xf0]  ;;  %v6582_v36 = vld [vmem:[#allocation4 + $0x5e4] sm:$0xf0] }
 0x1da   : > { %9421 = vst [vmem:[#allocation73_spill] sm:$0xff] %v7672_v27  ;;  %v6480_v59 = vld [vmem:[#allocation4 + $0x2bc] sm:$0xf]  ;;  %v5403_v0 = vld [vmem:[#allocation4 + $0x2e8] sm:$0xf0]  ;;  %v7684_v58 = vor.u32 %v6395_v17, %v5059_v61 }
 0x1db   : > { %2416 = vmatpush.bf16.msra.mxu2 %v7654_v26  ;;  %2429 = vmatpush.bf16.msra.mxu3 %v7656_v40  ;;  %9422 = vst [vmem:[#allocation74_spill] sm:$0xff] %v7674_v9  ;;  %v6491_v26 = vld [vmem:[#allocation4 + $0x314] sm:$0xf]  ;;  %v5401_v40 = vld [vmem:[#allocation4 + $0x2b8] sm:$0xf] }
 0x1dc   : > { %2442 = vmatpush.bf16.msrb.mxu0 %v7660_v55  ;;  %2455 = vmatpush.bf16.msrb.mxu1 %v7662_v50  ;;  %v7678_v55 = vor.u32 %v6401_v30, %v5057_v35  ;;  %v7680_v50 = vor.u32 %v6497_v12, %v5441_v51  ;;  %v6576_v43 = vld [vmem:[#allocation4 + $0x5bc] sm:$0xf]  ;;  %v5787_v32 = vld [vmem:[#allocation4 + $0x5e8] sm:$0xf0]  ;;  %9425 = vst [vmem:[#allocation77_spill] sm:$0xff] %v7684_v58 }
 0x1dd   : > { %v7686_v23 = vor.u32 %v6491_v26, %v5443_v31  ;;  %v7688_v44 = vor.u32 %v6486_v2, %v5401_v40  ;;  %v6474_v35 = vld [vmem:[#allocation4 + $0x284] sm:$0xf0]  ;;  %v7692_v30 = vor.u32 %v6480_v59, %v5403_v0  ;;  %v7694_v51 = vor.u32 %v6576_v43, %v5787_v32  ;;  %v5737_v12 = vld [vmem:[#allocation4 + $0x558] sm:$0xf]  ;;  %v5355_v61 = vld [vmem:[#allocation4 + $0x288] sm:$0xf0] }
 0x1de   : > { %9423 = vst [vmem:[#allocation75_spill] sm:$0xff] %v7678_v55  ;;  %v6564_v31 = vld [vmem:[#allocation4 + $0x55c] sm:$0xf]  ;;  %v5739_v17 = vld [vmem:[#allocation4 + $0x588] sm:$0xf0]  ;;  %v7704_v40 = vor.u32 %v6570_v16, %v5737_v12 }
 0x1df   : > { %2417 = vmatpush.bf16.msra.mxu2 %v7666_v37  ;;  %2430 = vmatpush.bf16.msra.mxu3 %v7668_v3  ;;  %9424 = vst [vmem:[#allocation76_spill] sm:$0xff] %v7680_v50  ;;  %v7690_v37 = vor.u32 %v6582_v36, %v5785_v57  ;;  %v5353_v3 = vld [vmem:[#allocation4 + $0x258] sm:$0xf]  ;;  %v6462_v57 = vld [vmem:[#allocation4 + $0x224] sm:$0xf0]  ;;  %v7708_v36 = vor.u32 %v6468_v24, %v5355_v61 }
 0x1e0   : > { %2443 = vmatpush.bf16.msrb.mxu0 %v7672_v27  ;;  %2456 = vmatpush.bf16.msrb.mxu1 %v7674_v9  ;;  %9426 = vst [vmem:[#allocation78_spill] sm:$0xff] %v7686_v23  ;;  %v7702_v26 = vor.u32 %v6474_v35, %v5353_v3  ;;  %v5305_v2 = vld [vmem:[#allocation4 + $0x1f8] sm:$0xf]  ;;  %v7710_v59 = vor.u32 %v6564_v31, %v5739_v17  ;;  %v6558_v43 = vld [vmem:[#allocation4 + $0x524] sm:$0xf0] }
 0x1e1   : > { %9427 = vst [vmem:[#allocation79_spill] sm:$0xff] %v7688_v44  ;;  %v5689_v0 = vld [vmem:[#allocation4 + $0x4f8] sm:$0xf]  ;;  %v6456_v32 = vld [vmem:[#allocation4 + $0x1fc] sm:$0xf]  ;;  %v7718_v24 = vor.u32 %v6462_v57, %v5305_v2 }
 0x1e2   : > { %9428 = vst [vmem:[#allocation80_spill] sm:$0xff] %v7690_v37  ;;  %v5307_v3 = vld [vmem:[#allocation4 + $0x228] sm:$0xf0]  ;;  %v6552_v16 = vld [vmem:[#allocation4 + $0x4fc] sm:$0xf]  ;;  %v7720_v12 = vor.u32 %v6558_v43, %v5689_v0 }
 0x1e3   : > { %9429 = vst [vmem:[#allocation81_spill] sm:$0xff] %v7692_v30  ;;  %2418 = vmatpush.bf16.msra.mxu2 %v7678_v55  ;;  %2431 = vmatpush.bf16.msra.mxu3 %v7680_v50  ;;  %v5691_v35 = vld [vmem:[#allocation4 + $0x528] sm:$0xf0]  ;;  %v5257_v61 = vld [vmem:[#allocation4 + $0x198] sm:$0xf]  ;;  %v7724_v17 = vor.u32 %v6456_v32, %v5307_v3 }
 0x1e4   : > { %9430 = vst [vmem:[#allocation82_spill] sm:$0xff] %v7694_v51  ;;  %2444 = vmatpush.bf16.msrb.mxu0 %v7684_v58  ;;  %2457 = vmatpush.bf16.msrb.mxu1 %v7686_v23  ;;  %v6450_v31 = vld [vmem:[#allocation4 + $0x1c4] sm:$0xf0]  ;;  %v6540_v23 = vld [vmem:[#allocation4 + $0x49c] sm:$0xf] }
 0x1e5   : > { %9431 = vst [vmem:[#allocation83_spill] sm:$0xff] %v7702_v26  ;;  %v7730_v2 = vor.u32 %v6450_v31, %v5257_v61  ;;  %v5209_v0 = vld [vmem:[#allocation4 + $0x138] sm:$0xf]  ;;  %v6438_v43 = vld [vmem:[#allocation4 + $0x164] sm:$0xf0] }
 0x1e6   : > { %9432 = vst [vmem:[#allocation84_spill] sm:$0xff] %v7704_v40  ;;  %2419 = vmatmul.bf16.vlgmr.msra.gmra.mxu2 %v7582_v52  ;;  %2432 = vmatmul.bf16.vlgmr.msra.gmra.mxu3 %v7586_v54  ;;  %v5161_v61 = vld [vmem:[#allocation4 + $0xd8] sm:$0xf]  ;;  %v6426_v31 = vld [vmem:[#allocation4 + $0x104] sm:$0xf0] }
 0x1e7   : > { %2463 = vmatpush.bf16.msrb.mxu2 %v7688_v44  ;;  %2476 = vmatpush.bf16.msrb.mxu3 %v7690_v37  ;;  %9433 = vst [vmem:[#allocation85_spill] sm:$0xff] %v7708_v36  ;;  %v6546_v37 = vld [vmem:[#allocation4 + $0x4c4] sm:$0xf0]  ;;  %v6444_v44 = vld [vmem:[#allocation4 + $0x19c] sm:$0xf] }
 0x1e8   : > { %2489 = vmatpush.bf16.msra.mxu0 %v7692_v30  ;;  %2502 = vmatpush.bf16.msra.mxu1 %v7694_v51  ;;  %9434 = vst [vmem:[#allocation86_spill] sm:$0xff] %v7710_v59  ;;  %v7726_v51 = vor.u32 %v6552_v16, %v5691_v35  ;;  %v5641_v30 = vld [vmem:[#allocation4 + $0x498] sm:$0xf]  ;;  %v6534_v35 = vld [vmem:[#allocation4 + $0x464] sm:$0xf0] }
 0x1e9   : > { %2445 = vmatmul.bf16.vlgmr.msrb.gmra.mxu0 %v7582_v52  ;;  %2458 = vmatmul.bf16.vlgmr.msrb.gmra.mxu1 %v7586_v54  ;;  %9435 = vst [vmem:[#allocation87_spill] sm:$0xff] %v7718_v24  ;;  %v7732_v57 = vor.u32 %v6546_v37, %v5641_v30  ;;  %v5593_v16 = vld [vmem:[#allocation4 + $0x438] sm:$0xf]  ;;  %v7742_v37 = vor.u32 %v6438_v43, %v5209_v0  ;;  %v5451_v58 = vld [vmem:[#allocation4 + $0x348] sm:$0xf0] }
 0x1ea   : > { %9436 = vst [vmem:[#allocation88_spill] sm:$0xff] %v7720_v12  ;;  %v7744_v30 = vor.u32 %v6534_v35, %v5593_v16  ;;  %v7754_v0 = vor.u32 %v6426_v31, %v5161_v61  ;;  %v5113_v16 = vld [vmem:[#allocation4 + $0x78] sm:$0xf]  ;;  %v6414_v35 = vld [vmem:[#allocation4 + $0xa4] sm:$0xf0] }
 0x1eb   : > { %2464 = vmatpush.bf16.msrb.mxu2 %v7702_v26  ;;  %2477 = vmatpush.bf16.msrb.mxu3 %v7704_v40  ;;  %9437 = vst [vmem:[#allocation89_spill] sm:$0xff] %v7724_v17  ;;  %v5259_v26 = vld [vmem:[#allocation4 + $0x1c8] sm:$0xf0]  ;;  %v5065_v61 = vld [vmem:[#allocation4 + $0x18] sm:$0xf]  ;;  %v7766_v31 = vor.u32 %v6414_v35, %v5113_v16 }
 0x1ec   : > { %2490 = vmatpush.bf16.msra.mxu0 %v7708_v36  ;;  %2503 = vmatpush.bf16.msra.mxu1 %v7710_v59  ;;  %9438 = vst [vmem:[#allocation90_spill] sm:$0xff] %v7726_v51  ;;  %v5643_v40 = vld [vmem:[#allocation4 + $0x4c8] sm:$0xf0]  ;;  %v7736_v32 = vor.u32 %v6444_v44, %v5259_v26  ;;  %v6432_v59 = vld [vmem:[#allocation4 + $0x13c] sm:$0xf] }
 0x1ed   : > { %9439 = vst [vmem:[#allocation91_spill] sm:$0xff] %v7730_v2  ;;  %v7738_v3 = vor.u32 %v6540_v23, %v5643_v40  ;;  %v6528_v36 = vld [vmem:[#allocation4 + $0x43c] sm:$0xf]  ;;  %v5545_v26 = vld [vmem:[#allocation4 + $0x3d8] sm:$0xf] }
 0x1ee   : > { %9440 = vst [vmem:[#allocation92_spill] sm:$0xff] %v7732_v57  ;;  %v6522_v40 = vld [vmem:[#allocation4 + $0x404] sm:$0xf0]  ;;  %v6487_v16 = vld [vmem:[#allocation4 + $0x2ec] sm:$0xf0] }
 0x1ef   : > { %2465 = vmatpush.bf16.msrb.mxu2 %v7718_v24  ;;  %2478 = vmatpush.bf16.msrb.mxu3 %v7720_v12  ;;  %9441 = vst [vmem:[#allocation93_spill] sm:$0xff] %v7736_v32  ;;  %v5211_v24 = vld [vmem:[#allocation4 + $0x168] sm:$0xf0]  ;;  %v7756_v43 = vor.u32 %v6522_v40, %v5545_v26  ;;  %v6402_v40 = vld [vmem:[#allocation4 + $0x44] sm:$0xf0] }
 0x1f0   : > { %2491 = vmatpush.bf16.msra.mxu0 %v7724_v17  ;;  %2504 = vmatpush.bf16.msra.mxu1 %v7726_v51  ;;  %9442 = vst [vmem:[#allocation94_spill] sm:$0xff] %v7738_v3  ;;  %v5595_v12 = vld [vmem:[#allocation4 + $0x468] sm:$0xf0]  ;;  %v7748_v23 = vor.u32 %v6432_v59, %v5211_v24  ;;  %v6420_v51 = vld [vmem:[#allocation4 + $0xdc] sm:$0xf] }
 0x1f1   : > { %9443 = vst [vmem:[#allocation95_spill] sm:$0xff] %v7742_v37  ;;  %v7750_v44 = vor.u32 %v6528_v36, %v5595_v12  ;;  %v6516_v17 = vld [vmem:[#allocation4 + $0x3dc] sm:$0xf]  ;;  %v5497_v24 = vld [vmem:[#allocation4 + $0x378] sm:$0xf] }
 0x1f2   : > { %9444 = vst [vmem:[#allocation96_spill] sm:$0xff] %v7744_v30  ;;  %v6510_v12 = vld [vmem:[#allocation4 + $0x3a4] sm:$0xf0]  ;;  %v5793_v35 = vld [vmem:[#allocation4 + $0x5c0] sm:$0xf] }
 0x1f3   : > { %2466 = vmatpush.bf16.msrb.mxu2 %v7730_v2  ;;  %2479 = vmatpush.bf16.msrb.mxu3 %v7732_v57  ;;  %9445 = vst [vmem:[#allocation97_spill] sm:$0xff] %v7748_v23  ;;  %v5163_v2 = vld [vmem:[#allocation4 + $0x108] sm:$0xf0]  ;;  %v7768_v26 = vor.u32 %v6510_v12, %v5497_v24  ;;  %v6583_v24 = vld [vmem:[#allocation4 + $0x5ec] sm:$0xf0] }
 0x1f4   : > { %2492 = vmatpush.bf16.msra.mxu0 %v7736_v32  ;;  %2505 = vmatpush.bf16.msra.mxu1 %v7738_v3  ;;  %9446 = vst [vmem:[#allocation98_spill] sm:$0xff] %v7750_v44  ;;  %v5547_v57 = vld [vmem:[#allocation4 + $0x408] sm:$0xf0]  ;;  %v7760_v36 = vor.u32 %v6420_v51, %v5163_v2  ;;  %v6408_v3 = vld [vmem:[#allocation4 + $0x7c] sm:$0xf] }
 0x1f5   : > { %9447 = vst [vmem:[#allocation99_spill] sm:$0xff] %v7754_v0  ;;  %v7762_v59 = vor.u32 %v6516_v17, %v5547_v57  ;;  %v6504_v32 = vld [vmem:[#allocation4 + $0x37c] sm:$0xf]  ;;  %v5449_v51 = vld [vmem:[#allocation4 + $0x318] sm:$0xf] }
 0x1f6   : > { %9448 = vst [vmem:[#allocation100_spill] sm:$0xff] %v7756_v43  ;;  %v6498_v2 = vld [vmem:[#allocation4 + $0x344] sm:$0xf0]  ;;  %v6481_v12 = vld [vmem:[#allocation4 + $0x2c4] sm:$0xf] }
 0x1f7   : > { %2467 = vmatpush.bf16.msrb.mxu2 %v7742_v37  ;;  %2480 = vmatpush.bf16.msrb.mxu3 %v7744_v30  ;;  %9449 = vst [vmem:[#allocation101_spill] sm:$0xff] %v7760_v36  ;;  %v5115_v37 = vld [vmem:[#allocation4 + $0xa8] sm:$0xf0]  ;;  %v6571_v9 = vld [vmem:[#allocation4 + $0x58c] sm:$0xf0] }
 0x1f8   : > { %2493 = vmatpush.bf16.msra.mxu0 %v7748_v23  ;;  %2506 = vmatpush.bf16.msra.mxu1 %v7750_v44  ;;  %9450 = vst [vmem:[#allocation102_spill] sm:$0xff] %v7762_v59  ;;  %v5499_v30 = vld [vmem:[#allocation4 + $0x3a8] sm:$0xf0]  ;;  %v7772_v17 = vor.u32 %v6408_v3, %v5115_v37  ;;  %v6396_v44 = vld [vmem:[#allocation4 + $0x1c] sm:$0xf] }
 0x1f9   : > { %9451 = vst [vmem:[#allocation103_spill] sm:$0xff] %v7766_v31  ;;  %v7774_v57 = vor.u32 %v6504_v32, %v5499_v30  ;;  %v5067_v23 = vld [vmem:[#allocation4 + $0x48] sm:$0xf0]  ;;  %v5411_v3 = vld [vmem:[#allocation4 + $0x2f0] sm:$0xf0] }
 0x1fa   : > { %9452 = vst [vmem:[#allocation104_spill] sm:$0xff] %v7768_v26  ;;  %v6577_v32 = vld [vmem:[#allocation4 + $0x5c4] sm:$0xf]  ;;  %v5795_v37 = vld [vmem:[#allocation4 + $0x5f0] sm:$0xf0]  ;;  %v7784_v30 = vor.u32 %v6396_v44, %v5067_v23 }
 0x1fb   : > { %2468 = vmatpush.bf16.msrb.mxu2 %v7754_v0  ;;  %2481 = vmatpush.bf16.msrb.mxu3 %v7756_v43  ;;  %9453 = vst [vmem:[#allocation105_spill] sm:$0xff] %v7772_v17  ;;  %v6492_v0 = vld [vmem:[#allocation4 + $0x31c] sm:$0xf]  ;;  %v5409_v43 = vld [vmem:[#allocation4 + $0x2c0] sm:$0xf] }
 0x1fc   : > { %2494 = vmatpush.bf16.msra.mxu0 %v7760_v36  ;;  %2507 = vmatpush.bf16.msra.mxu1 %v7762_v59  ;;  %9454 = vst [vmem:[#allocation106_spill] sm:$0xff] %v7774_v57  ;;  %v7778_v36 = vor.u32 %v6402_v40, %v5065_v61  ;;  %v7780_v59 = vor.u32 %v6498_v2, %v5449_v51  ;;  %v6475_v61 = vld [vmem:[#allocation4 + $0x28c] sm:$0xf0]  ;;  %v5745_v2 = vld [vmem:[#allocation4 + $0x560] sm:$0xf] }
 0x1fd   : > { %9457 = vst [vmem:[#allocation109_spill] sm:$0xff] %v7784_v30  ;;  %v7786_v50 = vor.u32 %v6492_v0, %v5451_v58  ;;  %v7788_v55 = vor.u32 %v6487_v16, %v5409_v43  ;;  %v7792_v40 = vor.u32 %v6481_v12, %v5411_v3  ;;  %v7794_v51 = vor.u32 %v6577_v32, %v5795_v37  ;;  %v6469_v27 = vld [vmem:[#allocation4 + $0x264] sm:$0xf]  ;;  %v5363_v23 = vld [vmem:[#allocation4 + $0x290] sm:$0xf0] }
 0x1fe   : > { %9455 = vst [vmem:[#allocation107_spill] sm:$0xff] %v7778_v36  ;;  %v6565_v58 = vld [vmem:[#allocation4 + $0x564] sm:$0xf]  ;;  %v5747_v44 = vld [vmem:[#allocation4 + $0x590] sm:$0xf0]  ;;  %v7804_v43 = vor.u32 %v6571_v9, %v5745_v2 }
 0x1ff   : > { %2469 = vmatpush.bf16.msrb.mxu2 %v7766_v31  ;;  %2482 = vmatpush.bf16.msrb.mxu3 %v7768_v26  ;;  %9456 = vst [vmem:[#allocation108_spill] sm:$0xff] %v7780_v59  ;;  %v7790_v31 = vor.u32 %v6583_v24, %v5793_v35  ;;  %v5361_v26 = vld [vmem:[#allocation4 + $0x260] sm:$0xf]  ;;  %v6463_v35 = vld [vmem:[#allocation4 + $0x22c] sm:$0xf0]  ;;  %v7808_v24 = vor.u32 %v6469_v27, %v5363_v23 }
 0x200   : > { %2495 = vmatpush.bf16.msra.mxu0 %v7772_v17  ;;  %2508 = vmatpush.bf16.msra.mxu1 %v7774_v57  ;;  %9458 = vst [vmem:[#allocation110_spill] sm:$0xff] %v7786_v50  ;;  %v7802_v0 = vor.u32 %v6475_v61, %v5361_v26  ;;  %v5313_v16 = vld [vmem:[#allocation4 + $0x200] sm:$0xf]  ;;  %v7810_v12 = vor.u32 %v6565_v58, %v5747_v44  ;;  %v6559_v32 = vld [vmem:[#allocation4 + $0x52c] sm:$0xf0] }
 0x201   : > { %9459 = vst [vmem:[#allocation111_spill] sm:$0xff] %v7788_v55  ;;  %v5697_v3 = vld [vmem:[#allocation4 + $0x500] sm:$0xf]  ;;  %v6457_v37 = vld [vmem:[#allocation4 + $0x204] sm:$0xf]  ;;  %v7818_v27 = vor.u32 %v6463_v35, %v5313_v16 }
 0x202   : > { %9460 = vst [vmem:[#allocation112_spill] sm:$0xff] %v7790_v31  ;;  %v5315_v26 = vld [vmem:[#allocation4 + $0x230] sm:$0xf0]  ;;  %v6553_v9 = vld [vmem:[#allocation4 + $0x504] sm:$0xf]  ;;  %v7820_v2 = vor.u32 %v6559_v32, %v5697_v3 }
 0x203   : > { %9461 = vst [vmem:[#allocation113_spill] sm:$0xff] %v7792_v40  ;;  %2470 = vmatpush.bf16.msrb.mxu2 %v7778_v36  ;;  %2483 = vmatpush.bf16.msrb.mxu3 %v7780_v59  ;;  %v5699_v61 = vld [vmem:[#allocation4 + $0x530] sm:$0xf0]  ;;  %v5265_v23 = vld [vmem:[#allocation4 + $0x1a0] sm:$0xf]  ;;  %v7824_v44 = vor.u32 %v6457_v37, %v5315_v26 }
 0x204   : > { %9462 = vst [vmem:[#allocation114_spill] sm:$0xff] %v7794_v51  ;;  %2496 = vmatpush.bf16.msra.mxu0 %v7784_v30  ;;  %2509 = vmatpush.bf16.msra.mxu1 %v7786_v50  ;;  %v6451_v58 = vld [vmem:[#allocation4 + $0x1cc] sm:$0xf0]  ;;  %v6541_v50 = vld [vmem:[#allocation4 + $0x4a4] sm:$0xf] }
 0x205   : > { %9463 = vst [vmem:[#allocation115_spill] sm:$0xff] %v7802_v0  ;;  %v7830_v16 = vor.u32 %v6451_v58, %v5265_v23  ;;  %v5217_v3 = vld [vmem:[#allocation4 + $0x140] sm:$0xf]  ;;  %v6439_v32 = vld [vmem:[#allocation4 + $0x16c] sm:$0xf0] }
 0x206   : > { %9464 = vst [vmem:[#allocation116_spill] sm:$0xff] %v7804_v43  ;;  %2471 = vmatmul.bf16.vlgmr.msrb.gmra.mxu2 %v7582_v52  ;;  %2484 = vmatmul.bf16.vlgmr.msrb.gmra.mxu3 %v7586_v54  ;;  %v5169_v23 = vld [vmem:[#allocation4 + $0xe0] sm:$0xf]  ;;  %v6427_v58 = vld [vmem:[#allocation4 + $0x10c] sm:$0xf0] }
 0x207   : > { %2515 = vmatpush.bf16.msra.mxu2 %v7788_v55  ;;  %2528 = vmatpush.bf16.msra.mxu3 %v7790_v31  ;;  %9465 = vst [vmem:[#allocation117_spill] sm:$0xff] %v7808_v24  ;;  %v6547_v31 = vld [vmem:[#allocation4 + $0x4cc] sm:$0xf0]  ;;  %v6445_v55 = vld [vmem:[#allocation4 + $0x1a4] sm:$0xf] }
 0x208   : > { %2541 = vmatpush.bf16.msrb.mxu0 %v7792_v40  ;;  %2554 = vmatpush.bf16.msrb.mxu1 %v7794_v51  ;;  %9466 = vst [vmem:[#allocation118_spill] sm:$0xff] %v7810_v12  ;;  %v7826_v51 = vor.u32 %v6553_v9, %v5699_v61  ;;  %v5649_v40 = vld [vmem:[#allocation4 + $0x4a0] sm:$0xf]  ;;  %v6535_v61 = vld [vmem:[#allocation4 + $0x46c] sm:$0xf0] }
 0x209   : > { %2497 = vmatmul.bf16.vlgmr.msra.gmra.mxu0 %v7582_v52  ;;  %2510 = vmatmul.bf16.vlgmr.msra.gmra.mxu1 %v7586_v54  ;;  %9467 = vst [vmem:[#allocation119_spill] sm:$0xff] %v7818_v27  ;;  %v7832_v35 = vor.u32 %v6547_v31, %v5649_v40  ;;  %v5601_v9 = vld [vmem:[#allocation4 + $0x440] sm:$0xf]  ;;  %v7842_v31 = vor.u32 %v6439_v32, %v5217_v3  ;;  %v5459_v30 = vld [vmem:[#allocation4 + $0x350] sm:$0xf0] }
 0x20a   : > { %9468 = vst [vmem:[#allocation120_spill] sm:$0xff] %v7820_v2  ;;  %v7844_v40 = vor.u32 %v6535_v61, %v5601_v9  ;;  %v7854_v3 = vor.u32 %v6427_v58, %v5169_v23  ;;  %v5121_v9 = vld [vmem:[#allocation4 + $0x80] sm:$0xf]  ;;  %v6415_v61 = vld [vmem:[#allocation4 + $0xac] sm:$0xf0] }
 0x20b   : > { %2516 = vmatpush.bf16.msra.mxu2 %v7802_v0  ;;  %2529 = vmatpush.bf16.msra.mxu3 %v7804_v43  ;;  %9469 = vst [vmem:[#allocation121_spill] sm:$0xff] %v7824_v44  ;;  %v5267_v0 = vld [vmem:[#allocation4 + $0x1d0] sm:$0xf0]  ;;  %v5073_v23 = vld [vmem:[#allocation4 + $0x20] sm:$0xf]  ;;  %v7866_v58 = vor.u32 %v6415_v61, %v5121_v9 }
 0x20c   : > { %2542 = vmatpush.bf16.msrb.mxu0 %v7808_v24  ;;  %2555 = vmatpush.bf16.msrb.mxu1 %v7810_v12  ;;  %9470 = vst [vmem:[#allocation122_spill] sm:$0xff] %v7826_v51  ;;  %v5651_v43 = vld [vmem:[#allocation4 + $0x4d0] sm:$0xf0]  ;;  %v7836_v37 = vor.u32 %v6445_v55, %v5267_v0  ;;  %v6433_v12 = vld [vmem:[#allocation4 + $0x144] sm:$0xf] }
 0x20d   : > { %9471 = vst [vmem:[#allocation123_spill] sm:$0xff] %v7830_v16  ;;  %v7838_v26 = vor.u32 %v6541_v50, %v5651_v43  ;;  %v6529_v24 = vld [vmem:[#allocation4 + $0x444] sm:$0xf]  ;;  %v5553_v0 = vld [vmem:[#allocation4 + $0x3e0] sm:$0xf] }
 0x20e   : > { %9472 = vst [vmem:[#allocation124_spill] sm:$0xff] %v7832_v35  ;;  %v6523_v43 = vld [vmem:[#allocation4 + $0x40c] sm:$0xf0]  ;;  %v6488_v9 = vld [vmem:[#allocation4 + $0x2f4] sm:$0xf0] }
 0x20f   : > { %2517 = vmatpush.bf16.msra.mxu2 %v7818_v27  ;;  %2530 = vmatpush.bf16.msra.mxu3 %v7820_v2  ;;  %9473 = vst [vmem:[#allocation125_spill] sm:$0xff] %v7836_v37  ;;  %v5219_v27 = vld [vmem:[#allocation4 + $0x170] sm:$0xf0]  ;;  %v7856_v32 = vor.u32 %v6523_v43, %v5553_v0  ;;  %v6403_v43 = vld [vmem:[#allocation4 + $0x4c] sm:$0xf0] }
 0x210   : > { %2543 = vmatpush.bf16.msrb.mxu0 %v7824_v44  ;;  %2556 = vmatpush.bf16.msrb.mxu1 %v7826_v51  ;;  %9474 = vst [vmem:[#allocation126_spill] sm:$0xff] %v7838_v26  ;;  %v5603_v2 = vld [vmem:[#allocation4 + $0x470] sm:$0xf0]  ;;  %v7848_v50 = vor.u32 %v6433_v12, %v5219_v27  ;;  %v6421_v51 = vld [vmem:[#allocation4 + $0xe4] sm:$0xf] }
 0x211   : > { %9475 = vst [vmem:[#allocation127_spill] sm:$0xff] %v7842_v31  ;;  %v7850_v55 = vor.u32 %v6529_v24, %v5603_v2  ;;  %v6517_v44 = vld [vmem:[#allocation4 + $0x3e4] sm:$0xf]  ;;  %v5505_v27 = vld [vmem:[#allocation4 + $0x380] sm:$0xf] }
 0x212   : > { %9476 = vst [vmem:[#allocation128_spill] sm:$0xff] %v7844_v40  ;;  %v6511_v2 = vld [vmem:[#allocation4 + $0x3ac] sm:$0xf0]  ;;  %v5801_v61 = vld [vmem:[#allocation4 + $0x5c8] sm:$0xf] }
 0x213   : > { %2518 = vmatpush.bf16.msra.mxu2 %v7830_v16  ;;  %2531 = vmatpush.bf16.msra.mxu3 %v7832_v35  ;;  %9477 = vst [vmem:[#allocation129_spill] sm:$0xff] %v7848_v50  ;;  %v5171_v16 = vld [vmem:[#allocation4 + $0x110] sm:$0xf0]  ;;  %v7868_v0 = vor.u32 %v6511_v2, %v5505_v27  ;;  %v6584_v27 = vld [vmem:[#allocation4 + $0x5f4] sm:$0xf0] }
 0x214   : > { %2544 = vmatpush.bf16.msrb.mxu0 %v7836_v37  ;;  %2557 = vmatpush.bf16.msrb.mxu1 %v7838_v26  ;;  %9478 = vst [vmem:[#allocation130_spill] sm:$0xff] %v7850_v55  ;;  %v5555_v35 = vld [vmem:[#allocation4 + $0x410] sm:$0xf0]  ;;  %v7860_v24 = vor.u32 %v6421_v51, %v5171_v16  ;;  %v6409_v26 = vld [vmem:[#allocation4 + $0x84] sm:$0xf] }
 0x215   : > { %9479 = vst [vmem:[#allocation131_spill] sm:$0xff] %v7854_v3  ;;  %v7862_v12 = vor.u32 %v6517_v44, %v5555_v35  ;;  %v6505_v37 = vld [vmem:[#allocation4 + $0x384] sm:$0xf]  ;;  %v5457_v51 = vld [vmem:[#allocation4 + $0x320] sm:$0xf] }
 0x216   : > { %9480 = vst [vmem:[#allocation132_spill] sm:$0xff] %v7856_v32  ;;  %v6499_v16 = vld [vmem:[#allocation4 + $0x34c] sm:$0xf0]  ;;  %v6482_v2 = vld [vmem:[#allocation4 + $0x2cc] sm:$0xf] }
 0x217   : > { %2519 = vmatpush.bf16.msra.mxu2 %v7842_v31  ;;  %2532 = vmatpush.bf16.msra.mxu3 %v7844_v40  ;;  %9481 = vst [vmem:[#allocation133_spill] sm:$0xff] %v7860_v24  ;;  %v5123_v31 = vld [vmem:[#allocation4 + $0xb0] sm:$0xf0]  ;;  %v6572_v57 = vld [vmem:[#allocation4 + $0x594] sm:$0xf0] }
 0x218   : > { %2545 = vmatpush.bf16.msrb.mxu0 %v7848_v50  ;;  %2558 = vmatpush.bf16.msrb.mxu1 %v7850_v55  ;;  %9482 = vst [vmem:[#allocation134_spill] sm:$0xff] %v7862_v12  ;;  %v5507_v40 = vld [vmem:[#allocation4 + $0x3b0] sm:$0xf0]  ;;  %v7872_v44 = vor.u32 %v6409_v26, %v5123_v31  ;;  %v6397_v55 = vld [vmem:[#allocation4 + $0x24] sm:$0xf] }
 0x219   : > { %9483 = vst [vmem:[#allocation135_spill] sm:$0xff] %v7866_v58  ;;  %v7874_v35 = vor.u32 %v6505_v37, %v5507_v40  ;;  %v5075_v50 = vld [vmem:[#allocation4 + $0x50] sm:$0xf0]  ;;  %v5419_v26 = vld [vmem:[#allocation4 + $0x2f8] sm:$0xf0] }
 0x21a   : > { %9484 = vst [vmem:[#allocation136_spill] sm:$0xff] %v7868_v0  ;;  %v6578_v37 = vld [vmem:[#allocation4 + $0x5cc] sm:$0xf]  ;;  %v5803_v31 = vld [vmem:[#allocation4 + $0x5f8] sm:$0xf0]  ;;  %v7884_v40 = vor.u32 %v6397_v55, %v5075_v50 }
 0x21b   : > { %2520 = vmatpush.bf16.msra.mxu2 %v7854_v3  ;;  %2533 = vmatpush.bf16.msra.mxu3 %v7856_v32  ;;  %v6493_v3 = vld [vmem:[#allocation4 + $0x324] sm:$0xf]  ;;  %v5417_v32 = vld [vmem:[#allocation4 + $0x2c8] sm:$0xf]  ;;  %v6470_v17 = vld [vmem:[#allocation4 + $0x26c] sm:$0xf] }
 0x21c   : > { %2546 = vmatpush.bf16.msrb.mxu0 %v7860_v24  ;;  %2559 = vmatpush.bf16.msrb.mxu1 %v7862_v12  ;;  %v7878_v24 = vor.u32 %v6403_v43, %v5073_v23  ;;  %v7880_v12 = vor.u32 %v6499_v16, %v5457_v51  ;;  %v7886_v59 = vor.u32 %v6493_v3, %v5459_v30  ;;  %v6476_v23 = vld [vmem:[#allocation4 + $0x294] sm:$0xf0]  ;;  %v5753_v16 = vld [vmem:[#allocation4 + $0x568] sm:$0xf]  ;;  %v5371_v50 = vld [vmem:[#allocation4 + $0x298] sm:$0xf0] }
 0x21d   : > { %v7888_v36 = vor.u32 %v6488_v9, %v5417_v32  ;;  %v7892_v43 = vor.u32 %v6482_v2, %v5419_v26  ;;  %v7894_v51 = vor.u32 %v6578_v37, %v5803_v31  ;;  %v6566_v30 = vld [vmem:[#allocation4 + $0x56c] sm:$0xf]  ;;  %v5755_v55 = vld [vmem:[#allocation4 + $0x598] sm:$0xf0]  ;;  %v7904_v32 = vor.u32 %v6572_v57, %v5753_v16  ;;  %v5321_v9 = vld [vmem:[#allocation4 + $0x208] sm:$0xf] }
 0x21e   : > { %9485 = vst [vmem:[#allocation137_spill] sm:$0xff] %v7886_v59  ;;  %v7910_v2 = vor.u32 %v6566_v30, %v5755_v55  ;;  %v5705_v26 = vld [vmem:[#allocation4 + $0x508] sm:$0xf]  ;;  %v6560_v37 = vld [vmem:[#allocation4 + $0x534] sm:$0xf0] }
 0x21f   : > { %2521 = vmatpush.bf16.msra.mxu2 %v7866_v58  ;;  %2534 = vmatpush.bf16.msra.mxu3 %v7868_v0  ;;  %9486 = vst [vmem:[#allocation138_spill] sm:$0xff] %v7888_v36  ;;  %v7890_v58 = vor.u32 %v6584_v27, %v5801_v61  ;;  %v5369_v0 = vld [vmem:[#allocation4 + $0x268] sm:$0xf]  ;;  %v6464_v61 = vld [vmem:[#allocation4 + $0x234] sm:$0xf0]  ;;  %v7908_v27 = vor.u32 %v6470_v17, %v5371_v50 }
 0x220   : > { %2547 = vmatpush.bf16.msrb.mxu0 %v7872_v44  ;;  %2560 = vmatpush.bf16.msrb.mxu1 %v7874_v35  ;;  %9488 = vst [vmem:[#allocation140_spill] sm:$0xff] %v7892_v43  ;;  %v7902_v3 = vor.u32 %v6476_v23, %v5369_v0  ;;  %v6458_v31 = vld [vmem:[#allocation4 + $0x20c] sm:$0xf]  ;;  %v5323_v0 = vld [vmem:[#allocation4 + $0x238] sm:$0xf0]  ;;  %v7918_v17 = vor.u32 %v6464_v61, %v5321_v9 }
 0x221   : > { %9487 = vst [vmem:[#allocation139_spill] sm:$0xff] %v7890_v58  ;;  %v6554_v57 = vld [vmem:[#allocation4 + $0x50c] sm:$0xf]  ;;  %v5707_v23 = vld [vmem:[#allocation4 + $0x538] sm:$0xf0]  ;;  %v7920_v16 = vor.u32 %v6560_v37, %v5705_v26  ;;  %v7924_v55 = vor.u32 %v6458_v31, %v5323_v0 }
 0x222   : > { %9489 = vst [vmem:[#allocation141_spill] sm:$0xff] %v7894_v51  ;;  %v5273_v50 = vld [vmem:[#allocation4 + $0x1a8] sm:$0xf]  ;;  %v6452_v30 = vld [vmem:[#allocation4 + $0x1d4] sm:$0xf0] }
 0x223   : > { %2522 = vmatpush.bf16.msra.mxu2 %v7878_v24  ;;  %2535 = vmatpush.bf16.msra.mxu3 %v7880_v12  ;;  %9490 = vst [vmem:[#allocation142_spill] sm:$0xff] %v7902_v3  ;;  %v7930_v9 = vor.u32 %v6452_v30, %v5273_v50  ;;  %v5225_v26 = vld [vmem:[#allocation4 + $0x148] sm:$0xf]  ;;  %v6440_v37 = vld [vmem:[#allocation4 + $0x174] sm:$0xf0] }
 0x224   : > { %2548 = vmatpush.bf16.msrb.mxu0 %v7884_v40  ;;  %2561 = vmatpush.bf16.msrb.mxu1 %v7886_v59  ;;  %9491 = vst [vmem:[#allocation143_spill] sm:$0xff] %v7904_v32  ;;  %v6542_v59 = vld [vmem:[#allocation4 + $0x4ac] sm:$0xf]  ;;  %v5177_v50 = vld [vmem:[#allocation4 + $0xe8] sm:$0xf] }
 0x225   : > { %9492 = vst [vmem:[#allocation144_spill] sm:$0xff] %v7908_v27  ;;  %v6428_v30 = vld [vmem:[#allocation4 + $0x114] sm:$0xf0] }
 0x226   : > { %9493 = vst [vmem:[#allocation145_spill] sm:$0xff] %v7910_v2  ;;  %2523 = vmatmul.bf16.vlgmr.msra.gmra.mxu2 %v7582_v52  ;;  %2536 = vmatmul.bf16.vlgmr.msra.gmra.mxu3 %v7586_v54 }
 0x227   : > { %2567 = vmatpush.bf16.msrb.mxu2 %v7888_v36  ;;  %2580 = vmatpush.bf16.msrb.mxu3 %v7890_v58  ;;  %9494 = vst [vmem:[#allocation146_spill] sm:$0xff] %v7918_v17  ;;  %v6548_v58 = vld [vmem:[#allocation4 + $0x4d4] sm:$0xf0]  ;;  %v6446_v36 = vld [vmem:[#allocation4 + $0x1ac] sm:$0xf] }
 0x228   : > { %2593 = vmatpush.bf16.msra.mxu0 %v7892_v43  ;;  %2606 = vmatpush.bf16.msra.mxu1 %v7894_v51  ;;  %9495 = vst [vmem:[#allocation147_spill] sm:$0xff] %v7920_v16  ;;  %v7926_v51 = vor.u32 %v6554_v57, %v5707_v23  ;;  %v5657_v43 = vld [vmem:[#allocation4 + $0x4a8] sm:$0xf]  ;;  %v6536_v23 = vld [vmem:[#allocation4 + $0x474] sm:$0xf0] }
 0x229   : > { %2549 = vmatmul.bf16.vlgmr.msrb.gmra.mxu0 %v7582_v52  ;;  %2562 = vmatmul.bf16.vlgmr.msrb.gmra.mxu1 %v7586_v54  ;;  %9496 = vst [vmem:[#allocation148_spill] sm:$0xff] %v7924_v55  ;;  %v7932_v61 = vor.u32 %v6548_v58, %v5657_v43  ;;  %v5609_v57 = vld [vmem:[#allocation4 + $0x448] sm:$0xf]  ;;  %v7942_v58 = vor.u32 %v6440_v37, %v5225_v26 }
 0x22a   : > { %9497 = vst [vmem:[#allocation149_spill] sm:$0xff] %v7926_v51  ;;  %v7944_v43 = vor.u32 %v6536_v23, %v5609_v57  ;;  %v7954_v26 = vor.u32 %v6428_v30, %v5177_v50  ;;  %v5129_v57 = vld [vmem:[#allocation4 + $0x88] sm:$0xf]  ;;  %v6416_v23 = vld [vmem:[#allocation4 + $0xb4] sm:$0xf0] }
 0x22b   : > { %2568 = vmatpush.bf16.msrb.mxu2 %v7902_v3  ;;  %2581 = vmatpush.bf16.msrb.mxu3 %v7904_v32  ;;  %v5275_v3 = vld [vmem:[#allocation4 + $0x1d8] sm:$0xf0]  ;;  %9498 = vst [vmem:[#allocation150_spill] sm:$0xff] %v7930_v9  ;;  %v7966_v50 = vor.u32 %v6416_v23, %v5129_v57 }
 0x22c   : > { %2594 = vmatpush.bf16.msra.mxu0 %v7908_v27  ;;  %2607 = vmatpush.bf16.msra.mxu1 %v7910_v2  ;;  %v5659_v32 = vld [vmem:[#allocation4 + $0x4d8] sm:$0xf0]  ;;  %9499 = vst [vmem:[#allocation151_spill] sm:$0xff] %v7932_v61  ;;  %v7936_v31 = vor.u32 %v6446_v36, %v5275_v3  ;;  %v6434_v2 = vld [vmem:[#allocation4 + $0x14c] sm:$0xf] }
 0x22d   : > { %v7938_v0 = vor.u32 %v6542_v59, %v5659_v32  ;;  %v6530_v27 = vld [vmem:[#allocation4 + $0x44c] sm:$0xf]  ;;  %9502 = vst [vmem:[#allocation154_spill] sm:$0xff] %v7942_v58  ;;  %v5561_v3 = vld [vmem:[#allocation4 + $0x3e8] sm:$0xf] }
 0x22e   : > { %9500 = vst [vmem:[#allocation152_spill] sm:$0xff] %v7936_v31  ;;  %v6524_v32 = vld [vmem:[#allocation4 + $0x414] sm:$0xf0] }
 0x22f   : > { %2569 = vmatpush.bf16.msrb.mxu2 %v7918_v17  ;;  %2582 = vmatpush.bf16.msrb.mxu3 %v7920_v16  ;;  %9501 = vst [vmem:[#allocation153_spill] sm:$0xff] %v7938_v0  ;;  %v5227_v17 = vld [vmem:[#allocation4 + $0x178] sm:$0xf0]  ;;  %v7956_v37 = vor.u32 %v6524_v32, %v5561_v3  ;;  %v5081_v3 = vld [vmem:[#allocation4 + $0x28] sm:$0xf] }
 0x230   : > { %2595 = vmatpush.bf16.msra.mxu0 %v7924_v55  ;;  %2608 = vmatpush.bf16.msra.mxu1 %v7926_v51  ;;  %v5611_v16 = vld [vmem:[#allocation4 + $0x478] sm:$0xf0]  ;;  %9503 = vst [vmem:[#allocation155_spill] sm:$0xff] %v7944_v43  ;;  %v7948_v36 = vor.u32 %v6434_v2, %v5227_v17  ;;  %v6422_v51 = vld [vmem:[#allocation4 + $0xec] sm:$0xf] }
 0x231   : > { %v7950_v59 = vor.u32 %v6530_v27, %v5611_v16  ;;  %v6518_v55 = vld [vmem:[#allocation4 + $0x3ec] sm:$0xf]  ;;  %9506 = vst [vmem:[#allocation158_spill] sm:$0xff] %v7954_v26  ;;  %v5513_v17 = vld [vmem:[#allocation4 + $0x388] sm:$0xf] }
 0x232   : > { %9504 = vst [vmem:[#allocation156_spill] sm:$0xff] %v7948_v36  ;;  %v6512_v16 = vld [vmem:[#allocation4 + $0x3b4] sm:$0xf0] }
 0x233   : > { %2570 = vmatpush.bf16.msrb.mxu2 %v7930_v9  ;;  %2583 = vmatpush.bf16.msrb.mxu3 %v7932_v61  ;;  %9505 = vst [vmem:[#allocation157_spill] sm:$0xff] %v7950_v59  ;;  %v5179_v9 = vld [vmem:[#allocation4 + $0x118] sm:$0xf0]  ;;  %v7968_v30 = vor.u32 %v6512_v16, %v5513_v17  ;;  %v6404_v32 = vld [vmem:[#allocation4 + $0x54] sm:$0xf0] }
 0x234   : > { %2596 = vmatpush.bf16.msra.mxu0 %v7936_v31  ;;  %2609 = vmatpush.bf16.msra.mxu1 %v7938_v0  ;;  %v5563_v61 = vld [vmem:[#allocation4 + $0x418] sm:$0xf0]  ;;  %9507 = vst [vmem:[#allocation159_spill] sm:$0xff] %v7956_v37  ;;  %v7960_v27 = vor.u32 %v6422_v51, %v5179_v9  ;;  %v6410_v0 = vld [vmem:[#allocation4 + $0x8c] sm:$0xf]  ;;  %v7978_v57 = vor.u32 %v6404_v32, %v5081_v3 }
 0x235   : > { %v7962_v2 = vor.u32 %v6518_v55, %v5563_v61  ;;  %v6506_v31 = vld [vmem:[#allocation4 + $0x38c] sm:$0xf]  ;;  %9509 = vst [vmem:[#allocation161_spill] sm:$0xff] %v7966_v50  ;;  %v5465_v9 = vld [vmem:[#allocation4 + $0x328] sm:$0xf] }
 0x236   : > { %9510 = vst [vmem:[#allocation162_spill] sm:$0xff] %v7968_v30  ;;  %v6500_v61 = vld [vmem:[#allocation4 + $0x354] sm:$0xf0] }
 0x237   : > { %2571 = vmatpush.bf16.msrb.mxu2 %v7942_v58  ;;  %2584 = vmatpush.bf16.msrb.mxu3 %v7944_v43  ;;  %9508 = vst [vmem:[#allocation160_spill] sm:$0xff] %v7962_v2  ;;  %v5131_v58 = vld [vmem:[#allocation4 + $0xb8] sm:$0xf0]  ;;  %v7980_v23 = vor.u32 %v6500_v61, %v5465_v9 }
 0x238   : > { %2597 = vmatpush.bf16.msra.mxu0 %v7948_v36  ;;  %2610 = vmatpush.bf16.msra.mxu1 %v7950_v59  ;;  %v5515_v43 = vld [vmem:[#allocation4 + $0x3b8] sm:$0xf0]  ;;  %v7972_v51 = vor.u32 %v6410_v0, %v5131_v58  ;;  %v6398_v59 = vld [vmem:[#allocation4 + $0x2c] sm:$0xf]  ;;  %9513 = vst [vmem:[#allocation165_spill] sm:$0xff] %v7978_v57 }
 0x239   : > { %v7974_v55 = vor.u32 %v6506_v31, %v5515_v43  ;;  %v6494_v36 = vld [vmem:[#allocation4 + $0x32c] sm:$0xf]  ;;  %9514 = vst [vmem:[#allocation166_spill] sm:$0xff] %v7980_v23  ;;  %v7993_v58 = vld [vmem:[%s9027_s8] sm:$0xff] }
 0x23a   : > { %9511 = vst [vmem:[#allocation163_spill] sm:$0xff] %v7972_v51  ;;  %v9194_v43 = vperm.slane %v7993_v58, 1 }
 0x23b   : > { %2572 = vmatpush.bf16.msrb.mxu2 %v7954_v26  ;;  %2585 = vmatpush.bf16.msrb.mxu3 %v7956_v37  ;;  %9512 = vst [vmem:[#allocation164_spill] sm:$0xff] %v7974_v55  ;;  %v5083_v26 = vld [vmem:[#allocation4 + $0x58] sm:$0xf0] }
 0x23c   : > { %2598 = vmatpush.bf16.msra.mxu0 %v7960_v27  ;;  %2611 = vmatpush.bf16.msra.mxu1 %v7962_v2  ;;  %v5467_v37 = vld [vmem:[#allocation4 + $0x358] sm:$0xf0]  ;;  %v7984_v31 = vor.u32 %v6398_v59, %v5083_v26  ;;  %9517 = vst [vmem:[#allocation169_spill] sm:$0xff] %v7993_v58 }
 0x23d   : > { %v7986_v0 = vor.u32 %v6494_v36, %v5467_v37  ;;  %v9198_v37 = vperm.slane %v7993_v58, 0 }
 0x23e   : > { %9515 = vst [vmem:[#allocation167_spill] sm:$0xff] %v7984_v31 }
 0x23f   : > { %2573 = vmatpush.bf16.msrb.mxu2 %v7966_v50  ;;  %2586 = vmatpush.bf16.msrb.mxu3 %v7968_v30  ;;  %9516 = vst [vmem:[#allocation168_spill] sm:$0xff] %v7986_v0 }
 0x240   : > { %2599 = vmatpush.bf16.msra.mxu0 %v7972_v51  ;;  %2612 = vmatpush.bf16.msra.mxu1 %v7974_v55 }
 0x243   : > { %2574 = vmatpush.bf16.msrb.mxu2 %v7978_v57  ;;  %2587 = vmatpush.bf16.msrb.mxu3 %v7980_v23  ;;  %v2342_v36 = vpop.f32.mrf.mxu0  ;;  %v2355_v59 = vpop.f32.mrf.mxu1 }
 0x244   : > { %2600 = vmatpush.bf16.msra.mxu0 %v7984_v31  ;;  %2613 = vmatpush.bf16.msra.mxu1 %v7986_v0  ;;  %v2343_v26 = vadd.f32 %v2342_v36, %v9194_v43  ;;  %v9197_v36 = vperm.slane %v7993_v58, 2 }
 0x246   : > { %2575 = vmatmul.bf16.vlgmr.msrb.gmra.mxu2 %v7582_v52  ;;  %2588 = vmatmul.bf16.vlgmr.msrb.gmra.mxu3 %v7586_v54  ;;  %v2356_v17 = vadd.f32 %v2355_v59, %v2343_v26 }
 0x247   : > { %2601 = vmatmul.bf16.vlgmr.msra.gmra.mxu0 %v7582_v52  ;;  %2614 = vmatmul.bf16.vlgmr.msra.gmra.mxu1 %v7586_v54 }
 0x248   : > { %v2620_v16 = vpack.c.bf16 %v2356_v17, %v2356_v17  ;;  %v2316_v3 = vpop.f32.mrf.mxu2  ;;  %v2329_v32 = vpop.f32.mrf.mxu3 }
 0x249   : > { %v2317_v9 = vadd.f32 %v2316_v3, %v9198_v37  ;;  %v9201_v37 = vperm.slane %v7993_v58, 7 }
 0x24a   : > { %2629 = vmatpush.bf16.xpose.msra.mxu2 %v2620_v16 }
 0x24b   : > { %v2330_v61 = vadd.f32 %v2329_v32, %v2317_v9  ;;  %v2344_v0 = vpop.f32.mrf.mxu0  ;;  %v2357_v52 = vpop.f32.mrf.mxu1 }
 0x24d   : > { %v2619_v31 = vpack.c.bf16 %v2330_v61, %v2330_v61 }
 0x250   : > { %v2318_v54 = vpop.f32.mrf.mxu2  ;;  %v2331_v23 = vpop.f32.mrf.mxu3 }
 0x251   : > { %v9196_v23 = vperm.slane %v7993_v58, 5  ;;  %v9205_v54 = vperm.slane %v7993_v58, 4 }
 0x253   : > { %v2394_v57 = vpop.f32.mrf.mxu0  ;;  %v2407_v55 = vpop.f32.mrf.mxu1 }
 0x256   : > { %2630 = vmatmul.bf16.vlgmr.msra.gmra.mxu2 %v2619_v31 }
 0x258   : > { %v2368_v43 = vpop.f32.mrf.mxu2  ;;  %v2381_v59 = vpop.f32.mrf.mxu3 }
 0x259   : > { %v2369_v26 = vadd.f32 %v2368_v43, %v9197_v36 }
 0x25b   : > { %v2382_v17 = vadd.f32 %v2381_v59, %v2369_v26  ;;  %v2396_v51 = vpop.f32.mrf.mxu0  ;;  %v2409_v3 = vpop.f32.mrf.mxu1 }
 0x25c   : > { %v9203_v51 = vperm.slane %v7993_v58, 3 }
 0x25d   : > { %v2621_v16 = vpack.c.bf16 %v2382_v17, %v2382_v17 }
 0x25f   : > { %v2658_v0 = vsel %vm2656_vm4, %v2621_v16, 0 }
 0x260   : > { %v2370_v32 = vpop.f32.mrf.mxu2  ;;  %v2383_v9 = vpop.f32.mrf.mxu3  ;;  %2667 = vmatpush.bf16.msra.mxu3 %v2658_v0 }
 0x266   : > { %v2446_v31 = vpop.f32.mrf.mxu0  ;;  %v2459_v61 = vpop.f32.mrf.mxu1 }
 0x267   : > { %v2447_v52 = vadd.f32 %v2446_v31, %v9196_v23  ;;  %v2395_v31 = vadd.f32 %v2394_v57, %v9203_v51 }
 0x269   : > { %v2460_v43 = vadd.f32 %v2459_v61, %v2447_v52  ;;  %v2420_v26 = vpop.f32.mrf.mxu2  ;;  %v2433_v17 = vpop.f32.mrf.mxu3  ;;  %v2408_v61 = vadd.f32 %v2407_v55, %v2395_v31 }
 0x26a   : > { %v2421_v3 = vadd.f32 %v2420_v26, %v9205_v54  ;;  %v6814_v54 = vld [vmem:[%s7262_s7] ss:$0 sm:$0xff] }
 0x26b   : > { %v2676_v59 = vpack.c.bf16 %v2460_v43, %v2460_v43  ;;  %v2674_v43 = vpack.c.bf16 %v2408_v61, %v2408_v61 }
 0x26c   : > { %v2434_v0 = vadd.f32 %v2433_v17, %v2421_v3  ;;  %v9200_v17 = vperm.slane %v7993_v58, 6 }
 0x26d   : > { %v2708_v16 = vsel %vm2656_vm4, %v2676_v59, 0 }
 0x26e   : > { %v2448_v32 = vpop.f32.mrf.mxu0  ;;  %v2461_v9 = vpop.f32.mrf.mxu1  ;;  %2717 = vmatpush.bf16.msrb.mxu3 %v2708_v16  ;;  %v2675_v23 = vpack.c.bf16 %v2434_v0, %v2434_v0 }
 0x270   : > { %2684 = vmatpush.bf16.xpose.msrb.mxu2 %v2675_v23 }
 0x271   : > { %v2422_v52 = vpop.f32.mrf.mxu2  ;;  %v2435_v36 = vpop.f32.mrf.mxu3 }
 0x277   : > { %2685 = vmatmul.bf16.vlgmr.msrb.gmra.mxu2 %v2674_v43 }
 0x286   : > { %v2498_v30 = vpop.f32.mrf.mxu0  ;;  %v2511_v26 = vpop.f32.mrf.mxu1 }
 0x287   : > { %v2499_v59 = vadd.f32 %v2498_v30, %v9201_v37  ;;  %v8030_v30 = vld [vmem:[%s9027_s8 + $0x8] sm:$0xf] }
 0x288   : > { %9518 = vst [vmem:[#allocation170_spill] sm:$0xff] %v8030_v30 }
 0x289   : > { %v2512_v3 = vadd.f32 %v2511_v26, %v2499_v59  ;;  %v2472_v32 = vpop.f32.mrf.mxu2  ;;  %v2485_v57 = vpop.f32.mrf.mxu3  ;;  %v9202_v26 = vperm.slane %v8030_v30, 0 }
 0x28a   : > { %v2473_v55 = vadd.f32 %v2472_v32, %v9200_v17  ;;  %v9211_v17 = vperm.slane %v8030_v30, 2 }
 0x28b   : > { %v2725_v16 = vpack.c.bf16 %v2512_v3, %v2512_v3 }
 0x28c   : > { %v2486_v36 = vadd.f32 %v2485_v57, %v2473_v55 }
 0x28d   : > { %2734 = vmatpush.bf16.xpose.msra.mxu2 %v2725_v16 }
 0x28e   : > { %v2500_v23 = vpop.f32.mrf.mxu0  ;;  %v2513_v0 = vpop.f32.mrf.mxu1  ;;  %v2724_v9 = vpack.c.bf16 %v2486_v36, %v2486_v36 }
 0x28f   : > { %v9204_v0 = vperm.slane %v8030_v30, 3 }
 0x291   : > { %v2474_v31 = vpop.f32.mrf.mxu2  ;;  %v2487_v61 = vpop.f32.mrf.mxu3 }
 0x294   : > { %2735 = vmatmul.bf16.vlgmr.msra.gmra.mxu2 %v2724_v9 }
 0x2a6   : > { %v2550_v52 = vpop.f32.mrf.mxu0  ;;  %v2563_v43 = vpop.f32.mrf.mxu1 }
 0x2a9   : > { %v2524_v59 = vpop.f32.mrf.mxu2  ;;  %v2537_v3 = vpop.f32.mrf.mxu3 }
 0x2aa   : > { %v2525_v16 = vadd.f32 %v2524_v59, %v9202_v26  ;;  %v9210_v59 = vperm.slane %v8030_v30, 1  ;;  %v6626_v30 = vld [vmem:[#allocation6 + $0x144] sm:$0xf0] }
 0x2ac   : > { %v8035_v32 = vadd.f32 %v2537_v3, %v2525_v16  ;;  %v2551_v26 = vadd.f32 %v2550_v52, %v9210_v59 }
 0x2ae   : > { %v2552_v57 = vpop.f32.mrf.mxu0  ;;  %v2565_v55 = vpop.f32.mrf.mxu1 }
 0x2b1   : > { %v2526_v36 = vpop.f32.mrf.mxu2  ;;  %v2539_v23 = vpop.f32.mrf.mxu3 }
 0x2c4   : > { %v2602_v9 = vpop.f32.mrf.mxu0  ;;  %v2615_v31 = vpop.f32.mrf.mxu1 }
 0x2c5   : > { %v2603_v61 = vadd.f32 %v2602_v9, %v9204_v0  ;;  %v2564_v9 = vadd.f32 %v2563_v43, %v2551_v26 }
 0x2c7   : > { %v8041_v37 = vadd.f32 %v2615_v31, %v2603_v61  ;;  %v2774_v61 = vpack.c.bf16 %v2564_v9, %v2564_v9 }
 0x2c9   : > { %v2576_v3 = vpop.f32.mrf.mxu2  ;;  %v2589_v16 = vpop.f32.mrf.mxu3 }
 0x2ca   : > { %v2577_v57 = vadd.f32 %v2576_v3, %v9211_v17  ;;  %v5925_v17 = vld [vmem:[#allocation6 + $0xe0] sm:$0xf] }
 0x2cc   : > { %v2590_v55 = vadd.f32 %v2589_v16, %v2577_v57  ;;  %v2604_v36 = vpop.f32.mrf.mxu0  ;;  %v2617_v23 = vpop.f32.mrf.mxu1 }
 0x2ce   : > { %v2775_v51 = vpack.c.bf16 %v2590_v55, %v2590_v55 }
 0x2d0   : > { %2784 = vmatpush.bf16.xpose.msrb.mxu2 %v2775_v51 }
 0x2d1   : > { %v2578_v0 = vpop.f32.mrf.mxu2  ;;  %v2591_v31 = vpop.f32.mrf.mxu3 }
 0x2d7   : > { %2785 = vmatmul.bf16.vlgmr.msrb.gmra.mxu2 %v2774_v61 }
 0x2d9   : > { %v2631_v58 = vpop.f32.mrf.mxu2 }
 0x2da   : > { %v2635_v50 = vmul.f32 0.125, %v2631_v58 }
 0x2dc   : > { %v2639_v2 = vadd.f32 %v6814_v54, %v2635_v50 }
 0x2de   : > { %v2641_v3 = vsel %vm2640_vm5, %v2639_v2, -inf }
 0x2df   : > { %2642 = vmax.xlane.f32.xlu1 %v2641_v3 }
 0x2e1   : > { %v2633_v16 = vpop.f32.mrf.mxu2 }
 0x2fa   : > { %v2686_v57 = vpop.f32.mrf.mxu2 }
 0x2fb   : > { %v2690_v36 = vmul.f32 0.125, %v2686_v57 }
 0x2fd   : > { %v2691_v23 = vadd.f32 %v6814_v54, %v2690_v36 }
 0x2ff   : > { %v2692_v52 = vsel %vm2640_vm5, %v2691_v23, -inf }
 0x300   : > { %2693 = vmax.xlane.f32.xlu1 %v2692_v52 }
 0x302   : > { %v2688_v51 = vpop.f32.mrf.mxu2 }
 0x317   : > { %v2736_v43 = vpop.f32.mrf.mxu2 }
 0x318   : > { %v2740_v26 = vmul.f32 0.125, %v2736_v43 }
 0x31a   : > { %v2741_v0 = vadd.f32 %v6814_v54, %v2740_v26 }
 0x31c   : > { %v2742_v55 = vsel %vm2640_vm5, %v2741_v0, -inf }
 0x31d   : > { %2743 = vmax.xlane.f32.xlu2 %v2742_v55 }
 0x31f   : > { %v2738_v58 = vpop.f32.mrf.mxu2 }
 0x352   : > { %v2643_v9 = vpop.xlane.xlu1 %2642 }
 0x353   : > { %v2644_v50 = vsub.f32 %v2639_v2, %v2643_v9 }
 0x355   : > { %v2645_v31 = vmul.f32 1.442695, %v2644_v50 }
 0x357   : > { %6822 = vpow2.f32 %v2645_v31 }
 0x35a   : > { %v2786_v61 = vpop.f32.mrf.mxu2 }
 0x35b   : > { %v2790_v3 = vmul.f32 0.125, %v2786_v61 }
 0x35d   : > { %v2791_v16 = vadd.f32 %v6814_v54, %v2790_v3  ;;  %v6823_v57 = vpop.eup %6822 }
 0x35e   : > { %v2647_v52 = vsel %vm2640_vm5, %v6823_v57, 0.0 }
 0x35f   : > { %v2792_v36 = vsel %vm2640_vm5, %v2791_v16, -inf  ;;  %2648 = vadd.xlane.f32.xlu0 %v2647_v52 }
 0x360   : > { %2793 = vmax.xlane.f32.xlu2 %v2792_v36 }
 0x362   : > { %v2788_v51 = vpop.f32.mrf.mxu2 }
 0x373   : > { %v2694_v43 = vpop.xlane.xlu1 %2693 }
 0x374   : > { %v2695_v26 = vsub.f32 %v2691_v23, %v2694_v43 }
 0x376   : > { %v2696_v59 = vmul.f32 1.442695, %v2695_v26 }
 0x378   : > { %6824 = vpow2.f32 %v2696_v59  ;;  %v2726_v59 = vpack.c.bf16 %v8035_v32, %v8035_v32  ;;  %v6598_v32 = vld [vmem:[#allocation6 + $0x64] sm:$0xf0] }
 0x37e   : > { %v6825_v55 = vpop.eup %6824 }
 0x37f   : > { %v2698_v2 = vsel %vm2640_vm5, %v6825_v55, 0.0 }
 0x380   : > { %2699 = vadd.xlane.f32.xlu1 %v2698_v2 }
 0x390   : > { %v2744_v58 = vpop.xlane.xlu2 %2743 }
 0x391   : > { %v2745_v9 = vsub.f32 %v2741_v0, %v2744_v58  ;;  %v2758_v0 = vsel %vm2656_vm4, %v2726_v59, 0  ;;  %v5869_v58 = vld [vmem:[#allocation6 + $0x70] sm:$0xf] }
 0x393   : > { %v2746_v50 = vmul.f32 1.442695, %v2745_v9  ;;  %v6600_v9 = vld [vmem:[#allocation6 + $0x74] sm:$0xf0] }
 0x395   : > { %6826 = vpow2.f32 %v2746_v50  ;;  %v5861_v50 = vld [vmem:[#allocation6 + $0x60] sm:$0xf] }
 0x39b   : > { %v6827_v54 = vpop.eup %6826 }
 0x39c   : > { %v2748_v31 = vsel %vm2640_vm5, %v6827_v54, 0.0 }
 0x39d   : > { %2749 = vadd.xlane.f32.xlu2 %v2748_v31  ;;  %v8064_v31 = vor.u32 %v6600_v9, %v5869_v58  ;;  %v5829_v9 = vld [vmem:[#allocation6 + $0x20] sm:$0xf] }
 0x39f   : > { %3157 = vmatpush.bf16.msrb.mxu0 %v8064_v31 }
 0x3d2   : > { %v2649_v3 = vpop.xlane.xlu0 %2648 }
 0x3d3   : > { %v2794_v61 = vpop.xlane.xlu2 %2793  ;;  %6828 = vrcp.f32 %v2649_v3 }
 0x3d4   : > { %v2795_v36 = vsub.f32 %v2791_v16, %v2794_v61  ;;  %v2776_v61 = vpack.c.bf16 %v8041_v37, %v8041_v37 }
 0x3d6   : > { %v2796_v52 = vmul.f32 1.442695, %v2795_v36  ;;  %v8069_v36 = vor.u32 %v6598_v32, %v5861_v50  ;;  %v6590_v50 = vld [vmem:[#allocation6 + $0x24] sm:$0xf0] }
 0x3d7   : > { %v8083_v32 = vor.u32 %v6590_v50, %v5829_v9  ;;  %v5871_v9 = vld [vmem:[#allocation6 + $0x78] sm:$0xf0] }
 0x3d8   : > { %6830 = vpow2.f32 %v2796_v52  ;;  %v5853_v52 = vld [vmem:[#allocation6 + $0x50] sm:$0xf]  ;;  %3158 = vmatpush.bf16.msrb.mxu0 %v8069_v36 }
 0x3d9   : > { %v6829_v23 = vpop.eup %6828  ;;  %9522 = vst [vmem:[#allocation174_spill] sm:$0xff] %v8083_v32 }
 0x3da   : > { %v2651_v51 = vmul.f32 %v6829_v23, %v6823_v57  ;;  %v6596_v23 = vld [vmem:[#allocation6 + $0x54] sm:$0xf0] }
 0x3dc   : > { %v2652_v43 = vpack.c.bf16 %v2651_v51, %v2651_v51  ;;  %v2808_v51 = vsel %vm2656_vm4, %v2776_v61, 0 }
 0x3de   : > { %v8058_v26 = vpop.eup %6830  ;;  %5807 = vmatmul.msk.bf16.vlgmr.msra.gmra.mxu3 %vm2640_vm5, %v2652_v43  ;;  %v8074_v43 = vor.u32 %v6596_v23, %v5853_v52  ;;  %v5821_v23 = vld [vmem:[#allocation6 + $0x10] sm:$0xf] }
 0x3df   : > { %v2798_v2 = vsel %vm2640_vm5, %v8058_v26, 0.0  ;;  %2767 = vmatpush.bf16.msra.mxu3 %v2758_v0  ;;  %v5845_v0 = vld [vmem:[#allocation6 + $0x40] sm:$0xf] }
 0x3e0   : > { %2799 = vadd.xlane.f32.xlu0 %v2798_v2  ;;  %9519 = vst [vmem:[#allocation171_spill] sm:$0xff] %v8074_v43  ;;  %v6594_v2 = vld [vmem:[#allocation6 + $0x44] sm:$0xf0]  ;;  %3159 = vmatpush.bf16.msrb.mxu0 %v8074_v43 }
 0x3e1   : > { %v8077_v37 = vor.u32 %v6594_v2, %v5845_v0  ;;  %v5813_v0 = vld [vmem:[#allocation6] sm:$0xf]  ;;  %v6586_v2 = vld [vmem:[#allocation6 + $0x4] sm:$0xf0] }
 0x3e3   : > { %9520 = vst [vmem:[#allocation172_spill] sm:$0xff] %v8077_v37 }
 0x3e4   : > { %3160 = vmatpush.bf16.msrb.mxu0 %v8077_v37 }
 0x3f3   : > { %v2700_v16 = vpop.xlane.xlu1 %2699 }
 0x3f4   : > { %6832 = vrcp.f32 %v2700_v16  ;;  %v6592_v16 = vld [vmem:[#allocation6 + $0x34] sm:$0xf0] }
 0x3fa   : > { %v6833_v57 = vpop.eup %6832 }
 0x3fb   : > { %v2702_v3 = vmul.f32 %v6833_v57, %v6825_v55  ;;  %v5837_v55 = vld [vmem:[#allocation6 + $0x30] sm:$0xf] }
 0x3fc   : > { %v8080_v58 = vor.u32 %v6592_v16, %v5837_v55  ;;  %v8090_v55 = vor.u32 %v6586_v2, %v5813_v0  ;;  %v6599_v16 = vld [vmem:[#allocation6 + $0x74] sm:$0xf]  ;;  %v6616_v0 = vld [vmem:[#allocation6 + $0xf4] sm:$0xf0] }
 0x3fd   : > { %v2703_v59 = vpack.c.bf16 %v2702_v3, %v2702_v3  ;;  %v8092_v50 = vor.u32 %v6599_v16, %v5871_v9  ;;  %v6593_v16 = vld [vmem:[#allocation6 + $0x44] sm:$0xf]  ;;  %v5847_v9 = vld [vmem:[#allocation6 + $0x48] sm:$0xf0] }
 0x3fe   : > { %9521 = vst [vmem:[#allocation173_spill] sm:$0xff] %v8080_v58  ;;  %3161 = vmatpush.bf16.msrb.mxu0 %v8080_v58  ;;  %v5973_v58 = vld [vmem:[#allocation6 + $0x140] sm:$0xf] }
 0x3ff   : > { %5808 = vmatmul.msk.bf16.vlgmr.msrb.gmra.mxu3 %vm2640_vm5, %v2703_v59  ;;  %v6588_v59 = vld [vmem:[#allocation6 + $0x14] sm:$0xf0]  ;;  %9524 = vst [vmem:[#allocation176_spill] sm:$0xff] %v8090_v55 }
 0x400   : > { %2817 = vmatpush.bf16.msrb.mxu3 %v2808_v51  ;;  %v8087_v51 = vor.u32 %v6588_v59, %v5821_v23  ;;  %9525 = vst [vmem:[#allocation177_spill] sm:$0xff] %v8092_v50  ;;  %v5933_v23 = vld [vmem:[#allocation6 + $0xf0] sm:$0xf] }
 0x401   : > { %v8101_v2 = vor.u32 %v6616_v0, %v5933_v23  ;;  %v6589_v0 = vld [vmem:[#allocation6 + $0x24] sm:$0xf] }
 0x402   : > { %3162 = vmatpush.bf16.msrb.mxu0 %v8083_v32  ;;  %9523 = vst [vmem:[#allocation175_spill] sm:$0xff] %v8087_v51  ;;  %v5901_v32 = vld [vmem:[#allocation6 + $0xb0] sm:$0xf] }
 0x403   : > { %9528 = vst [vmem:[#allocation180_spill] sm:$0xff] %v8101_v2  ;;  %3170 = vmatpush.bf16.msrb.mxu1 %v8101_v2  ;;  %v5831_v2 = vld [vmem:[#allocation6 + $0x28] sm:$0xf0] }
 0x406   : > { %3163 = vmatpush.bf16.msrb.mxu0 %v8087_v51  ;;  %v5917_v51 = vld [vmem:[#allocation6 + $0xd0] sm:$0xf] }
 0x40a   : > { %3164 = vmatpush.bf16.msrb.mxu0 %v8090_v55  ;;  %v5839_v55 = vld [vmem:[#allocation6 + $0x38] sm:$0xf0] }
 0x40e   : > { %3209 = vmatpush.bf16.msra.mxu0 %v8092_v50  ;;  %v8105_v50 = vor.u32 %v6593_v16, %v5847_v9  ;;  %v6610_v16 = vld [vmem:[#allocation6 + $0xc4] sm:$0xf0]  ;;  %v6587_v9 = vld [vmem:[#allocation6 + $0x14] sm:$0xf] }
 0x410   : > { %v2750_v57 = vpop.xlane.xlu2 %2749  ;;  %9529 = vst [vmem:[#allocation181_spill] sm:$0xff] %v8105_v50 }
 0x411   : > { %6834 = vrcp.f32 %v2750_v57  ;;  %v5863_v57 = vld [vmem:[#allocation6 + $0x68] sm:$0xf0] }
 0x417   : > { %v6835_v61 = vpop.eup %6834 }
 0x418   : > { %v2752_v3 = vmul.f32 %v6835_v61, %v6827_v54  ;;  %v6597_v54 = vld [vmem:[#allocation6 + $0x64] sm:$0xf] }
 0x419   : > { %v8096_v61 = vor.u32 %v6597_v54, %v5863_v57  ;;  %v6614_v54 = vld [vmem:[#allocation6 + $0xe4] sm:$0xf0] }
 0x41a   : > { %v2753_v52 = vpack.c.bf16 %v2752_v3, %v2752_v3  ;;  %v6595_v3 = vld [vmem:[#allocation6 + $0x54] sm:$0xf]  ;;  %v8107_v57 = vor.u32 %v6614_v54, %v5925_v17  ;;  %v8117_v17 = vor.u32 %v6589_v0, %v5831_v2  ;;  %v5815_v0 = vld [vmem:[#allocation6 + $0x8] sm:$0xf0] }
 0x41b   : > { %9526 = vst [vmem:[#allocation178_spill] sm:$0xff] %v8096_v61  ;;  %3210 = vmatpush.bf16.msra.mxu0 %v8096_v61  ;;  %v6591_v61 = vld [vmem:[#allocation6 + $0x34] sm:$0xf] }
 0x41c   : > { %5809 = vmatmul.msk.bf16.vlgmr.msra.gmra.mxu3 %vm2640_vm5, %v2753_v52  ;;  %v5855_v52 = vld [vmem:[#allocation6 + $0x58] sm:$0xf0]  ;;  %9530 = vst [vmem:[#allocation182_spill] sm:$0xff] %v8107_v57  ;;  %3171 = vmatpush.bf16.msrb.mxu1 %v8107_v57  ;;  %v6608_v57 = vld [vmem:[#allocation6 + $0xb4] sm:$0xf0] }
 0x41d   : > { %v8099_v59 = vor.u32 %v6595_v3, %v5855_v52  ;;  %v6612_v3 = vld [vmem:[#allocation6 + $0xd4] sm:$0xf0]  ;;  %v8111_v52 = vor.u32 %v6591_v61, %v5839_v55  ;;  %9533 = vst [vmem:[#allocation185_spill] sm:$0xff] %v8117_v17  ;;  %v5997_v55 = vld [vmem:[#allocation6 + $0x170] sm:$0xf] }
 0x41e   : > { %v8113_v23 = vor.u32 %v6612_v3, %v5917_v51  ;;  %v6632_v61 = vld [vmem:[#allocation6 + $0x174] sm:$0xf0]  ;;  %v8125_v3 = vor.u32 %v6608_v57, %v5901_v32  ;;  %v5885_v32 = vld [vmem:[#allocation6 + $0x90] sm:$0xf]  ;;  %v5989_v57 = vld [vmem:[#allocation6 + $0x160] sm:$0xf] }
 0x41f   : > { %9527 = vst [vmem:[#allocation179_spill] sm:$0xff] %v8099_v59  ;;  %3211 = vmatpush.bf16.msra.mxu0 %v8099_v59  ;;  %v5909_v59 = vld [vmem:[#allocation6 + $0xc0] sm:$0xf]  ;;  %v8127_v2 = vor.u32 %v6632_v61, %v5997_v55 }
 0x420   : > { %9531 = vst [vmem:[#allocation183_spill] sm:$0xff] %v8111_v52  ;;  %3172 = vmatpush.bf16.msrb.mxu1 %v8113_v23  ;;  %v8119_v54 = vor.u32 %v6610_v16, %v5909_v59  ;;  %v6606_v59 = vld [vmem:[#allocation6 + $0xa4] sm:$0xf0] }
 0x421   : > { %9532 = vst [vmem:[#allocation184_spill] sm:$0xff] %v8113_v23  ;;  %v6585_v23 = vld [vmem:[#allocation6 + $0x4] sm:$0xf]  ;;  %3183 = vmatpush.bf16.msra.mxu2 %v8127_v2 }
 0x422   : > { %9534 = vst [vmem:[#allocation186_spill] sm:$0xff] %v8119_v54 }
 0x423   : > { %3212 = vmatpush.bf16.msra.mxu0 %v8105_v50  ;;  %v5823_v50 = vld [vmem:[#allocation6 + $0x18] sm:$0xf0]  ;;  %9536 = vst [vmem:[#allocation188_spill] sm:$0xff] %v8125_v3 }
 0x424   : > { %3173 = vmatpush.bf16.msrb.mxu1 %v8119_v54  ;;  %v8123_v51 = vor.u32 %v6587_v9, %v5823_v50  ;;  %9537 = vst [vmem:[#allocation189_spill] sm:$0xff] %v8127_v2  ;;  %v6604_v50 = vld [vmem:[#allocation6 + $0x94] sm:$0xf0]  ;;  %v6630_v9 = vld [vmem:[#allocation6 + $0x164] sm:$0xf0] }
 0x425   : > { %v8138_v55 = vor.u32 %v6604_v50, %v5885_v32  ;;  %v8140_v61 = vor.u32 %v6630_v9, %v5989_v57  ;;  %v5877_v2 = vld [vmem:[#allocation6 + $0x80] sm:$0xf]  ;;  %v6613_v9 = vld [vmem:[#allocation6 + $0xe4] sm:$0xf] }
 0x426   : > { %9535 = vst [vmem:[#allocation187_spill] sm:$0xff] %v8123_v51 }
 0x427   : > { %3213 = vmatpush.bf16.msra.mxu0 %v8111_v52  ;;  %v5893_v52 = vld [vmem:[#allocation6 + $0xa0] sm:$0xf]  ;;  %9540 = vst [vmem:[#allocation192_spill] sm:$0xff] %v8138_v55  ;;  %3184 = vmatpush.bf16.msra.mxu2 %v8140_v61 }
 0x428   : > { %3174 = vmatpush.bf16.msrb.mxu1 %v8125_v3  ;;  %v8134_v54 = vor.u32 %v6606_v59, %v5893_v52  ;;  %9541 = vst [vmem:[#allocation193_spill] sm:$0xff] %v8140_v61  ;;  %v6602_v3 = vld [vmem:[#allocation6 + $0x84] sm:$0xf0]  ;;  %v6615_v52 = vld [vmem:[#allocation6 + $0xf4] sm:$0xf]  ;;  %v8152_v61 = vor.u32 %v6626_v30, %v5973_v58 }
 0x429   : > { %v8147_v32 = vor.u32 %v6602_v3, %v5877_v2  ;;  %v6611_v3 = vld [vmem:[#allocation6 + $0xd4] sm:$0xf] }
 0x42a   : > { %9539 = vst [vmem:[#allocation191_spill] sm:$0xff] %v8134_v54 }
 0x42b   : > { %3214 = vmatpush.bf16.msra.mxu0 %v8117_v17  ;;  %v8132_v17 = vor.u32 %v6585_v23, %v5815_v0  ;;  %v6628_v23 = vld [vmem:[#allocation6 + $0x154] sm:$0xf0]  ;;  %v5935_v0 = vld [vmem:[#allocation6 + $0xf8] sm:$0xf0]  ;;  %9543 = vst [vmem:[#allocation195_spill] sm:$0xff] %v8147_v32 }
 0x42c   : > { %3175 = vmatpush.bf16.msrb.mxu1 %v8134_v54  ;;  %v8149_v50 = vor.u32 %v6615_v52, %v5935_v0  ;;  %v5927_v54 = vld [vmem:[#allocation6 + $0xe8] sm:$0xf0]  ;;  %9545 = vst [vmem:[#allocation197_spill] sm:$0xff] %v8152_v61 }
 0x42d   : > { %9538 = vst [vmem:[#allocation190_spill] sm:$0xff] %v8132_v17 }
 0x42e   : > { %9544 = vst [vmem:[#allocation196_spill] sm:$0xff] %v8149_v50 }
 0x42f   : > { %3215 = vmatpush.bf16.msra.mxu0 %v8123_v51  ;;  %v5981_v51 = vld [vmem:[#allocation6 + $0x150] sm:$0xf] }
 0x430   : > { %v8143_v59 = vor.u32 %v6628_v23, %v5981_v51  ;;  %3176 = vmatpush.bf16.msrb.mxu1 %v8138_v55  ;;  %v5965_v51 = vld [vmem:[#allocation6 + $0x130] sm:$0xf]  ;;  %v6624_v23 = vld [vmem:[#allocation6 + $0x134] sm:$0xf0]  ;;  %v5999_v55 = vld [vmem:[#allocation6 + $0x178] sm:$0xf0] }
 0x431   : > { %v8160_v2 = vor.u32 %v6624_v23, %v5965_v51  ;;  %v6607_v23 = vld [vmem:[#allocation6 + $0xb4] sm:$0xf] }
 0x432   : > { %9542 = vst [vmem:[#allocation194_spill] sm:$0xff] %v8143_v59  ;;  %3185 = vmatpush.bf16.msra.mxu2 %v8143_v59 }
 0x433   : > { %3216 = vmatpush.bf16.msra.mxu0 %v8132_v17  ;;  %9547 = vst [vmem:[#allocation199_spill] sm:$0xff] %v8160_v2 }
 0x434   : > { %3177 = vmatpush.bf16.msrb.mxu1 %v8147_v32  ;;  %v5949_v32 = vld [vmem:[#allocation6 + $0x110] sm:$0xf] }
 0x436   : > { %3186 = vmatpush.bf16.msra.mxu2 %v8152_v61 }
 0x438   : > { %3222 = vmatpush.bf16.msra.mxu1 %v8149_v50  ;;  %v6622_v50 = vld [vmem:[#allocation6 + $0x124] sm:$0xf0] }
 0x43a   : > { %3187 = vmatpush.bf16.msra.mxu2 %v8160_v2 }
 0x453   : > { %v2800_v16 = vpop.xlane.xlu0 %2799 }
 0x454   : > { %6836 = vrcp.f32 %v2800_v16 }
 0x45a   : > { %v6837_v16 = vpop.eup %6836 }
 0x45b   : > { %v2802_v17 = vmul.f32 %v6837_v16, %v8058_v26  ;;  %v8157_v26 = vor.u32 %v6613_v9, %v5927_v54  ;;  %v6609_v54 = vld [vmem:[#allocation6 + $0xc4] sm:$0xf]  ;;  %v5911_v16 = vld [vmem:[#allocation6 + $0xc8] sm:$0xf0] }
 0x45c   : > { %v8167_v9 = vor.u32 %v6609_v54, %v5911_v16  ;;  %v5895_v54 = vld [vmem:[#allocation6 + $0xa8] sm:$0xf0]  ;;  %v5941_v16 = vld [vmem:[#allocation6 + $0x100] sm:$0xf] }
 0x45d   : > { %v2803_v57 = vpack.c.bf16 %v2802_v17, %v2802_v17  ;;  %9546 = vst [vmem:[#allocation198_spill] sm:$0xff] %v8157_v26  ;;  %v5919_v17 = vld [vmem:[#allocation6 + $0xd8] sm:$0xf0]  ;;  %3223 = vmatpush.bf16.msra.mxu1 %v8157_v26  ;;  %v6631_v26 = vld [vmem:[#allocation6 + $0x174] sm:$0xf] }
 0x45e   : > { %v8163_v30 = vor.u32 %v6611_v3, %v5919_v17  ;;  %9549 = vst [vmem:[#allocation201_spill] sm:$0xff] %v8167_v9  ;;  %v6620_v17 = vld [vmem:[#allocation6 + $0x114] sm:$0xf0] }
 0x45f   : > { %5810 = vmatmul.msk.bf16.vlgmr.msrb.gmra.mxu3 %vm2640_vm5, %v2803_v57  ;;  %v5957_v57 = vld [vmem:[#allocation6 + $0x120] sm:$0xf] }
 0x460   : > { %9548 = vst [vmem:[#allocation200_spill] sm:$0xff] %v8163_v30  ;;  %v8169_v51 = vor.u32 %v6622_v50, %v5957_v57  ;;  %v6618_v57 = vld [vmem:[#allocation6 + $0x104] sm:$0xf0] }
 0x461   : > { %v2669_v52 = vpop.f32.mrf.mxu3  ;;  %3224 = vmatpush.bf16.msra.mxu1 %v8163_v30  ;;  %v8175_v30 = vor.u32 %v6620_v17, %v5949_v32  ;;  %v6629_v32 = vld [vmem:[#allocation6 + $0x164] sm:$0xf]  ;;  %v5991_v17 = vld [vmem:[#allocation6 + $0x168] sm:$0xf0] }
 0x462   : > { %v2828_v0 = vpack.c.bf16 %v2669_v52, %v2669_v52  ;;  %9550 = vst [vmem:[#allocation202_spill] sm:$0xff] %v8169_v51  ;;  %v5903_v52 = vld [vmem:[#allocation6 + $0xb8] sm:$0xf0]  ;;  %3188 = vmatpush.bf16.msra.mxu2 %v8169_v51 }
 0x463   : > { %v8172_v3 = vor.u32 %v6607_v23, %v5903_v52  ;;  %9552 = vst [vmem:[#allocation204_spill] sm:$0xff] %v8175_v30  ;;  %v8183_v23 = vor.u32 %v6631_v26, %v5999_v55  ;;  %v6603_v52 = vld [vmem:[#allocation6 + $0x94] sm:$0xf]  ;;  %v5887_v51 = vld [vmem:[#allocation6 + $0x98] sm:$0xf0] }
 0x464   : > { %3165 = vmatmul.bf16.vlgmr.msrb.gmra.mxu0 %v2828_v0  ;;  %v5983_v55 = vld [vmem:[#allocation6 + $0x158] sm:$0xf0] }
 0x465   : > { %3225 = vmatpush.bf16.msra.mxu1 %v8167_v9  ;;  %9551 = vst [vmem:[#allocation203_spill] sm:$0xff] %v8172_v3  ;;  %v8181_v9 = vor.u32 %v6618_v57, %v5941_v16  ;;  %v6627_v16 = vld [vmem:[#allocation6 + $0x154] sm:$0xf]  ;;  %v5975_v57 = vld [vmem:[#allocation6 + $0x148] sm:$0xf0] }
 0x466   : > { %3189 = vmatpush.bf16.msra.mxu2 %v8175_v30  ;;  %9555 = vst [vmem:[#allocation207_spill] sm:$0xff] %v8183_v23  ;;  %v8190_v30 = vor.u32 %v6629_v32, %v5991_v17  ;;  %v6623_v32 = vld [vmem:[#allocation6 + $0x134] sm:$0xf]  ;;  %v5967_v17 = vld [vmem:[#allocation6 + $0x138] sm:$0xf0] }
 0x467   : > { %9554 = vst [vmem:[#allocation206_spill] sm:$0xff] %v8181_v9 }
 0x468   : > { %9557 = vst [vmem:[#allocation209_spill] sm:$0xff] %v8190_v30 }
 0x469   : > { %v2671_v58 = vpop.f32.mrf.mxu3  ;;  %3226 = vmatpush.bf16.msra.mxu1 %v8172_v3  ;;  %v8186_v3 = vor.u32 %v6603_v52, %v5887_v51  ;;  %v6625_v51 = vld [vmem:[#allocation6 + $0x144] sm:$0xf] }
 0x46a   : > { %v6605_v58 = vld [vmem:[#allocation6 + $0xa4] sm:$0xf]  ;;  %3190 = vmatpush.bf16.msra.mxu2 %v8181_v9  ;;  %v8200_v52 = vor.u32 %v6625_v51, %v5975_v57 }
 0x46b   : > { %v8179_v50 = vor.u32 %v6605_v58, %v5895_v54  ;;  %9556 = vst [vmem:[#allocation208_spill] sm:$0xff] %v8186_v3  ;;  %v6601_v58 = vld [vmem:[#allocation6 + $0x84] sm:$0xf]  ;;  %v5879_v54 = vld [vmem:[#allocation6 + $0x88] sm:$0xf0] }
 0x46c   : > { %v8193_v26 = vor.u32 %v6601_v58, %v5879_v54  ;;  %9560 = vst [vmem:[#allocation212_spill] sm:$0xff] %v8200_v52  ;;  %v6621_v58 = vld [vmem:[#allocation6 + $0x124] sm:$0xf]  ;;  %v5959_v54 = vld [vmem:[#allocation6 + $0x128] sm:$0xf0] }
 0x46d   : > { %9553 = vst [vmem:[#allocation205_spill] sm:$0xff] %v8179_v50  ;;  %3227 = vmatpush.bf16.msra.mxu1 %v8179_v50  ;;  %v8203_v50 = vor.u32 %v6623_v32, %v5967_v17  ;;  %v6617_v57 = vld [vmem:[#allocation6 + $0x104] sm:$0xf] }
 0x46e   : > { %3235 = vmatpush.bf16.msrb.mxu2 %v8183_v23  ;;  %9558 = vst [vmem:[#allocation210_spill] sm:$0xff] %v8193_v26 }
 0x46f   : > { %9561 = vst [vmem:[#allocation213_spill] sm:$0xff] %v8203_v50 }
 0x471   : > { %3228 = vmatpush.bf16.msra.mxu1 %v8186_v3  ;;  %v6619_v3 = vld [vmem:[#allocation6 + $0x114] sm:$0xf] }
 0x472   : > { %3236 = vmatpush.bf16.msrb.mxu2 %v8190_v30  ;;  %v6646_v30 = vld [vmem:[#allocation6 + $0x1e4] sm:$0xf0] }
 0x474   : > { %3217 = vmatmul.bf16.vlgmr.msra.gmra.mxu0 %v2828_v0  ;;  %v8196_v0 = vor.u32 %v6627_v16, %v5983_v55  ;;  %v8206_v55 = vor.u32 %v6621_v58, %v5959_v54  ;;  %v6648_v58 = vld [vmem:[#allocation6 + $0x1f4] sm:$0xf0]  ;;  %v6053_v54 = vld [vmem:[#allocation6 + $0x1e0] sm:$0xf] }
 0x475   : > { %3229 = vmatpush.bf16.msra.mxu1 %v8193_v26 }
 0x476   : > { %9559 = vst [vmem:[#allocation211_spill] sm:$0xff] %v8196_v0  ;;  %3237 = vmatpush.bf16.msrb.mxu2 %v8196_v0  ;;  %v5951_v0 = vld [vmem:[#allocation6 + $0x118] sm:$0xf0] }
 0x477   : > { %9562 = vst [vmem:[#allocation214_spill] sm:$0xff] %v8206_v55  ;;  %v8209_v51 = vor.u32 %v6619_v3, %v5951_v0  ;;  %v8218_v3 = vor.u32 %v6646_v30, %v6053_v54  ;;  %v6045_v0 = vld [vmem:[#allocation6 + $0x1d0] sm:$0xf]  ;;  %v6638_v54 = vld [vmem:[#allocation6 + $0x1a4] sm:$0xf0] }
 0x479   : > { %9563 = vst [vmem:[#allocation215_spill] sm:$0xff] %v8209_v51 }
 0x47a   : > { %3238 = vmatpush.bf16.msrb.mxu2 %v8200_v52  ;;  %v5943_v52 = vld [vmem:[#allocation6 + $0x108] sm:$0xf0]  ;;  %9566 = vst [vmem:[#allocation218_spill] sm:$0xff] %v8218_v3 }
 0x47b   : > { %v8212_v32 = vor.u32 %v6617_v57, %v5943_v52  ;;  %v6037_v57 = vld [vmem:[#allocation6 + $0x1c0] sm:$0xf] }
 0x47d   : > { %9564 = vst [vmem:[#allocation216_spill] sm:$0xff] %v8212_v32 }
 0x47e   : > { %3239 = vmatpush.bf16.msrb.mxu2 %v8203_v50  ;;  %v6061_v50 = vld [vmem:[#allocation6 + $0x1f0] sm:$0xf] }
 0x482   : > { %v2719_v16 = vpop.f32.mrf.mxu3  ;;  %3240 = vmatpush.bf16.msrb.mxu2 %v8206_v55  ;;  %v6644_v55 = vld [vmem:[#allocation6 + $0x1d4] sm:$0xf0] }
 0x483   : > { %v2829_v26 = vpack.c.bf16 %v2719_v16, %v2719_v16  ;;  %v8215_v16 = vor.u32 %v6648_v58, %v6061_v50  ;;  %v8221_v52 = vor.u32 %v6644_v55, %v6045_v0  ;;  %v6029_v50 = vld [vmem:[#allocation6 + $0x1b0] sm:$0xf]  ;;  %v6640_v58 = vld [vmem:[#allocation6 + $0x1b4] sm:$0xf0] }
 0x484   : > { %v8227_v30 = vor.u32 %v6640_v58, %v6029_v50  ;;  %v6013_v0 = vld [vmem:[#allocation6 + $0x190] sm:$0xf] }
 0x485   : > { %3178 = vmatmul.bf16.vlgmr.msrb.gmra.mxu1 %v2829_v26  ;;  %9565 = vst [vmem:[#allocation217_spill] sm:$0xff] %v8215_v16  ;;  %3196 = vmatpush.bf16.msra.mxu3 %v8215_v16  ;;  %v6647_v16 = vld [vmem:[#allocation6 + $0x1f4] sm:$0xf] }
 0x486   : > { %3241 = vmatpush.bf16.msrb.mxu2 %v8209_v51  ;;  %9567 = vst [vmem:[#allocation219_spill] sm:$0xff] %v8221_v52 }
 0x487   : > { %9569 = vst [vmem:[#allocation221_spill] sm:$0xff] %v8227_v30 }
 0x489   : > { %3197 = vmatpush.bf16.msra.mxu3 %v8218_v3  ;;  %v6636_v3 = vld [vmem:[#allocation6 + $0x194] sm:$0xf0] }
 0x48a   : > { %v2721_v17 = vpop.f32.mrf.mxu3  ;;  %3242 = vmatpush.bf16.msrb.mxu2 %v8212_v32 }
 0x48b   : > { %v6642_v17 = vld [vmem:[#allocation6 + $0x1c4] sm:$0xf0] }
 0x48c   : > { %v8224_v32 = vor.u32 %v6642_v17, %v6037_v57  ;;  %v8233_v57 = vor.u32 %v6636_v3, %v6013_v0  ;;  %v6005_v17 = vld [vmem:[#allocation6 + $0x180] sm:$0xf]  ;;  %v6643_v3 = vld [vmem:[#allocation6 + $0x1d4] sm:$0xf] }
 0x48d   : > { %3198 = vmatpush.bf16.msra.mxu3 %v8221_v52 }
 0x48e   : > { %9568 = vst [vmem:[#allocation220_spill] sm:$0xff] %v8224_v32 }
 0x48f   : > { %9571 = vst [vmem:[#allocation223_spill] sm:$0xff] %v8233_v57 }
 0x491   : > { %3199 = vmatpush.bf16.msra.mxu3 %v8224_v32  ;;  %v6063_v32 = vld [vmem:[#allocation6 + $0x1f8] sm:$0xf0] }
 0x492   : > { %v8238_v58 = vor.u32 %v6647_v16, %v6063_v32  ;;  %v6039_v32 = vld [vmem:[#allocation6 + $0x1c8] sm:$0xf0] }
 0x494   : > { %9573 = vst [vmem:[#allocation225_spill] sm:$0xff] %v8238_v58 }
 0x495   : > { %3230 = vmatmul.bf16.vlgmr.msra.gmra.mxu1 %v2829_v26  ;;  %v6021_v26 = vld [vmem:[#allocation6 + $0x1a0] sm:$0xf]  ;;  %3200 = vmatpush.bf16.msra.mxu3 %v8227_v30  ;;  %v6645_v30 = vld [vmem:[#allocation6 + $0x1e4] sm:$0xf] }
 0x496   : > { %v8230_v55 = vor.u32 %v6638_v54, %v6021_v26  ;;  %v6055_v26 = vld [vmem:[#allocation6 + $0x1e8] sm:$0xf0]  ;;  %v6047_v54 = vld [vmem:[#allocation6 + $0x1d8] sm:$0xf0] }
 0x497   : > { %v8245_v0 = vor.u32 %v6643_v3, %v6047_v54  ;;  %v6635_v3 = vld [vmem:[#allocation6 + $0x194] sm:$0xf]  ;;  %v6015_v54 = vld [vmem:[#allocation6 + $0x198] sm:$0xf0] }
 0x498   : > { %9570 = vst [vmem:[#allocation222_spill] sm:$0xff] %v8230_v55 }
 0x499   : > { %3201 = vmatpush.bf16.msra.mxu3 %v8230_v55  ;;  %9575 = vst [vmem:[#allocation227_spill] sm:$0xff] %v8245_v0 }
 0x49d   : > { %3202 = vmatpush.bf16.msra.mxu3 %v8233_v57 }
 0x49f   : > { %v2769_v51 = vpop.f32.mrf.mxu3 }
 0x4a0   : > { %v2830_v23 = vpack.c.bf16 %v2769_v51, %v2769_v51  ;;  %v6634_v51 = vld [vmem:[#allocation6 + $0x184] sm:$0xf0] }
 0x4a1   : > { %v8236_v50 = vor.u32 %v6634_v51, %v6005_v17  ;;  %v6641_v17 = vld [vmem:[#allocation6 + $0x1c4] sm:$0xf]  ;;  %v6639_v51 = vld [vmem:[#allocation6 + $0x1b4] sm:$0xf] }
 0x4a2   : > { %3191 = vmatmul.bf16.vlgmr.msra.gmra.mxu2 %v2830_v23  ;;  %v8248_v16 = vor.u32 %v6641_v17, %v6039_v32  ;;  %v6633_v17 = vld [vmem:[#allocation6 + $0x184] sm:$0xf]  ;;  %v6007_v32 = vld [vmem:[#allocation6 + $0x188] sm:$0xf0] }
 0x4a3   : > { %9572 = vst [vmem:[#allocation224_spill] sm:$0xff] %v8236_v50  ;;  %3203 = vmatpush.bf16.msra.mxu3 %v8236_v50 }
 0x4a4   : > { %9576 = vst [vmem:[#allocation228_spill] sm:$0xff] %v8248_v16 }
 0x4a7   : > { %v2771_v52 = vpop.f32.mrf.mxu3  ;;  %3248 = vmatpush.bf16.msrb.mxu3 %v8238_v58 }
 0x4a8   : > { %v8242_v52 = vor.u32 %v6645_v30, %v6055_v26  ;;  %v6637_v30 = vld [vmem:[#allocation6 + $0x1a4] sm:$0xf]  ;;  %v6023_v26 = vld [vmem:[#allocation6 + $0x1a8] sm:$0xf0] }
 0x4a9   : > { %v8254_v58 = vor.u32 %v6637_v30, %v6023_v26 }
 0x4aa   : > { %9574 = vst [vmem:[#allocation226_spill] sm:$0xff] %v8242_v52 }
 0x4ab   : > { %3249 = vmatpush.bf16.msrb.mxu3 %v8242_v52  ;;  %9578 = vst [vmem:[#allocation230_spill] sm:$0xff] %v8254_v58 }
 0x4af   : > { %3250 = vmatpush.bf16.msrb.mxu3 %v8245_v0  ;;  %v8257_v0 = vor.u32 %v6635_v3, %v6015_v54  ;;  %v8266_v3 = vld [vmem:[%s9029_s10] sm:$0x3] }
 0x4b0   : > { %9581 = vst [vmem:[#allocation233_spill] sm:$0xff] %v8266_v3  ;;  %v9276_v54 = vperm.slane %v8266_v3, 0 }
 0x4b1   : > { %9579 = vst [vmem:[#allocation231_spill] sm:$0xff] %v8257_v0 }
 0x4b2   : > { %3243 = vmatmul.bf16.vlgmr.msrb.gmra.mxu2 %v2830_v23  ;;  %v6031_v23 = vld [vmem:[#allocation6 + $0x1b8] sm:$0xf0] }
 0x4b3   : > { %3251 = vmatpush.bf16.msrb.mxu3 %v8248_v16  ;;  %v8251_v50 = vor.u32 %v6639_v51, %v6031_v23  ;;  %v8260_v16 = vor.u32 %v6633_v17, %v6007_v32 }
 0x4b5   : > { %9577 = vst [vmem:[#allocation229_spill] sm:$0xff] %v8251_v50 }
 0x4b6   : > { %9580 = vst [vmem:[#allocation232_spill] sm:$0xff] %v8260_v16 }
 0x4b7   : > { %3252 = vmatpush.bf16.msrb.mxu3 %v8251_v50 }
 0x4bb   : > { %3253 = vmatpush.bf16.msrb.mxu3 %v8254_v58 }
 0x4bf   : > { %3254 = vmatpush.bf16.msrb.mxu3 %v8257_v0 }
 0x4c3   : > { %3255 = vmatpush.bf16.msrb.mxu3 %v8260_v16 }
 0x4e1   : > { %v3166_v23 = vpop.f32.mrf.mxu0 }
 0x4e2   : > { %v2819_v51 = vpop.f32.mrf.mxu3  ;;  %v3167_v17 = vadd.f32 %v3166_v23, %v9276_v54 }
 0x4e3   : > { %v2831_v50 = vpack.c.bf16 %v2819_v51, %v2819_v51  ;;  %v9279_v51 = vperm.slane %v8266_v3, 1 }
 0x4e5   : > { %3204 = vmatmul.bf16.vlgmr.msra.gmra.mxu3 %v2831_v50 }
 0x4e9   : > { %v3168_v26 = vpop.f32.mrf.mxu0 }
 0x4ea   : > { %v2821_v30 = vpop.f32.mrf.mxu3 }
 0x4f1   : > { %v3218_v52 = vpop.f32.mrf.mxu0 }
 0x4f2   : > { %v3219_v30 = vadd.f32 %v3218_v52, %v9279_v51 }
 0x4f5   : > { %3256 = vmatmul.bf16.vlgmr.msrb.gmra.mxu3 %v2831_v50 }
 0x4f9   : > { %v3220_v57 = vpop.f32.mrf.mxu0 }
 0x502   : > { %v3179_v32 = vpop.f32.mrf.mxu1 }
 0x503   : > { %v3180_v16 = vadd.f32 %v3179_v32, %v3167_v17 }
 0x50a   : > { %v3181_v0 = vpop.f32.mrf.mxu1 }
 0x512   : > { %v3231_v50 = vpop.f32.mrf.mxu1 }
 0x513   : > { %v3232_v57 = vadd.f32 %v3231_v50, %v3219_v30  ;;  %v7061_v30 = vmov 256.0   ;;  %v6125_v50 = vld [vmem:[#allocation8 + $0x70] sm:$0xf] }
 0x514   : > { %6838 = vrcp.f32 %v7061_v30 }
 0x51a   : > { %v3233_v26 = vpop.f32.mrf.mxu1 }
 0x525   : > { %v3192_v58 = vpop.f32.mrf.mxu2 }
 0x526   : > { %v3193_v55 = vadd.f32 %v3192_v58, %v3180_v16  ;;  %v6664_v58 = vld [vmem:[#allocation8 + $0x74] sm:$0xf0] }
 0x527   : > { %v8276_v16 = vor.u32 %v6664_v58, %v6125_v50 }
 0x529   : > { %3476 = vmatpush.bf16.msrb.mxu0 %v8276_v16 }
 0x52d   : > { %v3194_v9 = vpop.f32.mrf.mxu2 }
 0x52e   : > { %v6189_v9 = vld [vmem:[#allocation8 + $0xf0] sm:$0xf] }
 0x535   : > { %v3244_v2 = vpop.f32.mrf.mxu2 }
 0x536   : > { %v3245_v43 = vadd.f32 %v3244_v2, %v3232_v57  ;;  %v6127_v2 = vld [vmem:[#allocation8 + $0x78] sm:$0xf0] }
 0x53d   : > { %v3246_v61 = vpop.f32.mrf.mxu2 }
 0x53e   : > { %v6680_v61 = vld [vmem:[#allocation8 + $0xf4] sm:$0xf0] }
 0x568   : > { %v3205_v59 = vpop.f32.mrf.mxu3 }
 0x569   : > { %v3206_v23 = vadd.f32 %v3205_v59, %v3193_v55  ;;  %v6839_v59 = vpop.eup %6838  ;;  %v8278_v55 = vor.u32 %v6680_v61, %v6189_v9 }
 0x56a   : > { %vm3271_vm6 = vweird.f32 %v6839_v59 }
 0x56b   : > { %v3261_v0 = vadd.f32 %v3206_v23, %v7576_v49  ;;  %9582 = vst [vmem:[#allocation234_spill] sm:$0xff] %v8278_v55  ;;  %v6679_v49 = vld [vmem:[#allocation8 + $0xf4] sm:$0xf]  ;;  %3489 = vmatpush.bf16.msrb.mxu1 %v8278_v55 }
 0x570   : > { %v3207_v37 = vpop.f32.mrf.mxu3 }
 0x571   : > { %v6663_v37 = vld [vmem:[#allocation8 + $0x74] sm:$0xf] }
 0x578   : > { %v3257_v54 = vpop.f32.mrf.mxu3 }
 0x579   : > { %v3258_v17 = vadd.f32 %v3257_v54, %v3245_v43  ;;  %v8280_v43 = vor.u32 %v6663_v37, %v6127_v2  ;;  %v3267_v54 = vmul.f32 256.0, %v6839_v59  ;;  %v6117_v2 = vld [vmem:[#allocation8 + $0x60] sm:$0xf] }
 0x57b   : > { %v3262_v32 = vadd.f32 %v3258_v17, %v7578_v10  ;;  %9583 = vst [vmem:[#allocation235_spill] sm:$0xff] %v8280_v43  ;;  %v6191_v10 = vld [vmem:[#allocation8 + $0xf8] sm:$0xf0]  ;;  %3502 = vmatpush.bf16.msra.mxu2 %v8280_v43  ;;  %v3268_v57 = vsub.f32 1.0, %v3267_v54  ;;  %v6678_v54 = vld [vmem:[#allocation8 + $0xe4] sm:$0xf0] }
 0x57d   : > { %v3263_v3 = vadd.f32 %v3262_v32, %v3261_v0  ;;  %v3269_v26 = vmul.f32 %v6839_v59, %v3268_v57  ;;  %v6661_v57 = vld [vmem:[#allocation8 + $0x64] sm:$0xf] }
 0x57f   : > { %3264 = vadd.xlane.f32.xlu1 %v3263_v3  ;;  %v8283_v3 = vor.u32 %v6679_v49, %v6191_v10  ;;  %v3270_v23 = vadd.f32 %v6839_v59, %v3269_v26  ;;  %v6662_v49 = vld [vmem:[#allocation8 + $0x64] sm:$0xf0]  ;;  %v6181_v10 = vld [vmem:[#allocation8 + $0xe0] sm:$0xf]  ;;  %v6119_v26 = vld [vmem:[#allocation8 + $0x68] sm:$0xf0] }
 0x580   : > { %v3259_v52 = vpop.f32.mrf.mxu3 }
 0x581   : > { %9584 = vst [vmem:[#allocation236_spill] sm:$0xff] %v8283_v3  ;;  %3515 = vmatpush.bf16.msra.mxu3 %v8283_v3  ;;  %v8288_v17 = vsel %vm3271_vm6, %v6839_v59, %v3270_v23  ;;  %v8299_v59 = vor.u32 %v6662_v49, %v6117_v2  ;;  %v6677_v23 = vld [vmem:[#allocation8 + $0xe4] sm:$0xf]  ;;  %v6676_v49 = vld [vmem:[#allocation8 + $0xd4] sm:$0xf0] }
 0x583   : > { %3477 = vmatpush.bf16.msrb.mxu0 %v8299_v59 }
 0x5f2   : > { %v3265_v52 = vpop.xlane.xlu1 %3264 }
 0x5f3   : > { %v3273_v30 = vmul.f32 %v8288_v17, %v3265_v52  ;;  %v6183_v52 = vld [vmem:[#allocation8 + $0xe8] sm:$0xf0] }
 0x5f5   : > { %v8291_v50 = vsub.f32 %v3261_v0, %v3273_v30  ;;  %v8293_v58 = vsub.f32 %v3262_v32, %v3273_v30  ;;  %v8301_v0 = vor.u32 %v6678_v54, %v6181_v10  ;;  %v8303_v32 = vor.u32 %v6661_v57, %v6119_v26  ;;  %v6659_v10 = vld [vmem:[#allocation8 + $0x54] sm:$0xf]  ;;  %v6111_v54 = vld [vmem:[#allocation8 + $0x58] sm:$0xf0] }
 0x5f6   : > { %v8306_v30 = vor.u32 %v6677_v23, %v6183_v52  ;;  %v8315_v26 = vor.u32 %v6659_v10, %v6111_v54  ;;  %v6675_v23 = vld [vmem:[#allocation8 + $0xd4] sm:$0xf]  ;;  %v6175_v52 = vld [vmem:[#allocation8 + $0xd8] sm:$0xf0]  ;;  %v6103_v10 = vld [vmem:[#allocation8 + $0x48] sm:$0xf0] }
 0x5f7   : > { %v3276_v9 = vmul.f32 %v8291_v50, %v8291_v50  ;;  %v3277_v61 = vmul.f32 %v8293_v58, %v8293_v58  ;;  %9585 = vst [vmem:[#allocation237_spill] sm:$0xff] %v8301_v0  ;;  %3490 = vmatpush.bf16.msrb.mxu1 %v8301_v0  ;;  %3503 = vmatpush.bf16.msra.mxu2 %v8303_v32 }
 0x5f8   : > { %9586 = vst [vmem:[#allocation238_spill] sm:$0xff] %v8303_v32  ;;  %3516 = vmatpush.bf16.msra.mxu3 %v8306_v30  ;;  %v8318_v51 = vor.u32 %v6675_v23, %v6175_v52  ;;  %v6673_v23 = vld [vmem:[#allocation8 + $0xc4] sm:$0xf]  ;;  %v6167_v52 = vld [vmem:[#allocation8 + $0xc8] sm:$0xf0] }
 0x5f9   : > { %v3278_v37 = vadd.f32 %v3277_v61, %v3276_v9  ;;  %9587 = vst [vmem:[#allocation239_spill] sm:$0xff] %v8306_v30  ;;  %v6109_v9 = vld [vmem:[#allocation8 + $0x50] sm:$0xf]  ;;  %v6660_v61 = vld [vmem:[#allocation8 + $0x54] sm:$0xf0]  ;;  %v8330_v43 = vor.u32 %v6673_v23, %v6167_v52 }
 0x5fa   : > { %v8311_v2 = vor.u32 %v6660_v61, %v6109_v9  ;;  %9589 = vst [vmem:[#allocation241_spill] sm:$0xff] %v8315_v26  ;;  %v6101_v30 = vld [vmem:[#allocation8 + $0x40] sm:$0xf]  ;;  %v6658_v9 = vld [vmem:[#allocation8 + $0x44] sm:$0xf0] }
 0x5fb   : > { %3279 = vadd.xlane.f32.xlu2 %v3278_v37  ;;  %v6173_v37 = vld [vmem:[#allocation8 + $0xd0] sm:$0xf]  ;;  %9590 = vst [vmem:[#allocation242_spill] sm:$0xff] %v8318_v51  ;;  %3504 = vmatpush.bf16.msra.mxu2 %v8315_v26  ;;  %v6165_v61 = vld [vmem:[#allocation8 + $0xc0] sm:$0xf]  ;;  %v8323_v3 = vor.u32 %v6658_v9, %v6101_v30 }
 0x5fc   : > { %v8313_v57 = vor.u32 %v6676_v49, %v6173_v37  ;;  %3478 = vmatpush.bf16.msrb.mxu0 %v8311_v2  ;;  %3517 = vmatpush.bf16.msra.mxu3 %v8318_v51  ;;  %v6674_v37 = vld [vmem:[#allocation8 + $0xc4] sm:$0xf0]  ;;  %v6657_v49 = vld [vmem:[#allocation8 + $0x44] sm:$0xf]  ;;  %9594 = vst [vmem:[#allocation246_spill] sm:$0xff] %v8330_v43 }
 0x5fd   : > { %9591 = vst [vmem:[#allocation243_spill] sm:$0xff] %v8323_v3  ;;  %v8325_v54 = vor.u32 %v6674_v37, %v6165_v61  ;;  %v8327_v32 = vor.u32 %v6657_v49, %v6103_v10  ;;  %v6093_v51 = vld [vmem:[#allocation8 + $0x30] sm:$0xf]  ;;  %v6656_v30 = vld [vmem:[#allocation8 + $0x34] sm:$0xf0] }
 0x5fe   : > { %9588 = vst [vmem:[#allocation240_spill] sm:$0xff] %v8313_v57  ;;  %3491 = vmatpush.bf16.msrb.mxu1 %v8313_v57  ;;  %v6157_v9 = vld [vmem:[#allocation8 + $0xb0] sm:$0xf]  ;;  %v8335_v26 = vor.u32 %v6656_v30, %v6093_v51  ;;  %v6672_v61 = vld [vmem:[#allocation8 + $0xb4] sm:$0xf0] }
 0x5ff   : > { %9592 = vst [vmem:[#allocation244_spill] sm:$0xff] %v8325_v54  ;;  %3505 = vmatpush.bf16.msra.mxu2 %v8327_v32  ;;  %v6655_v37 = vld [vmem:[#allocation8 + $0x34] sm:$0xf]  ;;  %v6095_v49 = vld [vmem:[#allocation8 + $0x38] sm:$0xf0]  ;;  %v8337_v10 = vor.u32 %v6672_v61, %v6157_v9 }
 0x600   : > { %9593 = vst [vmem:[#allocation245_spill] sm:$0xff] %v8327_v32  ;;  %3479 = vmatpush.bf16.msrb.mxu0 %v8323_v3  ;;  %3518 = vmatpush.bf16.msra.mxu3 %v8330_v43  ;;  %v8339_v57 = vor.u32 %v6655_v37, %v6095_v49  ;;  %v6671_v23 = vld [vmem:[#allocation8 + $0xb4] sm:$0xf]  ;;  %v6159_v52 = vld [vmem:[#allocation8 + $0xb8] sm:$0xf0] }
 0x601   : > { %9595 = vst [vmem:[#allocation247_spill] sm:$0xff] %v8335_v26  ;;  %v6085_v43 = vld [vmem:[#allocation8 + $0x20] sm:$0xf]  ;;  %v6654_v51 = vld [vmem:[#allocation8 + $0x24] sm:$0xf0] }
 0x602   : > { %3492 = vmatpush.bf16.msrb.mxu1 %v8325_v54  ;;  %9596 = vst [vmem:[#allocation248_spill] sm:$0xff] %v8337_v10  ;;  %v8342_v54 = vor.u32 %v6671_v23, %v6159_v52  ;;  %v6149_v30 = vld [vmem:[#allocation8 + $0xa0] sm:$0xf]  ;;  %v8347_v32 = vor.u32 %v6654_v51, %v6085_v43  ;;  %v6670_v9 = vld [vmem:[#allocation8 + $0xa4] sm:$0xf0] }
 0x603   : > { %9597 = vst [vmem:[#allocation249_spill] sm:$0xff] %v8339_v57  ;;  %3506 = vmatpush.bf16.msra.mxu2 %v8339_v57  ;;  %v6653_v61 = vld [vmem:[#allocation8 + $0x24] sm:$0xf]  ;;  %v6087_v37 = vld [vmem:[#allocation8 + $0x28] sm:$0xf0]  ;;  %v8349_v49 = vor.u32 %v6670_v9, %v6149_v30 }
 0x604   : > { %3480 = vmatpush.bf16.msrb.mxu0 %v8335_v26  ;;  %9598 = vst [vmem:[#allocation250_spill] sm:$0xff] %v8342_v54  ;;  %3519 = vmatpush.bf16.msra.mxu3 %v8342_v54  ;;  %v8351_v0 = vor.u32 %v6653_v61, %v6087_v37  ;;  %v6669_v23 = vld [vmem:[#allocation8 + $0xa4] sm:$0xf]  ;;  %v6151_v52 = vld [vmem:[#allocation8 + $0xa8] sm:$0xf0] }
 0x605   : > { %9599 = vst [vmem:[#allocation251_spill] sm:$0xff] %v8347_v32  ;;  %v6077_v54 = vld [vmem:[#allocation8 + $0x10] sm:$0xf]  ;;  %v6652_v43 = vld [vmem:[#allocation8 + $0x14] sm:$0xf0] }
 0x606   : > { %3493 = vmatpush.bf16.msrb.mxu1 %v8337_v10  ;;  %9600 = vst [vmem:[#allocation252_spill] sm:$0xff] %v8349_v49  ;;  %v8354_v10 = vor.u32 %v6669_v23, %v6151_v52  ;;  %v6141_v51 = vld [vmem:[#allocation8 + $0x90] sm:$0xf]  ;;  %v8359_v57 = vor.u32 %v6652_v43, %v6077_v54  ;;  %v6668_v30 = vld [vmem:[#allocation8 + $0x94] sm:$0xf0] }
 0x607   : > { %9601 = vst [vmem:[#allocation253_spill] sm:$0xff] %v8351_v0  ;;  %3507 = vmatpush.bf16.msra.mxu2 %v8351_v0  ;;  %v6651_v9 = vld [vmem:[#allocation8 + $0x14] sm:$0xf]  ;;  %v6079_v61 = vld [vmem:[#allocation8 + $0x18] sm:$0xf0]  ;;  %v8361_v37 = vor.u32 %v6668_v30, %v6141_v51 }
 0x608   : > { %3481 = vmatpush.bf16.msrb.mxu0 %v8347_v32  ;;  %9602 = vst [vmem:[#allocation254_spill] sm:$0xff] %v8354_v10  ;;  %3520 = vmatpush.bf16.msra.mxu3 %v8354_v10  ;;  %v8363_v55 = vor.u32 %v6651_v9, %v6079_v61  ;;  %v6667_v23 = vld [vmem:[#allocation8 + $0x94] sm:$0xf]  ;;  %v6143_v52 = vld [vmem:[#allocation8 + $0x98] sm:$0xf0] }
 0x609   : > { %9603 = vst [vmem:[#allocation255_spill] sm:$0xff] %v8359_v57  ;;  %v6069_v32 = vld [vmem:[#allocation8] sm:$0xf]  ;;  %v8366_v0 = vor.u32 %v6667_v23, %v6143_v52  ;;  %v6666_v3 = vld [vmem:[#allocation8 + $0x84] sm:$0xf0] }
 0x60a   : > { %3494 = vmatpush.bf16.msrb.mxu1 %v8349_v49  ;;  %9604 = vst [vmem:[#allocation256_spill] sm:$0xff] %v8361_v37  ;;  %v6650_v49 = vld [vmem:[#allocation8 + $0x4] sm:$0xf0]  ;;  %v6133_v26 = vld [vmem:[#allocation8 + $0x80] sm:$0xf] }
 0x60b   : > { %9605 = vst [vmem:[#allocation257_spill] sm:$0xff] %v8363_v55  ;;  %3508 = vmatpush.bf16.msra.mxu2 %v8363_v55  ;;  %v8370_v54 = vor.u32 %v6650_v49, %v6069_v32  ;;  %v8372_v43 = vor.u32 %v6666_v3, %v6133_v26  ;;  %v6649_v51 = vld [vmem:[#allocation8 + $0x4] sm:$0xf]  ;;  %v6071_v30 = vld [vmem:[#allocation8 + $0x8] sm:$0xf0] }
 0x60c   : > { %3482 = vmatpush.bf16.msrb.mxu0 %v8359_v57  ;;  %9606 = vst [vmem:[#allocation258_spill] sm:$0xff] %v8366_v0  ;;  %v6665_v9 = vld [vmem:[#allocation8 + $0x84] sm:$0xf]  ;;  %3521 = vmatpush.bf16.msra.mxu3 %v8366_v0  ;;  %v8375_v61 = vor.u32 %v6649_v51, %v6071_v30  ;;  %v6135_v23 = vld [vmem:[#allocation8 + $0x88] sm:$0xf0] }
 0x60d   : > { %9607 = vst [vmem:[#allocation259_spill] sm:$0xff] %v8370_v54  ;;  %v8377_v52 = vor.u32 %v6665_v9, %v6135_v23  ;;  %v6253_v32 = vld [vmem:[#allocation9 + $0x70] sm:$0xf]  ;;  %v6696_v26 = vld [vmem:[#allocation9 + $0x74] sm:$0xf0] }
 0x60e   : > { %3495 = vmatpush.bf16.msrb.mxu1 %v8361_v37  ;;  %9608 = vst [vmem:[#allocation260_spill] sm:$0xff] %v8372_v43  ;;  %v6695_v49 = vld [vmem:[#allocation9 + $0x74] sm:$0xf]  ;;  %v8384_v0 = vor.u32 %v6696_v26, %v6253_v32  ;;  %v6255_v51 = vld [vmem:[#allocation9 + $0x78] sm:$0xf0] }
 0x60f   : > { %9609 = vst [vmem:[#allocation261_spill] sm:$0xff] %v8375_v61  ;;  %3509 = vmatpush.bf16.msra.mxu2 %v8375_v61  ;;  %v8386_v30 = vor.u32 %v6695_v49, %v6255_v51 }
 0x610   : > { %9610 = vst [vmem:[#allocation262_spill] sm:$0xff] %v8377_v52  ;;  %3483 = vmatpush.bf16.msrb.mxu0 %v8370_v54  ;;  %3522 = vmatpush.bf16.msra.mxu3 %v8377_v52  ;;  %v6700_v54 = vld [vmem:[#allocation9 + $0x94] sm:$0xf0] }
 0x611   : > { %9611 = vst [vmem:[#allocation263_spill] sm:$0xff] %v8384_v0 }
 0x612   : > { %3496 = vmatpush.bf16.msrb.mxu1 %v8372_v43  ;;  %9612 = vst [vmem:[#allocation264_spill] sm:$0xff] %v8386_v30 }
 0x613   : > { %3739 = vmatpush.bf16.msrb.mxu2 %v8386_v30 }
 0x614   : > { %3713 = vmatpush.bf16.msra.mxu0 %v8384_v0  ;;  %v6691_v0 = vld [vmem:[#allocation9 + $0x54] sm:$0xf] }
 0x66e   : > { %v3280_v3 = vpop.xlane.xlu2 %3279 }
 0x66f   : > { %v3281_v10 = vmul.f32 %v3280_v3, %v8288_v17  ;;  %v8393_v3 = vld [vmem:[%s9030_s11] sm:$0x3] }
 0x670   : > { %9613 = vst [vmem:[#allocation265_spill] sm:$0xff] %v8393_v3  ;;  %v9311_v26 = vperm.slane %v8393_v3, 0 }
 0x671   : > { %v3282_v9 = vadd.f32 1e-12, %v3281_v10  ;;  %v8398_v10 = vld [vmem:[%s9031_s12] sm:$0x3] }
 0x672   : > { %9614 = vst [vmem:[#allocation266_spill] sm:$0xff] %v8398_v10  ;;  %v9308_v51 = vperm.slane %v8398_v10, 0 }
 0x673   : > { %6840 = vrsqrt.f32 %v3282_v9  ;;  %vm3289_vm8 = vweird.f32 %v3282_v9 }
 0x679   : > { %v6841_v23 = vpop.eup %6840 }
 0x67a   : > { %v3284_v61 = vmul.f32 %v6841_v23, %v3282_v9  ;;  %vm3290_vm7 = vweird.f32 %v6841_v23 }
 0x67b   : > { %vm3291_vm9 = vmor %vm3289_vm8, %vm3290_vm7 }
 0x67c   : > { %v3285_v52 = vmul.f32 %v6841_v23, %v3284_v61  ;;  %v9310_v61 = vperm.slane %v8393_v3, 1  ;;  %v6692_v3 = vld [vmem:[#allocation9 + $0x54] sm:$0xf0] }
 0x67e   : > { %v3286_v55 = vmul.f32 0.5, %v3285_v52 }
 0x680   : > { %v3287_v43 = vsub.f32 1.5, %v3286_v55 }
 0x682   : > { %v3288_v32 = vmul.f32 %v6841_v23, %v3287_v43  ;;  %v9309_v43 = vperm.slane %v8398_v10, 1  ;;  %v6319_v10 = vld [vmem:[#allocation9 + $0xf8] sm:$0xf0] }
 0x684   : > { %v3292_v52 = vsel %vm3291_vm9, %v6841_v23, %v3288_v32  ;;  %v6245_v32 = vld [vmem:[#allocation9 + $0x60] sm:$0xf] }
 0x685   : > { %v3293_v55 = vmul.f32 %v3292_v52, %v8291_v50  ;;  %v3294_v49 = vmul.f32 %v3292_v52, %v8293_v58  ;;  %v6694_v52 = vld [vmem:[#allocation9 + $0x64] sm:$0xf0] }
 0x687   : > { %v3300_v9 = vmul.f32 %v9311_v26, %v3293_v55  ;;  %v3301_v30 = vmul.f32 %v9310_v61, %v3294_v49  ;;  %v6693_v55 = vld [vmem:[#allocation9 + $0x64] sm:$0xf]  ;;  %v8422_v49 = vor.u32 %v6694_v52, %v6245_v32  ;;  %v6711_v61 = vld [vmem:[#allocation9 + $0xf4] sm:$0xf]  ;;  %v6239_v52 = vld [vmem:[#allocation9 + $0x58] sm:$0xf0] }
 0x689   : > { %v8412_v37 = vadd.f32 %v9308_v51, %v3300_v9  ;;  %v8416_v23 = vadd.f32 %v9309_v43, %v3301_v30  ;;  %9615 = vst [vmem:[#allocation267_spill] sm:$0xff] %v8422_v49  ;;  %v6247_v9 = vld [vmem:[#allocation9 + $0x68] sm:$0xf0]  ;;  %v6317_v30 = vld [vmem:[#allocation9 + $0xf0] sm:$0xf]  ;;  %3714 = vmatpush.bf16.msra.mxu0 %v8422_v49 }
 0x68a   : > { %v8424_v51 = vor.u32 %v6693_v55, %v6247_v9  ;;  %v6712_v43 = vld [vmem:[#allocation9 + $0xf4] sm:$0xf0]  ;;  %v8436_v55 = vor.u32 %v6691_v0, %v6239_v52  ;;  %v6309_v9 = vld [vmem:[#allocation9 + $0xe0] sm:$0xf]  ;;  %v6231_v0 = vld [vmem:[#allocation9 + $0x48] sm:$0xf0] }
 0x68b   : > { %v3309_v50 = vpack.c.bf16 %v8412_v37, %v8412_v37  ;;  %v3310_v58 = vpack.c.bf16 %v8416_v23, %v8416_v23  ;;  %v8427_v26 = vor.u32 %v6712_v43, %v6317_v30  ;;  %v6710_v43 = vld [vmem:[#allocation9 + $0xe4] sm:$0xf0]  ;;  %v6709_v30 = vld [vmem:[#allocation9 + $0xe4] sm:$0xf] }
 0x68c   : > { %9616 = vst [vmem:[#allocation268_spill] sm:$0xff] %v8424_v51  ;;  %3740 = vmatpush.bf16.msrb.mxu2 %v8424_v51  ;;  %v8439_v51 = vor.u32 %v6710_v43, %v6309_v9  ;;  %v6708_v9 = vld [vmem:[#allocation9 + $0xd4] sm:$0xf0]  ;;  %v6707_v43 = vld [vmem:[#allocation9 + $0xd4] sm:$0xf] }
 0x68d   : > { %3484 = vmatmul.bf16.vlgmr.msrb.gmra.mxu0 %v3309_v50  ;;  %3497 = vmatmul.bf16.vlgmr.msrb.gmra.mxu1 %v3310_v58  ;;  %9617 = vst [vmem:[#allocation269_spill] sm:$0xff] %v8427_v26  ;;  %v6682_v49 = vld [vmem:[#allocation9 + $0x4] sm:$0xf0] }
 0x68e   : > { %3510 = vmatmul.bf16.vlgmr.msra.gmra.mxu2 %v3309_v50  ;;  %3523 = vmatmul.bf16.vlgmr.msra.gmra.mxu3 %v3310_v58  ;;  %v8430_v50 = vor.u32 %v6711_v61, %v6319_v10  ;;  %v6237_v58 = vld [vmem:[#allocation9 + $0x50] sm:$0xf]  ;;  %9620 = vst [vmem:[#allocation272_spill] sm:$0xff] %v8436_v55  ;;  %v6311_v10 = vld [vmem:[#allocation9 + $0xe8] sm:$0xf0] }
 0x68f   : > { %3726 = vmatpush.bf16.msra.mxu1 %v8427_v26  ;;  %v8433_v32 = vor.u32 %v6692_v3, %v6237_v58  ;;  %9621 = vst [vmem:[#allocation273_spill] sm:$0xff] %v8439_v51  ;;  %v8442_v61 = vor.u32 %v6709_v30, %v6311_v10  ;;  %v6229_v26 = vld [vmem:[#allocation9 + $0x40] sm:$0xf]  ;;  %v6690_v3 = vld [vmem:[#allocation9 + $0x44] sm:$0xf0] }
 0x690   : > { %9618 = vst [vmem:[#allocation270_spill] sm:$0xff] %v8430_v50  ;;  %3752 = vmatpush.bf16.msrb.mxu3 %v8430_v50  ;;  %3741 = vmatpush.bf16.msrb.mxu2 %v8436_v55  ;;  %v6689_v58 = vld [vmem:[#allocation9 + $0x44] sm:$0xf]  ;;  %v8445_v50 = vor.u32 %v6690_v3, %v6229_v26  ;;  %v6303_v30 = vld [vmem:[#allocation9 + $0xd8] sm:$0xf0] }
 0x691   : > { %9619 = vst [vmem:[#allocation271_spill] sm:$0xff] %v8433_v32  ;;  %3715 = vmatpush.bf16.msra.mxu0 %v8433_v32  ;;  %v8448_v52 = vor.u32 %v6689_v58, %v6231_v0  ;;  %v6301_v32 = vld [vmem:[#allocation9 + $0xd0] sm:$0xf]  ;;  %v8454_v10 = vor.u32 %v6707_v43, %v6303_v30  ;;  %v6688_v26 = vld [vmem:[#allocation9 + $0x34] sm:$0xf0] }
 0x692   : > { %9622 = vst [vmem:[#allocation274_spill] sm:$0xff] %v8442_v61  ;;  %v8451_v55 = vor.u32 %v6708_v9, %v6301_v32  ;;  %v6687_v3 = vld [vmem:[#allocation9 + $0x34] sm:$0xf]  ;;  %v6223_v58 = vld [vmem:[#allocation9 + $0x38] sm:$0xf0] }
 0x693   : > { %3727 = vmatpush.bf16.msra.mxu1 %v8439_v51  ;;  %9623 = vst [vmem:[#allocation275_spill] sm:$0xff] %v8445_v50  ;;  %v6221_v51 = vld [vmem:[#allocation9 + $0x30] sm:$0xf]  ;;  %v8460_v0 = vor.u32 %v6687_v3, %v6223_v58  ;;  %v6706_v32 = vld [vmem:[#allocation9 + $0xc4] sm:$0xf0] }
 0x694   : > { %3753 = vmatpush.bf16.msrb.mxu3 %v8442_v61  ;;  %9624 = vst [vmem:[#allocation276_spill] sm:$0xff] %v8448_v52  ;;  %3742 = vmatpush.bf16.msrb.mxu2 %v8448_v52  ;;  %v8457_v61 = vor.u32 %v6688_v26, %v6221_v51  ;;  %v6705_v9 = vld [vmem:[#allocation9 + $0xc4] sm:$0xf]  ;;  %v6295_v43 = vld [vmem:[#allocation9 + $0xc8] sm:$0xf0] }
 0x695   : > { %3716 = vmatpush.bf16.msra.mxu0 %v8445_v50  ;;  %9625 = vst [vmem:[#allocation277_spill] sm:$0xff] %v8451_v55  ;;  %v6293_v50 = vld [vmem:[#allocation9 + $0xc0] sm:$0xf]  ;;  %v8466_v30 = vor.u32 %v6705_v9, %v6295_v43  ;;  %v6686_v51 = vld [vmem:[#allocation9 + $0x24] sm:$0xf0] }
 0x696   : > { %9626 = vst [vmem:[#allocation278_spill] sm:$0xff] %v8454_v10  ;;  %v8463_v52 = vor.u32 %v6706_v32, %v6293_v50  ;;  %v6685_v26 = vld [vmem:[#allocation9 + $0x24] sm:$0xf]  ;;  %v6215_v3 = vld [vmem:[#allocation9 + $0x28] sm:$0xf0] }
 0x697   : > { %3728 = vmatpush.bf16.msra.mxu1 %v8451_v55  ;;  %9627 = vst [vmem:[#allocation279_spill] sm:$0xff] %v8457_v61  ;;  %v6213_v55 = vld [vmem:[#allocation9 + $0x20] sm:$0xf]  ;;  %v8472_v58 = vor.u32 %v6685_v26, %v6215_v3  ;;  %v6704_v50 = vld [vmem:[#allocation9 + $0xb4] sm:$0xf0] }
 0x698   : > { %3754 = vmatpush.bf16.msrb.mxu3 %v8454_v10  ;;  %9628 = vst [vmem:[#allocation280_spill] sm:$0xff] %v8460_v0  ;;  %3743 = vmatpush.bf16.msrb.mxu2 %v8460_v0  ;;  %v8469_v10 = vor.u32 %v6686_v51, %v6213_v55  ;;  %v6703_v32 = vld [vmem:[#allocation9 + $0xb4] sm:$0xf]  ;;  %v6287_v9 = vld [vmem:[#allocation9 + $0xb8] sm:$0xf0] }
 0x699   : > { %3717 = vmatpush.bf16.msra.mxu0 %v8457_v61  ;;  %9629 = vst [vmem:[#allocation281_spill] sm:$0xff] %v8463_v52  ;;  %v6285_v61 = vld [vmem:[#allocation9 + $0xb0] sm:$0xf]  ;;  %v8478_v43 = vor.u32 %v6703_v32, %v6287_v9  ;;  %v6684_v55 = vld [vmem:[#allocation9 + $0x14] sm:$0xf0] }
 0x69a   : > { %9630 = vst [vmem:[#allocation282_spill] sm:$0xff] %v8466_v30  ;;  %v8475_v0 = vor.u32 %v6704_v50, %v6285_v61  ;;  %v6683_v51 = vld [vmem:[#allocation9 + $0x14] sm:$0xf]  ;;  %v6207_v26 = vld [vmem:[#allocation9 + $0x18] sm:$0xf0] }
 0x69b   : > { %3729 = vmatpush.bf16.msra.mxu1 %v8463_v52  ;;  %9631 = vst [vmem:[#allocation283_spill] sm:$0xff] %v8469_v10  ;;  %v6205_v52 = vld [vmem:[#allocation9 + $0x10] sm:$0xf]  ;;  %v8484_v3 = vor.u32 %v6683_v51, %v6207_v26  ;;  %v6702_v61 = vld [vmem:[#allocation9 + $0xa4] sm:$0xf0] }
 0x69c   : > { %3755 = vmatpush.bf16.msrb.mxu3 %v8466_v30  ;;  %9632 = vst [vmem:[#allocation284_spill] sm:$0xff] %v8472_v58  ;;  %3744 = vmatpush.bf16.msrb.mxu2 %v8472_v58  ;;  %v8481_v30 = vor.u32 %v6684_v55, %v6205_v52  ;;  %v6701_v50 = vld [vmem:[#allocation9 + $0xa4] sm:$0xf]  ;;  %v6279_v32 = vld [vmem:[#allocation9 + $0xa8] sm:$0xf0] }
 0x69d   : > { %3718 = vmatpush.bf16.msra.mxu0 %v8469_v10  ;;  %9633 = vst [vmem:[#allocation285_spill] sm:$0xff] %v8475_v0  ;;  %v6277_v10 = vld [vmem:[#allocation9 + $0xa0] sm:$0xf]  ;;  %v6681_v55 = vld [vmem:[#allocation9 + $0x4] sm:$0xf] }
 0x69e   : > { %9634 = vst [vmem:[#allocation286_spill] sm:$0xff] %v8478_v43  ;;  %v8487_v58 = vor.u32 %v6702_v61, %v6277_v10  ;;  %v6197_v9 = vld [vmem:[#allocation9] sm:$0xf]  ;;  %v6269_v51 = vld [vmem:[#allocation9 + $0x90] sm:$0xf] }
 0x69f   : > { %3730 = vmatpush.bf16.msra.mxu1 %v8475_v0  ;;  %9635 = vst [vmem:[#allocation287_spill] sm:$0xff] %v8481_v30  ;;  %v8490_v0 = vor.u32 %v6701_v50, %v6279_v32  ;;  %v8492_v52 = vor.u32 %v6682_v49, %v6197_v9  ;;  %v6271_v10 = vld [vmem:[#allocation9 + $0x98] sm:$0xf0]  ;;  %v8498_v61 = vor.u32 %v6700_v54, %v6269_v51  ;;  %v6698_v50 = vld [vmem:[#allocation9 + $0x84] sm:$0xf0] }
 0x6a0   : > { %3756 = vmatpush.bf16.msrb.mxu3 %v8478_v43  ;;  %3745 = vmatpush.bf16.msrb.mxu2 %v8484_v3  ;;  %v6199_v43 = vld [vmem:[#allocation9 + $0x8] sm:$0xf0]  ;;  %v8505_v49 = vld [vmem:[%s9033_s14] sm:$0x3]  ;;  %v6697_v32 = vld [vmem:[#allocation9 + $0x84] sm:$0xf] }
 0x6a1   : > { %3719 = vmatpush.bf16.msra.mxu0 %v8481_v30  ;;  %v8495_v26 = vor.u32 %v6681_v55, %v6199_v43  ;;  %v6699_v30 = vld [vmem:[#allocation9 + $0x94] sm:$0xf]  ;;  %v6261_v43 = vld [vmem:[#allocation9 + $0x80] sm:$0xf]  ;;  %v3312_v54 = vperm.slane %v8505_v49, 0 }
 0x6a2   : > { %v8500_v57 = vor.u32 %v6699_v30, %v6271_v10  ;;  %v8514_v30 = vor.u32 %v6698_v50, %v6261_v43  ;;  %v6263_v9 = vld [vmem:[#allocation9 + $0x88] sm:$0xf0] }
 0x6a3   : > { %3731 = vmatpush.bf16.msra.mxu1 %v8487_v58  ;;  %v8516_v55 = vor.u32 %v6697_v32, %v6263_v9 }
 0x6a4   : > { %3757 = vmatpush.bf16.msrb.mxu3 %v8490_v0  ;;  %3746 = vmatpush.bf16.msrb.mxu2 %v8495_v26 }
 0x6a5   : > { %3720 = vmatpush.bf16.msra.mxu0 %v8492_v52 }
 0x6a7   : > { %3732 = vmatpush.bf16.msra.mxu1 %v8498_v61 }
 0x6a8   : > { %3834 = vmatpush.bf16.msra.mxu2 %v7372_v7  ;;  %3758 = vmatpush.bf16.msrb.mxu3 %v8500_v57 }
 0x6a9   : > { %3808 = vmatpush.bf16.msrb.mxu0 %v7367_v1 }
 0x6ab   : > { %3733 = vmatpush.bf16.msra.mxu1 %v8514_v30 }
 0x6ac   : > { %3835 = vmatpush.bf16.msra.mxu2 %v7386_v21  ;;  %3759 = vmatpush.bf16.msrb.mxu3 %v8516_v55 }
 0x6ad   : > { %3809 = vmatpush.bf16.msrb.mxu0 %v7381_v14  ;;  %v3313_v14 = vperm.slane %v8505_v49, 1 }
 0x6af   : > { %3821 = vmatpush.bf16.msrb.mxu1 %v7370_v6 }
 0x6b0   : > { %3847 = vmatpush.bf16.msra.mxu3 %v7375_v11  ;;  %3836 = vmatpush.bf16.msra.mxu2 %v7398_v34 }
 0x6b1   : > { %3810 = vmatpush.bf16.msrb.mxu0 %v7392_v29 }
 0x6b3   : > { %3822 = vmatpush.bf16.msrb.mxu1 %v7383_v18 }
 0x6b4   : > { %3848 = vmatpush.bf16.msra.mxu3 %v7389_v25  ;;  %3837 = vmatpush.bf16.msra.mxu2 %v7410_v48 }
 0x6b5   : > { %3811 = vmatpush.bf16.msrb.mxu0 %v7404_v45 }
 0x6b7   : > { %3823 = vmatpush.bf16.msrb.mxu1 %v7396_v33 }
 0x6b8   : > { %3849 = vmatpush.bf16.msra.mxu3 %v7401_v38  ;;  %3838 = vmatpush.bf16.msra.mxu2 %v7423_v63 }
 0x6b9   : > { %3812 = vmatpush.bf16.msrb.mxu0 %v7417_v60 }
 0x6bb   : > { %3824 = vmatpush.bf16.msrb.mxu1 %v7408_v47 }
 0x6bc   : > { %3850 = vmatpush.bf16.msra.mxu3 %v7414_v53  ;;  %3839 = vmatpush.bf16.msra.mxu2 %v7438_v22 }
 0x6bd   : > { %3813 = vmatpush.bf16.msrb.mxu0 %v7429_v15 }
 0x6bf   : > { %3825 = vmatpush.bf16.msrb.mxu1 %v7421_v62 }
 0x6c0   : > { %3851 = vmatpush.bf16.msra.mxu3 %v7426_v5  ;;  %3840 = vmatpush.bf16.msra.mxu2 %v7456_v42 }
 0x6c1   : > { %3814 = vmatpush.bf16.msrb.mxu0 %v7446_v39 }
 0x6c3   : > { %3826 = vmatpush.bf16.msrb.mxu1 %v7436_v20 }
 0x6c4   : > { %3852 = vmatpush.bf16.msra.mxu3 %v7442_v28  ;;  %3841 = vmatpush.bf16.msra.mxu2 %v7469_v8  ;;  %v9636_v28 = vld [vmem:[#allocation17_spill] sm:$0xff]  ;;  %v9640_v8 = vld [vmem:[#allocation18_spill] sm:$0xff] }
 0x6c5   : > { %3815 = vmatpush.bf16.msrb.mxu0 %v7462_v56  ;;  %v9637_v56 = vld [vmem:[#allocation19_spill] sm:$0xff] }
 0x6c7   : > { %3827 = vmatpush.bf16.msrb.mxu1 %v7454_v41  ;;  %v9638_v41 = vld [vmem:[#allocation21_spill] sm:$0xff] }
 0x6c8   : > { %3853 = vmatpush.bf16.msra.mxu3 %v7459_v46  ;;  %v9639_v46 = vld [vmem:[#allocation16_spill] sm:$0xff] }
 0x6cb   : > { %3828 = vmatpush.bf16.msrb.mxu1 %v7467_v4  ;;  %v9642_v4 = vld [vmem:[#allocation25_spill] sm:$0xff] }
 0x6cc   : > { %3854 = vmatpush.bf16.msra.mxu3 %v7471_v13  ;;  %v9644_v13 = vld [vmem:[#allocation22_spill] sm:$0xff] }
 0x70a   : > { %v3485_v51 = vpop.f32.mrf.mxu0  ;;  %v3498_v1 = vpop.f32.mrf.mxu1 }
 0x70b   : > { %v3486_v7 = vadd.f32 %v3485_v51, %v3312_v54 }
 0x70d   : > { %v3499_v10 = vadd.f32 %v3498_v1, %v3486_v7  ;;  %v9641_v7 = vld [vmem:[#allocation23_spill] sm:$0xff] }
 0x70f   : > { %v3530_v43 = vmul.f32 %v3499_v10, %v3499_v10  ;;  %v3528_v53 = vmul.f32 0.5, %v3499_v10 }
 0x711   : > { %v3532_v21 = vmul.f32 %v3530_v43, %v3499_v10  ;;  %v3511_v50 = vpop.f32.mrf.mxu2  ;;  %v3524_v32 = vpop.f32.mrf.mxu3  ;;  %v9646_v43 = vld [vmem:[#allocation29_spill] sm:$0xff] }
 0x712   : > { %v3512_v6 = vadd.f32 %v3511_v50, %v3313_v14  ;;  %v3487_v11 = vpop.f32.mrf.mxu0  ;;  %v3500_v9 = vpop.f32.mrf.mxu1  ;;  %v9648_v50 = vld [vmem:[#allocation26_spill] sm:$0xff] }
 0x713   : > { %v3534_v29 = vmul.f32 0.044715, %v3532_v21  ;;  %v9647_v21 = vld [vmem:[#allocation24_spill] sm:$0xff]  ;;  %v9652_v9 = vld [vmem:[#allocation30_spill] sm:$0xff] }
 0x714   : > { %v3525_v34 = vadd.f32 %v3524_v32, %v3512_v6  ;;  %v9649_v32 = vld [vmem:[#allocation31_spill] sm:$0xff]  ;;  %v9650_v6 = vld [vmem:[#allocation33_spill] sm:$0xff]  ;;  %v9651_v11 = vld [vmem:[#allocation28_spill] sm:$0xff] }
 0x715   : > { %v3536_v18 = vadd.f32 %v3534_v29, %v3499_v10  ;;  %v9645_v10 = vld [vmem:[#allocation27_spill] sm:$0xff] }
 0x716   : > { %v3531_v25 = vmul.f32 %v3525_v34, %v3525_v34  ;;  %v3529_v22 = vmul.f32 0.5, %v3525_v34  ;;  %v9653_v29 = vld [vmem:[#allocation35_spill] sm:$0xff] }
 0x717   : > { %v3538_v45 = vmul.f32 0.7978846, %v3536_v18  ;;  %v9655_v18 = vld [vmem:[#allocation32_spill] sm:$0xff] }
 0x718   : > { %v3533_v51 = vmul.f32 %v3531_v25, %v3525_v34  ;;  %v9656_v25 = vld [vmem:[#allocation34_spill] sm:$0xff] }
 0x719   : > { %6842 = vtanh.f32 %v3538_v45  ;;  %v3513_v48 = vpop.f32.mrf.mxu2  ;;  %v3526_v1 = vpop.f32.mrf.mxu3  ;;  %v9657_v45 = vld [vmem:[#allocation39_spill] sm:$0xff] }
 0x71a   : > { %v3535_v33 = vmul.f32 0.044715, %v3533_v51  ;;  %v9658_v51 = vld [vmem:[#allocation41_spill] sm:$0xff]  ;;  %v9659_v48 = vld [vmem:[#allocation36_spill] sm:$0xff]  ;;  %v9660_v1 = vld [vmem:[#allocation38_spill] sm:$0xff] }
 0x71c   : > { %v3537_v38 = vadd.f32 %v3535_v33, %v3525_v34  ;;  %v9654_v34 = vld [vmem:[#allocation37_spill] sm:$0xff]  ;;  %v9661_v33 = vld [vmem:[#allocation43_spill] sm:$0xff] }
 0x71e   : > { %v3539_v60 = vmul.f32 0.7978846, %v3537_v38  ;;  %v9662_v38 = vld [vmem:[#allocation45_spill] sm:$0xff] }
 0x71f   : > { %v6843_v47 = vpop.eup %6842 }
 0x720   : > { %6844 = vtanh.f32 %v3539_v60  ;;  %v3542_v63 = vadd.f32 1.0, %v6843_v47  ;;  %v9663_v60 = vld [vmem:[#allocation40_spill] sm:$0xff]  ;;  %v9664_v47 = vld [vmem:[#allocation42_spill] sm:$0xff] }
 0x722   : > { %v3544_v15 = vmul.f32 %v3542_v63, %v3528_v53  ;;  %v9665_v53 = vld [vmem:[#allocation44_spill] sm:$0xff]  ;;  %v9666_v63 = vld [vmem:[#allocation46_spill] sm:$0xff] }
 0x724   : > { %v3546_v62 = vpack.c.bf16 %v3544_v15, %v3544_v15 }
 0x726   : > { %v6845_v5 = vpop.eup %6844  ;;  %3721 = vmatmul.bf16.vlgmr.msra.gmra.mxu0 %v3546_v62  ;;  %3747 = vmatmul.bf16.vlgmr.msrb.gmra.mxu2 %v3546_v62  ;;  %v8590_v62 = vld [vmem:[%s9035_s16] sm:$0x3] }
 0x727   : > { %v3543_v20 = vadd.f32 1.0, %v6845_v5  ;;  %3860 = vmatpush.bf16.msra.mxu0 %v7473_v19  ;;  %3886 = vmatpush.bf16.msrb.mxu2 %v9636_v28  ;;  %v9643_v19 = vld [vmem:[#allocation20_spill] sm:$0xff]  ;;  %v3549_v5 = vperm.slane %v8590_v62, 0  ;;  %v3550_v28 = vperm.slane %v8590_v62, 1 }
 0x729   : > { %v3545_v39 = vmul.f32 %v3543_v20, %v3529_v22 }
 0x72b   : > { %v3547_v42 = vpack.c.bf16 %v3545_v39, %v3545_v39  ;;  %3861 = vmatpush.bf16.msra.mxu0 %v9637_v56  ;;  %3887 = vmatpush.bf16.msrb.mxu2 %v9638_v41 }
 0x72d   : > { %3734 = vmatmul.bf16.vlgmr.msra.gmra.mxu1 %v3547_v42  ;;  %3760 = vmatmul.bf16.vlgmr.msrb.gmra.mxu3 %v3547_v42 }
 0x72e   : > { %3873 = vmatpush.bf16.msra.mxu1 %v9639_v46  ;;  %3899 = vmatpush.bf16.msrb.mxu3 %v9640_v8 }
 0x72f   : > { %3862 = vmatpush.bf16.msra.mxu0 %v9641_v7  ;;  %3888 = vmatpush.bf16.msrb.mxu2 %v9642_v4 }
 0x732   : > { %3874 = vmatpush.bf16.msra.mxu1 %v9643_v19  ;;  %3900 = vmatpush.bf16.msrb.mxu3 %v9644_v13 }
 0x733   : > { %3863 = vmatpush.bf16.msra.mxu0 %v9645_v10  ;;  %3889 = vmatpush.bf16.msrb.mxu2 %v9646_v43 }
 0x736   : > { %3875 = vmatpush.bf16.msra.mxu1 %v9647_v21  ;;  %3901 = vmatpush.bf16.msrb.mxu3 %v9648_v50 }
 0x737   : > { %3864 = vmatpush.bf16.msra.mxu0 %v9649_v32  ;;  %3890 = vmatpush.bf16.msrb.mxu2 %v9650_v6 }
 0x73a   : > { %3876 = vmatpush.bf16.msra.mxu1 %v9651_v11  ;;  %3902 = vmatpush.bf16.msrb.mxu3 %v9652_v9 }
 0x73b   : > { %3865 = vmatpush.bf16.msra.mxu0 %v9653_v29  ;;  %3891 = vmatpush.bf16.msrb.mxu2 %v9654_v34 }
 0x73e   : > { %3877 = vmatpush.bf16.msra.mxu1 %v9655_v18  ;;  %3903 = vmatpush.bf16.msrb.mxu3 %v9656_v25 }
 0x73f   : > { %3866 = vmatpush.bf16.msra.mxu0 %v9657_v45  ;;  %3892 = vmatpush.bf16.msrb.mxu2 %v9658_v51 }
 0x742   : > { %3878 = vmatpush.bf16.msra.mxu1 %v9659_v48  ;;  %3904 = vmatpush.bf16.msrb.mxu3 %v9660_v1  ;;  %v8605_v48 = vld [vmem:[%s9036_s17] sm:$0x3] }
 0x743   : > { %3867 = vmatpush.bf16.msra.mxu0 %v9661_v33  ;;  %3893 = vmatpush.bf16.msrb.mxu2 %v9662_v38  ;;  %v8610_v33 = vld [vmem:[%s9037_s18] sm:$0x3] }
 0x746   : > { %3879 = vmatpush.bf16.msra.mxu1 %v9663_v60  ;;  %3905 = vmatpush.bf16.msrb.mxu3 %v9664_v47  ;;  %v3793_v60 = vperm.slane %v8605_v48, 0  ;;  %v3794_v47 = vperm.slane %v8605_v48, 1  ;;  %v6817_v48 = vld [vmem:[#allocation3] ss:$0 sm:$0xff] }
 0x74a   : > { %3880 = vmatpush.bf16.msra.mxu1 %v9665_v53  ;;  %3906 = vmatpush.bf16.msrb.mxu3 %v9666_v63  ;;  %v3800_v63 = vperm.slane %v8610_v33, 0 }
 0x7a3   : > { %v3722_v15 = vpop.f32.mrf.mxu0 }
 0x7a4   : > { %v3723_v42 = vadd.f32 %v3722_v15, %v3549_v5  ;;  %v3801_v15 = vperm.slane %v8610_v33, 1 }
 0x7a9   : > { %v3748_v22 = vpop.f32.mrf.mxu2 }
 0x7aa   : > { %v3735_v20 = vpop.f32.mrf.mxu1  ;;  %v3749_v41 = vadd.f32 %v3748_v22, %v3550_v28 }
 0x7ab   : > { %v3724_v39 = vpop.f32.mrf.mxu0  ;;  %v3736_v56 = vadd.f32 %v3735_v20, %v3723_v42 }
 0x7ad   : > { %v3765_v19 = vadd.f32 %v3736_v56, %v8412_v37 }
 0x7b0   : > { %v3761_v46 = vpop.f32.mrf.mxu3 }
 0x7b1   : > { %v3762_v8 = vadd.f32 %v3761_v46, %v3749_v41  ;;  %v3750_v7 = vpop.f32.mrf.mxu2 }
 0x7b2   : > { %v3737_v4 = vpop.f32.mrf.mxu1  ;;  %v9667_v7 = vld [vmem:[#allocation47_spill] sm:$0xff] }
 0x7b3   : > { %v3766_v13 = vadd.f32 %v3762_v8, %v8416_v23  ;;  %v9668_v4 = vld [vmem:[#allocation48_spill] sm:$0xff] }
 0x7b5   : > { %v3767_v10 = vadd.f32 %v3766_v13, %v3765_v19 }
 0x7b7   : > { %3768 = vadd.xlane.f32.xlu0 %v3767_v10  ;;  %v9671_v10 = vld [vmem:[#allocation51_spill] sm:$0xff] }
 0x7b8   : > { %v3763_v43 = vpop.f32.mrf.mxu3 }
 0x7b9   : > { %v9672_v43 = vld [vmem:[#allocation52_spill] sm:$0xff] }
 0x82a   : > { %v3769_v21 = vpop.xlane.xlu0 %3768 }
 0x82b   : > { %v3770_v50 = vmul.f32 %v3769_v21, %v8288_v17  ;;  %v9673_v21 = vld [vmem:[#allocation53_spill] sm:$0xff] }
 0x82d   : > { %v3771_v32 = vsub.f32 %v3765_v19, %v3770_v50  ;;  %v3772_v6 = vsub.f32 %v3766_v13, %v3770_v50  ;;  %v9669_v19 = vld [vmem:[#allocation49_spill] sm:$0xff]  ;;  %v9670_v13 = vld [vmem:[#allocation50_spill] sm:$0xff] }
 0x82e   : > { %v9674_v50 = vld [vmem:[#allocation54_spill] sm:$0xff] }
 0x82f   : > { %v3773_v11 = vmul.f32 %v3771_v32, %v3771_v32  ;;  %v3774_v9 = vmul.f32 %v3772_v6, %v3772_v6 }
 0x831   : > { %v3775_v29 = vadd.f32 %v3774_v9, %v3773_v11  ;;  %v9677_v11 = vld [vmem:[#allocation57_spill] sm:$0xff]  ;;  %v9678_v9 = vld [vmem:[#allocation58_spill] sm:$0xff] }
 0x833   : > { %3776 = vadd.xlane.f32.xlu1 %v3775_v29  ;;  %v9679_v29 = vld [vmem:[#allocation59_spill] sm:$0xff] }
 0x8a6   : > { %v3777_v34 = vpop.xlane.xlu1 %3776 }
 0x8a7   : > { %v3778_v18 = vmul.f32 %v3777_v34, %v8288_v17  ;;  %v9680_v34 = vld [vmem:[#allocation60_spill] sm:$0xff] }
 0x8a9   : > { %v3779_v25 = vadd.f32 1e-12, %v3778_v18  ;;  %v9681_v18 = vld [vmem:[#allocation61_spill] sm:$0xff] }
 0x8ab   : > { %6846 = vrsqrt.f32 %v3779_v25  ;;  %vm3786_vm11 = vweird.f32 %v3779_v25 }
 0x8b1   : > { %v6847_v37 = vpop.eup %6846 }
 0x8b2   : > { %v3781_v45 = vmul.f32 %v6847_v37, %v3779_v25  ;;  %vm3787_vm10 = vweird.f32 %v6847_v37  ;;  %v9682_v25 = vld [vmem:[#allocation62_spill] sm:$0xff] }
 0x8b3   : > { %vm3788_vm12 = vmor %vm3786_vm11, %vm3787_vm10 }
 0x8b4   : > { %v3782_v23 = vmul.f32 %v6847_v37, %v3781_v45  ;;  %v9684_v45 = vld [vmem:[#allocation64_spill] sm:$0xff] }
 0x8b6   : > { %v3783_v51 = vmul.f32 0.5, %v3782_v23  ;;  %v9685_v23 = vld [vmem:[#allocation65_spill] sm:$0xff] }
 0x8b8   : > { %v3784_v1 = vsub.f32 1.5, %v3783_v51  ;;  %v9686_v51 = vld [vmem:[#allocation66_spill] sm:$0xff] }
 0x8ba   : > { %v3785_v38 = vmul.f32 %v6847_v37, %v3784_v1  ;;  %v9687_v1 = vld [vmem:[#allocation67_spill] sm:$0xff] }
 0x8bc   : > { %v3789_v53 = vsel %vm3788_vm12, %v6847_v37, %v3785_v38  ;;  %v9683_v37 = vld [vmem:[#allocation63_spill] sm:$0xff]  ;;  %v9688_v38 = vld [vmem:[#allocation68_spill] sm:$0xff] }
 0x8bd   : > { %v3790_v22 = vmul.f32 %v3789_v53, %v3771_v32  ;;  %v3791_v20 = vmul.f32 %v3789_v53, %v3772_v6  ;;  %v9675_v32 = vld [vmem:[#allocation55_spill] sm:$0xff]  ;;  %v9676_v6 = vld [vmem:[#allocation56_spill] sm:$0xff]  ;;  %v9689_v53 = vld [vmem:[#allocation69_spill] sm:$0xff] }
 0x8bf   : > { %v3797_v39 = vmul.f32 %v3793_v60, %v3790_v22  ;;  %v3798_v42 = vmul.f32 %v3794_v47, %v3791_v20  ;;  %v9690_v22 = vld [vmem:[#allocation70_spill] sm:$0xff]  ;;  %v9691_v20 = vld [vmem:[#allocation71_spill] sm:$0xff] }
 0x8c1   : > { %v8622_v56 = vadd.f32 %v3800_v63, %v3797_v39  ;;  %v8626_v41 = vadd.f32 %v3801_v15, %v3798_v42  ;;  %v9692_v39 = vld [vmem:[#allocation72_spill] sm:$0xff]  ;;  %v9693_v42 = vld [vmem:[#allocation73_spill] sm:$0xff] }
 0x8c3   : > { %v8630_v46 = vpack.c.bf16 %v8622_v56, %v8622_v56  ;;  %v8634_v8 = vpack.c.bf16 %v8626_v41, %v8626_v41 }
 0x8c5   : > { %3816 = vmatmul.bf16.vlgmr.msrb.gmra.mxu0 %v8630_v46  ;;  %3829 = vmatmul.bf16.vlgmr.msrb.gmra.mxu1 %v8634_v8 }
 0x8c6   : > { %3842 = vmatmul.bf16.vlgmr.msra.gmra.mxu2 %v8630_v46  ;;  %3855 = vmatmul.bf16.vlgmr.msra.gmra.mxu3 %v8634_v8 }
 0x8c7   : > { %3912 = vmatpush.bf16.msrb.mxu0 %v9667_v7  ;;  %3925 = vmatpush.bf16.msrb.mxu1 %v9668_v4  ;;  %v9694_v7 = vld [vmem:[#allocation74_spill] sm:$0xff]  ;;  %v9695_v4 = vld [vmem:[#allocation75_spill] sm:$0xff] }
 0x8c8   : > { %3938 = vmatpush.bf16.msra.mxu2 %v9669_v19  ;;  %3951 = vmatpush.bf16.msra.mxu3 %v9670_v13  ;;  %v9696_v19 = vld [vmem:[#allocation76_spill] sm:$0xff]  ;;  %v9697_v13 = vld [vmem:[#allocation77_spill] sm:$0xff] }
 0x8cb   : > { %3913 = vmatpush.bf16.msrb.mxu0 %v9671_v10  ;;  %3926 = vmatpush.bf16.msrb.mxu1 %v9672_v43  ;;  %v9698_v10 = vld [vmem:[#allocation78_spill] sm:$0xff]  ;;  %v9699_v43 = vld [vmem:[#allocation79_spill] sm:$0xff] }
 0x8cc   : > { %3939 = vmatpush.bf16.msra.mxu2 %v9673_v21  ;;  %3952 = vmatpush.bf16.msra.mxu3 %v9674_v50  ;;  %v9700_v21 = vld [vmem:[#allocation80_spill] sm:$0xff]  ;;  %v9701_v50 = vld [vmem:[#allocation81_spill] sm:$0xff] }
 0x8cf   : > { %3914 = vmatpush.bf16.msrb.mxu0 %v9675_v32  ;;  %3927 = vmatpush.bf16.msrb.mxu1 %v9676_v6  ;;  %v9702_v32 = vld [vmem:[#allocation82_spill] sm:$0xff]  ;;  %v9703_v6 = vld [vmem:[#allocation83_spill] sm:$0xff] }
 0x8d0   : > { %3940 = vmatpush.bf16.msra.mxu2 %v9677_v11  ;;  %3953 = vmatpush.bf16.msra.mxu3 %v9678_v9  ;;  %v9704_v11 = vld [vmem:[#allocation84_spill] sm:$0xff]  ;;  %v9705_v9 = vld [vmem:[#allocation85_spill] sm:$0xff] }
 0x8d3   : > { %3915 = vmatpush.bf16.msrb.mxu0 %v9679_v29  ;;  %3928 = vmatpush.bf16.msrb.mxu1 %v9680_v34  ;;  %v9706_v29 = vld [vmem:[#allocation86_spill] sm:$0xff]  ;;  %v9707_v34 = vld [vmem:[#allocation87_spill] sm:$0xff] }
 0x8d4   : > { %3941 = vmatpush.bf16.msra.mxu2 %v9681_v18  ;;  %3954 = vmatpush.bf16.msra.mxu3 %v9682_v25  ;;  %v9708_v18 = vld [vmem:[#allocation88_spill] sm:$0xff]  ;;  %v9709_v25 = vld [vmem:[#allocation89_spill] sm:$0xff] }
 0x8d5   : > { %3868 = vmatmul.bf16.vlgmr.msra.gmra.mxu0 %v8630_v46  ;;  %3881 = vmatmul.bf16.vlgmr.msra.gmra.mxu1 %v8634_v8 }
 0x8d6   : > { %3894 = vmatmul.bf16.vlgmr.msrb.gmra.mxu2 %v8630_v46  ;;  %3907 = vmatmul.bf16.vlgmr.msrb.gmra.mxu3 %v8634_v8 }
 0x8d7   : > { %3916 = vmatpush.bf16.msrb.mxu0 %v9683_v37  ;;  %3929 = vmatpush.bf16.msrb.mxu1 %v9684_v45  ;;  %v9710_v37 = vld [vmem:[#allocation90_spill] sm:$0xff]  ;;  %v9711_v45 = vld [vmem:[#allocation91_spill] sm:$0xff] }
 0x8d8   : > { %3942 = vmatpush.bf16.msra.mxu2 %v9685_v23  ;;  %3955 = vmatpush.bf16.msra.mxu3 %v9686_v51  ;;  %v9712_v23 = vld [vmem:[#allocation92_spill] sm:$0xff]  ;;  %v9713_v51 = vld [vmem:[#allocation93_spill] sm:$0xff] }
 0x8db   : > { %3917 = vmatpush.bf16.msrb.mxu0 %v9687_v1  ;;  %3930 = vmatpush.bf16.msrb.mxu1 %v9688_v38  ;;  %v9714_v1 = vld [vmem:[#allocation94_spill] sm:$0xff]  ;;  %v9715_v38 = vld [vmem:[#allocation95_spill] sm:$0xff] }
 0x8dc   : > { %3943 = vmatpush.bf16.msra.mxu2 %v9689_v53  ;;  %3956 = vmatpush.bf16.msra.mxu3 %v9690_v22  ;;  %v9716_v53 = vld [vmem:[#allocation96_spill] sm:$0xff]  ;;  %v9717_v22 = vld [vmem:[#allocation97_spill] sm:$0xff] }
 0x8df   : > { %3918 = vmatpush.bf16.msrb.mxu0 %v9691_v20  ;;  %3931 = vmatpush.bf16.msrb.mxu1 %v9692_v39  ;;  %v9718_v20 = vld [vmem:[#allocation98_spill] sm:$0xff]  ;;  %v9719_v39 = vld [vmem:[#allocation99_spill] sm:$0xff] }
 0x8e0   : > { %3944 = vmatpush.bf16.msra.mxu2 %v9693_v42  ;;  %3957 = vmatpush.bf16.msra.mxu3 %v9694_v7  ;;  %v9720_v42 = vld [vmem:[#allocation100_spill] sm:$0xff]  ;;  %v9721_v7 = vld [vmem:[#allocation101_spill] sm:$0xff] }
 0x8e3   : > { %3919 = vmatpush.bf16.msrb.mxu0 %v9695_v4  ;;  %3932 = vmatpush.bf16.msrb.mxu1 %v9696_v19  ;;  %v9722_v4 = vld [vmem:[#allocation102_spill] sm:$0xff]  ;;  %v9723_v19 = vld [vmem:[#allocation103_spill] sm:$0xff] }
 0x8e4   : > { %3945 = vmatpush.bf16.msra.mxu2 %v9697_v13  ;;  %3958 = vmatpush.bf16.msra.mxu3 %v9698_v10  ;;  %v9724_v13 = vld [vmem:[#allocation104_spill] sm:$0xff]  ;;  %v9725_v10 = vld [vmem:[#allocation105_spill] sm:$0xff] }
 0x8e6   : > { %3920 = vmatmul.bf16.vlgmr.msrb.gmra.mxu0 %v8630_v46  ;;  %3933 = vmatmul.bf16.vlgmr.msrb.gmra.mxu1 %v8634_v8 }
 0x8e7   : > { %3964 = vmatpush.bf16.msra.mxu0 %v9699_v43  ;;  %3977 = vmatpush.bf16.msra.mxu1 %v9700_v21  ;;  %v9726_v43 = vld [vmem:[#allocation106_spill] sm:$0xff]  ;;  %v9727_v21 = vld [vmem:[#allocation107_spill] sm:$0xff] }
 0x8e8   : > { %3990 = vmatpush.bf16.msrb.mxu2 %v9701_v50  ;;  %4003 = vmatpush.bf16.msrb.mxu3 %v9702_v32  ;;  %v9728_v50 = vld [vmem:[#allocation108_spill] sm:$0xff]  ;;  %v9729_v32 = vld [vmem:[#allocation109_spill] sm:$0xff] }
 0x8e9   : > { %3946 = vmatmul.bf16.vlgmr.msra.gmra.mxu2 %v8630_v46  ;;  %3959 = vmatmul.bf16.vlgmr.msra.gmra.mxu3 %v8634_v8 }
 0x8eb   : > { %3965 = vmatpush.bf16.msra.mxu0 %v9703_v6  ;;  %3978 = vmatpush.bf16.msra.mxu1 %v9704_v11  ;;  %v9730_v6 = vld [vmem:[#allocation110_spill] sm:$0xff]  ;;  %v9731_v11 = vld [vmem:[#allocation111_spill] sm:$0xff] }
 0x8ec   : > { %3991 = vmatpush.bf16.msrb.mxu2 %v9705_v9  ;;  %4004 = vmatpush.bf16.msrb.mxu3 %v9706_v29  ;;  %v9732_v9 = vld [vmem:[#allocation112_spill] sm:$0xff]  ;;  %v9733_v29 = vld [vmem:[#allocation113_spill] sm:$0xff] }
 0x8ef   : > { %3966 = vmatpush.bf16.msra.mxu0 %v9707_v34  ;;  %3979 = vmatpush.bf16.msra.mxu1 %v9708_v18  ;;  %v9734_v34 = vld [vmem:[#allocation114_spill] sm:$0xff]  ;;  %v9735_v18 = vld [vmem:[#allocation115_spill] sm:$0xff] }
 0x8f0   : > { %3992 = vmatpush.bf16.msrb.mxu2 %v9709_v25  ;;  %4005 = vmatpush.bf16.msrb.mxu3 %v9710_v37  ;;  %v9736_v25 = vld [vmem:[#allocation116_spill] sm:$0xff]  ;;  %v9737_v37 = vld [vmem:[#allocation117_spill] sm:$0xff] }
 0x8f3   : > { %3967 = vmatpush.bf16.msra.mxu0 %v9711_v45  ;;  %3980 = vmatpush.bf16.msra.mxu1 %v9712_v23  ;;  %v9738_v45 = vld [vmem:[#allocation118_spill] sm:$0xff]  ;;  %v9739_v23 = vld [vmem:[#allocation119_spill] sm:$0xff] }
 0x8f4   : > { %3993 = vmatpush.bf16.msrb.mxu2 %v9713_v51  ;;  %4006 = vmatpush.bf16.msrb.mxu3 %v9714_v1  ;;  %v9740_v51 = vld [vmem:[#allocation120_spill] sm:$0xff]  ;;  %v9741_v1 = vld [vmem:[#allocation121_spill] sm:$0xff] }
 0x8f7   : > { %3968 = vmatpush.bf16.msra.mxu0 %v9715_v38  ;;  %3981 = vmatpush.bf16.msra.mxu1 %v9716_v53  ;;  %v9742_v38 = vld [vmem:[#allocation122_spill] sm:$0xff]  ;;  %v9743_v53 = vld [vmem:[#allocation123_spill] sm:$0xff] }
 0x8f8   : > { %3994 = vmatpush.bf16.msrb.mxu2 %v9717_v22  ;;  %4007 = vmatpush.bf16.msrb.mxu3 %v9718_v20  ;;  %v9744_v22 = vld [vmem:[#allocation124_spill] sm:$0xff]  ;;  %v9745_v20 = vld [vmem:[#allocation125_spill] sm:$0xff] }
 0x8fb   : > { %3969 = vmatpush.bf16.msra.mxu0 %v9719_v39  ;;  %3982 = vmatpush.bf16.msra.mxu1 %v9720_v42  ;;  %v9746_v39 = vld [vmem:[#allocation126_spill] sm:$0xff]  ;;  %v9747_v42 = vld [vmem:[#allocation127_spill] sm:$0xff] }
 0x8fc   : > { %3995 = vmatpush.bf16.msrb.mxu2 %v9721_v7  ;;  %4008 = vmatpush.bf16.msrb.mxu3 %v9722_v4  ;;  %v9748_v7 = vld [vmem:[#allocation128_spill] sm:$0xff]  ;;  %v9749_v4 = vld [vmem:[#allocation129_spill] sm:$0xff] }
 0x8ff   : > { %3970 = vmatpush.bf16.msra.mxu0 %v9723_v19  ;;  %3983 = vmatpush.bf16.msra.mxu1 %v9724_v13  ;;  %v9750_v19 = vld [vmem:[#allocation130_spill] sm:$0xff]  ;;  %v9751_v13 = vld [vmem:[#allocation131_spill] sm:$0xff] }
 0x900   : > { %3996 = vmatpush.bf16.msrb.mxu2 %v9725_v10  ;;  %4009 = vmatpush.bf16.msrb.mxu3 %v9726_v43  ;;  %v9752_v10 = vld [vmem:[#allocation132_spill] sm:$0xff]  ;;  %v9753_v43 = vld [vmem:[#allocation133_spill] sm:$0xff] }
 0x903   : > { %3971 = vmatpush.bf16.msra.mxu0 %v9727_v21  ;;  %3984 = vmatpush.bf16.msra.mxu1 %v9728_v50  ;;  %v9754_v21 = vld [vmem:[#allocation134_spill] sm:$0xff]  ;;  %v9755_v50 = vld [vmem:[#allocation135_spill] sm:$0xff] }
 0x904   : > { %3997 = vmatpush.bf16.msrb.mxu2 %v9729_v32  ;;  %4010 = vmatpush.bf16.msrb.mxu3 %v9730_v6  ;;  %v9756_v32 = vld [vmem:[#allocation136_spill] sm:$0xff]  ;;  %v9757_v6 = vld [vmem:[#allocation137_spill] sm:$0xff] }
 0x906   : > { %3972 = vmatmul.bf16.vlgmr.msra.gmra.mxu0 %v8630_v46  ;;  %3985 = vmatmul.bf16.vlgmr.msra.gmra.mxu1 %v8634_v8 }
 0x907   : > { %4016 = vmatpush.bf16.msrb.mxu0 %v9731_v11  ;;  %4029 = vmatpush.bf16.msrb.mxu1 %v9732_v9  ;;  %v9758_v11 = vld [vmem:[#allocation138_spill] sm:$0xff]  ;;  %v9759_v9 = vld [vmem:[#allocation139_spill] sm:$0xff] }
 0x908   : > { %4042 = vmatpush.bf16.msra.mxu2 %v9733_v29  ;;  %4055 = vmatpush.bf16.msra.mxu3 %v9734_v34  ;;  %v9760_v29 = vld [vmem:[#allocation140_spill] sm:$0xff]  ;;  %v9761_v34 = vld [vmem:[#allocation141_spill] sm:$0xff] }
 0x909   : > { %3998 = vmatmul.bf16.vlgmr.msrb.gmra.mxu2 %v8630_v46  ;;  %4011 = vmatmul.bf16.vlgmr.msrb.gmra.mxu3 %v8634_v8 }
 0x90b   : > { %4017 = vmatpush.bf16.msrb.mxu0 %v9735_v18  ;;  %4030 = vmatpush.bf16.msrb.mxu1 %v9736_v25  ;;  %v9767_v18 = vld [vmem:[#allocation147_spill] sm:$0xff]  ;;  %v9768_v25 = vld [vmem:[#allocation148_spill] sm:$0xff] }
 0x90c   : > { %4043 = vmatpush.bf16.msra.mxu2 %v9737_v37  ;;  %4056 = vmatpush.bf16.msra.mxu3 %v9738_v45  ;;  %v9769_v37 = vld [vmem:[#allocation149_spill] sm:$0xff]  ;;  %v9770_v45 = vld [vmem:[#allocation150_spill] sm:$0xff] }
 0x90f   : > { %4018 = vmatpush.bf16.msrb.mxu0 %v9739_v23  ;;  %4031 = vmatpush.bf16.msrb.mxu1 %v9740_v51  ;;  %v9771_v23 = vld [vmem:[#allocation151_spill] sm:$0xff]  ;;  %v9772_v51 = vld [vmem:[#allocation152_spill] sm:$0xff] }
 0x910   : > { %4044 = vmatpush.bf16.msra.mxu2 %v9741_v1  ;;  %4057 = vmatpush.bf16.msra.mxu3 %v9742_v38  ;;  %v9773_v1 = vld [vmem:[#allocation153_spill] sm:$0xff]  ;;  %v9774_v38 = vld [vmem:[#allocation154_spill] sm:$0xff] }
 0x913   : > { %4019 = vmatpush.bf16.msrb.mxu0 %v9743_v53  ;;  %4032 = vmatpush.bf16.msrb.mxu1 %v9744_v22  ;;  %v9775_v53 = vld [vmem:[#allocation155_spill] sm:$0xff]  ;;  %v9776_v22 = vld [vmem:[#allocation156_spill] sm:$0xff] }
 0x914   : > { %4045 = vmatpush.bf16.msra.mxu2 %v9745_v20  ;;  %4058 = vmatpush.bf16.msra.mxu3 %v9746_v39  ;;  %v9777_v20 = vld [vmem:[#allocation157_spill] sm:$0xff]  ;;  %v9778_v39 = vld [vmem:[#allocation158_spill] sm:$0xff] }
 0x917   : > { %4020 = vmatpush.bf16.msrb.mxu0 %v9747_v42  ;;  %4033 = vmatpush.bf16.msrb.mxu1 %v9748_v7  ;;  %v9779_v42 = vld [vmem:[#allocation159_spill] sm:$0xff]  ;;  %v9780_v7 = vld [vmem:[#allocation160_spill] sm:$0xff] }
 0x918   : > { %4046 = vmatpush.bf16.msra.mxu2 %v9749_v4  ;;  %4059 = vmatpush.bf16.msra.mxu3 %v9750_v19  ;;  %v9781_v4 = vld [vmem:[#allocation161_spill] sm:$0xff]  ;;  %v9782_v19 = vld [vmem:[#allocation162_spill] sm:$0xff] }
 0x91b   : > { %4021 = vmatpush.bf16.msrb.mxu0 %v9751_v13  ;;  %4034 = vmatpush.bf16.msrb.mxu1 %v9752_v10  ;;  %v9783_v13 = vld [vmem:[#allocation163_spill] sm:$0xff]  ;;  %v9784_v10 = vld [vmem:[#allocation164_spill] sm:$0xff] }
 0x91c   : > { %4047 = vmatpush.bf16.msra.mxu2 %v9753_v43  ;;  %4060 = vmatpush.bf16.msra.mxu3 %v9754_v21  ;;  %v9785_v43 = vld [vmem:[#allocation165_spill] sm:$0xff]  ;;  %v9786_v21 = vld [vmem:[#allocation166_spill] sm:$0xff] }
 0x91f   : > { %4022 = vmatpush.bf16.msrb.mxu0 %v9755_v50  ;;  %4035 = vmatpush.bf16.msrb.mxu1 %v9756_v32  ;;  %v9787_v50 = vld [vmem:[#allocation167_spill] sm:$0xff]  ;;  %v9788_v32 = vld [vmem:[#allocation168_spill] sm:$0xff] }
 0x920   : > { %4048 = vmatpush.bf16.msra.mxu2 %v7872_v44  ;;  %4061 = vmatpush.bf16.msra.mxu3 %v7874_v35  ;;  %v9764_v44 = vld [vmem:[#allocation144_spill] sm:$0xff]  ;;  %v9765_v35 = vld [vmem:[#allocation145_spill] sm:$0xff] }
 0x923   : > { %4023 = vmatpush.bf16.msrb.mxu0 %v7878_v24  ;;  %4036 = vmatpush.bf16.msrb.mxu1 %v7880_v12  ;;  %v9762_v24 = vld [vmem:[#allocation142_spill] sm:$0xff]  ;;  %v9763_v12 = vld [vmem:[#allocation143_spill] sm:$0xff] }
 0x924   : > { %4049 = vmatpush.bf16.msra.mxu2 %v7884_v40  ;;  %4062 = vmatpush.bf16.msra.mxu3 %v9757_v6  ;;  %v9766_v40 = vld [vmem:[#allocation146_spill] sm:$0xff] }
 0x926   : > { %4024 = vmatmul.bf16.vlgmr.msrb.gmra.mxu0 %v8630_v46  ;;  %4037 = vmatmul.bf16.vlgmr.msrb.gmra.mxu1 %v8634_v8 }
 0x927   : > { %4068 = vmatpush.bf16.msra.mxu0 %v9758_v11  ;;  %4081 = vmatpush.bf16.msra.mxu1 %v9759_v9 }
 0x928   : > { %4094 = vmatpush.bf16.msrb.mxu2 %v9760_v29  ;;  %4107 = vmatpush.bf16.msrb.mxu3 %v9761_v34  ;;  %v9789_v29 = vld [vmem:[#allocation169_spill] sm:$0xff] }
 0x929   : > { %4050 = vmatmul.bf16.vlgmr.msra.gmra.mxu2 %v8630_v46  ;;  %4063 = vmatmul.bf16.vlgmr.msra.gmra.mxu3 %v8634_v8  ;;  %v9790_v34 = vperm.slane %v9789_v29, 1 }
 0x92b   : > { %4069 = vmatpush.bf16.msra.mxu0 %v9762_v24  ;;  %4082 = vmatpush.bf16.msra.mxu1 %v9763_v12 }
 0x92c   : > { %4095 = vmatpush.bf16.msrb.mxu2 %v9764_v44  ;;  %4108 = vmatpush.bf16.msrb.mxu3 %v9765_v35 }
 0x92f   : > { %4070 = vmatpush.bf16.msra.mxu0 %v9766_v40  ;;  %4083 = vmatpush.bf16.msra.mxu1 %v9767_v18  ;;  %v9791_v40 = vperm.slane %v9789_v29, 0 }
 0x930   : > { %4096 = vmatpush.bf16.msrb.mxu2 %v9768_v25  ;;  %4109 = vmatpush.bf16.msrb.mxu3 %v9769_v37 }
 0x933   : > { %4071 = vmatpush.bf16.msra.mxu0 %v9770_v45  ;;  %4084 = vmatpush.bf16.msra.mxu1 %v9771_v23 }
 0x934   : > { %4097 = vmatpush.bf16.msrb.mxu2 %v9772_v51  ;;  %4110 = vmatpush.bf16.msrb.mxu3 %v9773_v1  ;;  %v9792_v51 = vperm.slane %v9789_v29, 2 }
 0x937   : > { %4072 = vmatpush.bf16.msra.mxu0 %v9774_v38  ;;  %4085 = vmatpush.bf16.msra.mxu1 %v9775_v53 }
 0x938   : > { %4098 = vmatpush.bf16.msrb.mxu2 %v9776_v22  ;;  %4111 = vmatpush.bf16.msrb.mxu3 %v9777_v20 }
 0x93b   : > { %4073 = vmatpush.bf16.msra.mxu0 %v9778_v39  ;;  %4086 = vmatpush.bf16.msra.mxu1 %v9779_v42 }
 0x93c   : > { %4099 = vmatpush.bf16.msrb.mxu2 %v7960_v27  ;;  %4112 = vmatpush.bf16.msrb.mxu3 %v9780_v7 }
 0x93f   : > { %4074 = vmatpush.bf16.msra.mxu0 %v9781_v4  ;;  %4087 = vmatpush.bf16.msra.mxu1 %v9782_v19 }
 0x940   : > { %4100 = vmatpush.bf16.msrb.mxu2 %v9783_v13  ;;  %4113 = vmatpush.bf16.msrb.mxu3 %v9784_v10 }
 0x942   : > { %v3817_v27 = vpop.f32.mrf.mxu0  ;;  %v3830_v6 = vpop.f32.mrf.mxu1 }
 0x943   : > { %4075 = vmatpush.bf16.msra.mxu0 %v9785_v43  ;;  %4088 = vmatpush.bf16.msra.mxu1 %v9786_v21  ;;  %v3818_v18 = vadd.f32 %v3817_v27, %v9791_v40  ;;  %v9793_v21 = vperm.slane %v9789_v29, 4  ;;  %v9794_v27 = vperm.slane %v9789_v29, 3 }
 0x944   : > { %4101 = vmatpush.bf16.msrb.mxu2 %v9787_v50  ;;  %4114 = vmatpush.bf16.msrb.mxu3 %v9788_v32 }
 0x945   : > { %v3831_v37 = vadd.f32 %v3830_v6, %v3818_v18 }
 0x946   : > { %4076 = vmatmul.bf16.vlgmr.msra.gmra.mxu0 %v8630_v46  ;;  %4089 = vmatmul.bf16.vlgmr.msra.gmra.mxu1 %v8634_v8 }
 0x947   : > { %4102 = vmatmul.bf16.vlgmr.msrb.gmra.mxu2 %v8630_v46  ;;  %4115 = vmatmul.bf16.vlgmr.msrb.gmra.mxu3 %v8634_v8  ;;  %v4120_v38 = vpack.c.bf16 %v3831_v37, %v3831_v37 }
 0x949   : > { %v3843_v11 = vpop.f32.mrf.mxu2  ;;  %v3856_v9 = vpop.f32.mrf.mxu3 }
 0x94a   : > { %v3844_v24 = vadd.f32 %v3843_v11, %v9790_v34  ;;  %v3819_v12 = vpop.f32.mrf.mxu0  ;;  %v3832_v44 = vpop.f32.mrf.mxu1 }
 0x94b   : > { %v9795_v12 = vperm.slane %v9789_v29, 5 }
 0x94c   : > { %v3857_v35 = vadd.f32 %v3856_v9, %v3844_v24 }
 0x94e   : > { %v4121_v25 = vpack.c.bf16 %v3857_v35, %v3857_v35 }
 0x950   : > { %4130 = vmatpush.bf16.xpose.msrb.mxu0 %v4121_v25 }
 0x951   : > { %v3845_v45 = vpop.f32.mrf.mxu2  ;;  %v3858_v46 = vpop.f32.mrf.mxu3 }
 0x952   : > { %v3869_v23 = vpop.f32.mrf.mxu0  ;;  %v3882_v8 = vpop.f32.mrf.mxu1 }
 0x953   : > { %v3870_v1 = vadd.f32 %v3869_v23, %v9792_v51 }
 0x955   : > { %v3883_v53 = vadd.f32 %v3882_v8, %v3870_v1 }
 0x957   : > { %v4122_v22 = vpack.c.bf16 %v3883_v53, %v3883_v53  ;;  %4131 = vmatmul.bf16.vlgmr.msrb.gmra.mxu0 %v4120_v38  ;;  %v9796_v53 = vperm.slane %v9789_v29, 7 }
 0x959   : > { %v4154_v20 = vsel %vm2656_vm4, %v4122_v22, 0  ;;  %v3895_v39 = vpop.f32.mrf.mxu2  ;;  %v3908_v42 = vpop.f32.mrf.mxu3 }
 0x95a   : > { %v3871_v7 = vpop.f32.mrf.mxu0  ;;  %v3884_v4 = vpop.f32.mrf.mxu1  ;;  %4163 = vmatpush.bf16.msrb.mxu1 %v4154_v20  ;;  %v3896_v6 = vadd.f32 %v3895_v39, %v9794_v27 }
 0x95b   : > { %v9797_v7 = vperm.slane %v9789_v29, 6 }
 0x95c   : > { %v3909_v24 = vadd.f32 %v3908_v42, %v3896_v6 }
 0x95e   : > { %v4170_v25 = vpack.c.bf16 %v3909_v24, %v3909_v24 }
 0x961   : > { %v3897_v19 = vpop.f32.mrf.mxu2  ;;  %v3910_v13 = vpop.f32.mrf.mxu3 }
 0x963   : > { %v3921_v10 = vpop.f32.mrf.mxu0  ;;  %v3934_v43 = vpop.f32.mrf.mxu1 }
 0x964   : > { %v3922_v50 = vadd.f32 %v3921_v10, %v9793_v21 }
 0x966   : > { %v3935_v32 = vadd.f32 %v3934_v43, %v3922_v50  ;;  %v9798_v50 = vld [vmem:[#allocation171_spill] sm:$0xff] }
 0x968   : > { %v4171_v11 = vpack.c.bf16 %v3935_v32, %v3935_v32  ;;  %v9799_v32 = vld [vmem:[#allocation172_spill] sm:$0xff] }
 0x96a   : > { %4180 = vmatpush.bf16.xpose.msra.mxu2 %v4171_v11  ;;  %v9800_v11 = vld [vmem:[#allocation170_spill] sm:$0xff] }
 0x96b   : > { %v3923_v35 = vpop.f32.mrf.mxu0  ;;  %v3936_v40 = vpop.f32.mrf.mxu1  ;;  %v9801_v29 = vperm.slane %v9800_v11, 0 }
 0x96c   : > { %v3947_v9 = vpop.f32.mrf.mxu2  ;;  %v3960_v34 = vpop.f32.mrf.mxu3 }
 0x96d   : > { %v3948_v44 = vadd.f32 %v3947_v9, %v9795_v12 }
 0x96f   : > { %v3961_v18 = vadd.f32 %v3960_v34, %v3948_v44  ;;  %v9802_v34 = vld [vmem:[#allocation173_spill] sm:$0xff]  ;;  %v9803_v44 = vld [vmem:[#allocation174_spill] sm:$0xff] }
 0x971   : > { %v4172_v37 = vpack.c.bf16 %v3961_v18, %v3961_v18  ;;  %4181 = vmatmul.bf16.vlgmr.msra.gmra.mxu2 %v4170_v25  ;;  %v9804_v25 = vld [vmem:[#allocation175_spill] sm:$0xff] }
 0x973   : > { %v4204_v45 = vsel %vm2656_vm4, %v4172_v37, 0  ;;  %v9805_v37 = vld [vmem:[#allocation176_spill] sm:$0xff] }
 0x974   : > { %v3949_v46 = vpop.f32.mrf.mxu2  ;;  %v3962_v23 = vpop.f32.mrf.mxu3  ;;  %4213 = vmatpush.bf16.msra.mxu3 %v4204_v45  ;;  %v9806_v45 = vld [vmem:[#allocation177_spill] sm:$0xff] }
 0x983   : > { %v3973_v8 = vpop.f32.mrf.mxu0  ;;  %v3986_v51 = vpop.f32.mrf.mxu1 }
 0x984   : > { %v3974_v4 = vadd.f32 %v3973_v8, %v9797_v7  ;;  %v9807_v8 = vld [vmem:[#allocation178_spill] sm:$0xff]  ;;  %v9812_v7 = vperm.slane %v9800_v11, 1 }
 0x986   : > { %v3987_v13 = vadd.f32 %v3986_v51, %v3974_v4  ;;  %v9808_v51 = vld [vmem:[#allocation179_spill] sm:$0xff] }
 0x988   : > { %v4220_v21 = vpack.c.bf16 %v3987_v13, %v3987_v13  ;;  %v9813_v13 = vld [vmem:[#allocation185_spill] sm:$0xff] }
 0x98b   : > { %v3975_v20 = vpop.f32.mrf.mxu0  ;;  %v3988_v39 = vpop.f32.mrf.mxu1 }
 0x98c   : > { %v3999_v1 = vpop.f32.mrf.mxu2  ;;  %v4012_v38 = vpop.f32.mrf.mxu3  ;;  %v9811_v39 = vld [vmem:[#allocation183_spill] sm:$0xff] }
 0x98d   : > { %v4000_v22 = vadd.f32 %v3999_v1, %v9796_v53  ;;  %v9809_v1 = vld [vmem:[#allocation181_spill] sm:$0xff] }
 0x98f   : > { %v4013_v42 = vadd.f32 %v4012_v38, %v4000_v22  ;;  %v9810_v22 = vperm.slane %v9800_v11, 2 }
 0x991   : > { %v4221_v19 = vpack.c.bf16 %v4013_v42, %v4013_v42 }
 0x993   : > { %4230 = vmatpush.bf16.xpose.msra.mxu0 %v4221_v19 }
 0x994   : > { %v4001_v10 = vpop.f32.mrf.mxu2  ;;  %v4014_v43 = vpop.f32.mrf.mxu3 }
 0x99a   : > { %4231 = vmatmul.bf16.vlgmr.msra.gmra.mxu0 %v4220_v21 }
 0x99b   : > { %4328 = vmatpush.bf16.msrb.mxu0 %v8064_v31 }
 0x99f   : > { %4329 = vmatpush.bf16.msrb.mxu0 %v8069_v36 }
 0x9a3   : > { %4330 = vmatpush.bf16.msrb.mxu0 %v9798_v50  ;;  %v4025_v27 = vpop.f32.mrf.mxu0  ;;  %v4038_v6 = vpop.f32.mrf.mxu1  ;;  %v9814_v50 = vperm.slane %v9800_v11, 3 }
 0x9a4   : > { %v4026_v9 = vadd.f32 %v4025_v27, %v9801_v29  ;;  %v9815_v29 = vld [vmem:[#allocation189_spill] sm:$0xff] }
 0x9a6   : > { %v4039_v24 = vadd.f32 %v4038_v6, %v4026_v9  ;;  %v9816_v9 = vld [vmem:[#allocation187_spill] sm:$0xff] }
 0x9a7   : > { %4331 = vmatpush.bf16.msrb.mxu0 %v9799_v32 }
 0x9a8   : > { %v4222_v12 = vpack.c.bf16 %v4039_v24, %v4039_v24 }
 0x9aa   : > { %v4254_v31 = vsel %vm2656_vm4, %v4222_v12, 0 }
 0x9ab   : > { %4332 = vmatpush.bf16.msrb.mxu0 %v9802_v34  ;;  %v4027_v40 = vpop.f32.mrf.mxu0  ;;  %v4040_v18 = vpop.f32.mrf.mxu1  ;;  %4263 = vmatpush.bf16.msra.mxu1 %v4254_v31  ;;  %v9818_v31 = vld [vmem:[#allocation190_spill] sm:$0xff] }
 0x9ac   : > { %v4051_v35 = vpop.f32.mrf.mxu2  ;;  %v4064_v36 = vpop.f32.mrf.mxu3  ;;  %v9819_v40 = vld [vmem:[#allocation194_spill] sm:$0xff]  ;;  %v9820_v18 = vld [vmem:[#allocation197_spill] sm:$0xff] }
 0x9ad   : > { %v4052_v4 = vadd.f32 %v4051_v35, %v9812_v7  ;;  %v9829_v7 = vld [vmem:[#allocation213_spill] sm:$0xff] }
 0x9af   : > { %4333 = vmatpush.bf16.msrb.mxu0 %v9803_v44  ;;  %v4065_v21 = vadd.f32 %v4064_v36, %v4052_v4  ;;  %v9817_v44 = vld [vmem:[#allocation193_spill] sm:$0xff] }
 0x9b1   : > { %v4270_v24 = vpack.c.bf16 %v4065_v21, %v4065_v21  ;;  %v9831_v21 = vld [vmem:[#allocation215_spill] sm:$0xff] }
 0x9b3   : > { %4334 = vmatpush.bf16.msrb.mxu0 %v9804_v25 }
 0x9b4   : > { %v4053_v46 = vpop.f32.mrf.mxu2  ;;  %v4066_v23 = vpop.f32.mrf.mxu3 }
 0x9b5   : > { %v6878_v46 = vld [vmem:[%s7262_s7] ss:$0 sm:$0xff] }
 0x9b7   : > { %4335 = vmatpush.bf16.msrb.mxu0 %v9805_v37 }
 0x9bb   : > { %4380 = vmatpush.bf16.msra.mxu0 %v9806_v45  ;;  %v9821_v45 = vld [vmem:[#allocation199_spill] sm:$0xff] }
 0x9bf   : > { %4381 = vmatpush.bf16.msra.mxu0 %v9807_v8 }
 0x9c3   : > { %4382 = vmatpush.bf16.msra.mxu0 %v9808_v51  ;;  %v4077_v38 = vpop.f32.mrf.mxu0  ;;  %v4090_v53 = vpop.f32.mrf.mxu1  ;;  %v9822_v51 = vld [vmem:[#allocation202_spill] sm:$0xff] }
 0x9c4   : > { %v4078_v20 = vadd.f32 %v4077_v38, %v9810_v22  ;;  %v9823_v38 = vld [vmem:[#allocation204_spill] sm:$0xff]  ;;  %v9825_v22 = vld [vmem:[#allocation207_spill] sm:$0xff] }
 0x9c6   : > { %v4091_v42 = vadd.f32 %v4090_v53, %v4078_v20  ;;  %v9824_v53 = vld [vmem:[#allocation206_spill] sm:$0xff]  ;;  %v9826_v20 = vld [vmem:[#allocation209_spill] sm:$0xff] }
 0x9c7   : > { %4383 = vmatpush.bf16.msra.mxu0 %v9809_v1 }
 0x9c8   : > { %v4271_v19 = vpack.c.bf16 %v4091_v42, %v4091_v42  ;;  %v9828_v42 = vld [vmem:[#allocation212_spill] sm:$0xff] }
 0x9ca   : > { %v4103_v10 = vpop.f32.mrf.mxu2  ;;  %v4116_v43 = vpop.f32.mrf.mxu3  ;;  %4280 = vmatpush.bf16.xpose.msrb.mxu2 %v4271_v19 }
 0x9cb   : > { %4384 = vmatpush.bf16.msra.mxu0 %v9811_v39  ;;  %v4104_v32 = vadd.f32 %v4103_v10, %v9814_v50  ;;  %v4079_v27 = vpop.f32.mrf.mxu0  ;;  %v4092_v6 = vpop.f32.mrf.mxu1  ;;  %v9827_v39 = vld [vmem:[#allocation211_spill] sm:$0xff] }
 0x9cd   : > { %v4117_v34 = vadd.f32 %v4116_v43, %v4104_v32  ;;  %v9832_v32 = vld [vmem:[#allocation216_spill] sm:$0xff] }
 0x9cf   : > { %4385 = vmatpush.bf16.msra.mxu0 %v9813_v13  ;;  %v4272_v12 = vpack.c.bf16 %v4117_v34, %v4117_v34  ;;  %v9830_v13 = vld [vmem:[#allocation214_spill] sm:$0xff] }
 0x9d1   : > { %v4304_v35 = vsel %vm2656_vm4, %v4272_v12, 0  ;;  %4281 = vmatmul.bf16.vlgmr.msrb.gmra.mxu2 %v4270_v24 }
 0x9d2   : > { %4354 = vmatpush.bf16.msra.mxu2 %v9815_v29  ;;  %v4105_v36 = vpop.f32.mrf.mxu2  ;;  %v4118_v11 = vpop.f32.mrf.mxu3  ;;  %4313 = vmatpush.bf16.msrb.mxu3 %v4304_v35 }
 0x9d3   : > { %4386 = vmatpush.bf16.msra.mxu0 %v9816_v9 }
 0x9d4   : > { %v4132_v25 = vpop.f32.mrf.mxu0 }
 0x9d5   : > { %v4136_v37 = vmul.f32 0.125, %v4132_v25 }
 0x9d6   : > { %4355 = vmatpush.bf16.msra.mxu2 %v9817_v44 }
 0x9d7   : > { %4387 = vmatpush.bf16.msra.mxu0 %v9818_v31  ;;  %v4137_v23 = vadd.f32 %v6878_v46, %v4136_v37 }
 0x9d9   : > { %v4138_v8 = vsel %vm2640_vm5, %v4137_v23, -inf }
 0x9da   : > { %4356 = vmatpush.bf16.msra.mxu2 %v9819_v40  ;;  %4139 = vmax.xlane.f32.xlu0 %v4138_v8 }
 0x9dc   : > { %v4134_v1 = vpop.f32.mrf.mxu0 }
 0x9de   : > { %4357 = vmatpush.bf16.msra.mxu2 %v9820_v18 }
 0x9e2   : > { %4358 = vmatpush.bf16.msra.mxu2 %v9821_v45 }
 0x9e6   : > { %4359 = vmatpush.bf16.msra.mxu2 %v9822_v51 }
 0x9ea   : > { %4360 = vmatpush.bf16.msra.mxu2 %v9823_v38 }
 0x9ee   : > { %4361 = vmatpush.bf16.msra.mxu2 %v9824_v53 }
 0x9f2   : > { %4406 = vmatpush.bf16.msrb.mxu2 %v9825_v22 }
 0x9f4   : > { %v4182_v4 = vpop.f32.mrf.mxu2 }
 0x9f5   : > { %v4186_v19 = vmul.f32 0.125, %v4182_v4 }
 0x9f6   : > { %4407 = vmatpush.bf16.msrb.mxu2 %v9826_v20 }
 0x9f7   : > { %v4187_v10 = vadd.f32 %v6878_v46, %v4186_v19 }
 0x9f9   : > { %v4188_v43 = vsel %vm2640_vm5, %v4187_v10, -inf }
 0x9fa   : > { %4408 = vmatpush.bf16.msrb.mxu2 %v9827_v39  ;;  %4189 = vmax.xlane.f32.xlu2 %v4188_v43 }
 0x9fc   : > { %v4184_v50 = vpop.f32.mrf.mxu2 }
 0x9fd   : > { %v9834_v50 = vld [vmem:[#allocation182_spill] sm:$0xff] }
 0x9fe   : > { %4409 = vmatpush.bf16.msrb.mxu2 %v9828_v42 }
 0xa02   : > { %4410 = vmatpush.bf16.msrb.mxu2 %v9829_v7 }
 0xa06   : > { %4411 = vmatpush.bf16.msrb.mxu2 %v9830_v13 }
 0xa0a   : > { %4412 = vmatpush.bf16.msrb.mxu2 %v9831_v21  ;;  %v9833_v21 = vld [vmem:[#allocation180_spill] sm:$0xff] }
 0xa0e   : > { %4413 = vmatpush.bf16.msrb.mxu2 %v9832_v32  ;;  %v9835_v32 = vld [vmem:[#allocation184_spill] sm:$0xff] }
 0xa17   : > { %v4232_v27 = vpop.f32.mrf.mxu0 }
 0xa18   : > { %v4236_v6 = vmul.f32 0.125, %v4232_v27  ;;  %v9836_v27 = vld [vmem:[#allocation186_spill] sm:$0xff] }
 0xa1a   : > { %v4237_v29 = vadd.f32 %v6878_v46, %v4236_v6  ;;  %v9837_v6 = vld [vmem:[#allocation188_spill] sm:$0xff] }
 0xa1c   : > { %v4238_v9 = vsel %vm2640_vm5, %v4237_v29, -inf }
 0xa1d   : > { %4239 = vmax.xlane.f32.xlu2 %v4238_v9  ;;  %v9838_v9 = vld [vmem:[#allocation191_spill] sm:$0xff] }
 0xa1f   : > { %v4234_v34 = vpop.f32.mrf.mxu0 }
 0xa20   : > { %v9839_v34 = vld [vmem:[#allocation192_spill] sm:$0xff] }
 0xa4d   : > { %v4140_v24 = vpop.xlane.xlu0 %4139 }
 0xa4e   : > { %v4141_v44 = vsub.f32 %v4137_v23, %v4140_v24 }
 0xa50   : > { %v4142_v35 = vmul.f32 1.442695, %v4141_v44 }
 0xa52   : > { %6848 = vpow2.f32 %v4142_v35  ;;  %v9841_v35 = vld [vmem:[#allocation217_spill] sm:$0xff] }
 0xa54   : > { %v4282_v12 = vpop.f32.mrf.mxu2 }
 0xa55   : > { %v4286_v31 = vmul.f32 0.125, %v4282_v12 }
 0xa57   : > { %v4287_v36 = vadd.f32 %v6878_v46, %v4286_v31  ;;  %v9840_v31 = vld [vmem:[#allocation195_spill] sm:$0xff] }
 0xa58   : > { %v6849_v18 = vpop.eup %6848 }
 0xa59   : > { %v4288_v11 = vsel %vm2640_vm5, %v4287_v36, -inf  ;;  %v4144_v25 = vsel %vm2640_vm5, %v6849_v18, 0.0 }
 0xa5a   : > { %4289 = vmax.xlane.f32.xlu1 %v4288_v11  ;;  %v9843_v11 = vld [vmem:[#allocation219_spill] sm:$0xff] }
 0xa5c   : > { %v4284_v40 = vpop.f32.mrf.mxu2 }
 0xa5d   : > { %v9844_v40 = vld [vmem:[#allocation220_spill] sm:$0xff] }
 0xa62   : > { %4145 = vadd.xlane.f32.xlu1 %v4144_v25 }
 0xa6d   : > { %v4190_v37 = vpop.xlane.xlu2 %4189 }
 0xa6e   : > { %v4191_v45 = vsub.f32 %v4187_v10, %v4190_v37  ;;  %v9846_v37 = vld [vmem:[#allocation222_spill] sm:$0xff] }
 0xa70   : > { %v4192_v8 = vmul.f32 1.442695, %v4191_v45  ;;  %v9847_v45 = vld [vmem:[#allocation223_spill] sm:$0xff] }
 0xa72   : > { %6850 = vpow2.f32 %v4192_v8 }
 0xa78   : > { %v6851_v51 = vpop.eup %6850 }
 0xa79   : > { %v4194_v1 = vsel %vm2640_vm5, %v6851_v51, 0.0 }
 0xa7a   : > { %4195 = vadd.xlane.f32.xlu0 %v4194_v1 }
 0xa90   : > { %v4240_v23 = vpop.xlane.xlu2 %4239 }
 0xa91   : > { %v4241_v38 = vsub.f32 %v4237_v29, %v4240_v23  ;;  %v9848_v23 = vld [vmem:[#allocation224_spill] sm:$0xff] }
 0xa93   : > { %v4242_v46 = vmul.f32 1.442695, %v4241_v38  ;;  %v9849_v38 = vld [vmem:[#allocation196_spill] sm:$0xff] }
 0xa95   : > { %6852 = vpow2.f32 %v4242_v46  ;;  %v9850_v46 = vld [vmem:[#allocation198_spill] sm:$0xff] }
 0xa9b   : > { %v6853_v53 = vpop.eup %6852 }
 0xa9c   : > { %v4244_v22 = vsel %vm2640_vm5, %v6853_v53, 0.0 }
 0xa9d   : > { %4245 = vadd.xlane.f32.xlu0 %v4244_v22  ;;  %v9851_v22 = vld [vmem:[#allocation200_spill] sm:$0xff] }
 0xacd   : > { %v4290_v20 = vpop.xlane.xlu1 %4289 }
 0xace   : > { %v4291_v39 = vsub.f32 %v4287_v36, %v4290_v20  ;;  %v9842_v36 = vld [vmem:[#allocation218_spill] sm:$0xff]  ;;  %v9852_v20 = vld [vmem:[#allocation201_spill] sm:$0xff] }
 0xad0   : > { %v4292_v42 = vmul.f32 1.442695, %v4291_v39  ;;  %v9853_v39 = vld [vmem:[#allocation203_spill] sm:$0xff] }
 0xad2   : > { %6854 = vpow2.f32 %v4292_v42  ;;  %v9854_v42 = vld [vmem:[#allocation205_spill] sm:$0xff] }
 0xad5   : > { %v4146_v7 = vpop.xlane.xlu1 %4145 }
 0xad6   : > { %6856 = vrcp.f32 %v4146_v7  ;;  %v9855_v7 = vld [vmem:[#allocation208_spill] sm:$0xff] }
 0xad8   : > { %v6855_v4 = vpop.eup %6854 }
 0xad9   : > { %v4294_v19 = vsel %vm2640_vm5, %v6855_v4, 0.0 }
 0xada   : > { %4295 = vadd.xlane.f32.xlu2 %v4294_v19 }
 0xadc   : > { %v6857_v13 = vpop.eup %6856 }
 0xadd   : > { %v4148_v10 = vmul.f32 %v6857_v13, %v6849_v18  ;;  %v9845_v18 = vld [vmem:[#allocation221_spill] sm:$0xff] }
 0xadf   : > { %v4149_v43 = vpack.c.bf16 %v4148_v10, %v4148_v10 }
 0xae1   : > { %6323 = vmatmul.msk.bf16.vlgmr.msrb.gmra.mxu1 %vm2640_vm5, %v4149_v43 }
 0xae2   : > { %4341 = vmatpush.bf16.msrb.mxu1 %v9833_v21  ;;  %v9857_v21 = vld [vmem:[#allocation225_spill] sm:$0xff] }
 0xae6   : > { %4342 = vmatpush.bf16.msrb.mxu1 %v9834_v50 }
 0xaea   : > { %4343 = vmatpush.bf16.msrb.mxu1 %v9835_v32  ;;  %v9858_v32 = vld [vmem:[#allocation226_spill] sm:$0xff] }
 0xaed   : > { %v4196_v29 = vpop.xlane.xlu0 %4195 }
 0xaee   : > { %4344 = vmatpush.bf16.msrb.mxu1 %v9836_v27  ;;  %6858 = vrcp.f32 %v4196_v29 }
 0xaf2   : > { %4345 = vmatpush.bf16.msrb.mxu1 %v9837_v6  ;;  %v9859_v6 = vld [vmem:[#allocation227_spill] sm:$0xff] }
 0xaf4   : > { %v6859_v24 = vpop.eup %6858 }
 0xaf5   : > { %v4198_v12 = vmul.f32 %v6859_v24, %v6851_v51  ;;  %v9863_v24 = vld [vmem:[#allocation243_spill] sm:$0xff] }
 0xaf6   : > { %4346 = vmatpush.bf16.msrb.mxu1 %v9838_v9  ;;  %v9860_v9 = vld [vmem:[#allocation228_spill] sm:$0xff] }
 0xaf7   : > { %v4199_v44 = vpack.c.bf16 %v4198_v12, %v4198_v12  ;;  %v9864_v12 = vld [vmem:[#allocation231_spill] sm:$0xff] }
 0xaf9   : > { %6324 = vmatmul.msk.bf16.vlgmr.msra.gmra.mxu3 %vm2640_vm5, %v4199_v44  ;;  %v9865_v44 = vld [vmem:[#allocation247_spill] sm:$0xff] }
 0xafa   : > { %4347 = vmatpush.bf16.msrb.mxu1 %v9839_v34  ;;  %4367 = vmatpush.bf16.msra.mxu3 %v9841_v35  ;;  %v9862_v34 = vld [vmem:[#allocation230_spill] sm:$0xff]  ;;  %v9868_v35 = vld [vmem:[#allocation255_spill] sm:$0xff] }
 0xafe   : > { %4348 = vmatpush.bf16.msrb.mxu1 %v9840_v31  ;;  %4368 = vmatpush.bf16.msra.mxu3 %v9842_v36  ;;  %v9866_v31 = vld [vmem:[#allocation232_spill] sm:$0xff]  ;;  %v9870_v36 = vld [vmem:[#allocation263_spill] sm:$0xff] }
 0xb02   : > { %4369 = vmatpush.bf16.msra.mxu3 %v9843_v11  ;;  %v9871_v11 = vld [vmem:[#allocation267_spill] sm:$0xff] }
 0xb06   : > { %4370 = vmatpush.bf16.msra.mxu3 %v9844_v40 }
 0xb0a   : > { %4371 = vmatpush.bf16.msra.mxu3 %v9845_v18  ;;  %v9872_v18 = vld [vmem:[#allocation234_spill] sm:$0xff] }
 0xb0e   : > { %4372 = vmatpush.bf16.msra.mxu3 %v9846_v37 }
 0xb10   : > { %v4246_v25 = vpop.xlane.xlu0 %4245 }
 0xb11   : > { %6860 = vrcp.f32 %v4246_v25  ;;  %v9873_v25 = vld [vmem:[#allocation271_spill] sm:$0xff] }
 0xb12   : > { %4373 = vmatpush.bf16.msra.mxu3 %v9847_v45  ;;  %v9874_v45 = vld [vmem:[#allocation237_spill] sm:$0xff] }
 0xb16   : > { %4374 = vmatpush.bf16.msra.mxu3 %v9848_v23  ;;  %v9878_v23 = vld [vmem:[#allocation244_spill] sm:$0xff] }
 0xb17   : > { %v6861_v8 = vpop.eup %6860 }
 0xb18   : > { %v4248_v51 = vmul.f32 %v6861_v8, %v6853_v53  ;;  %v9856_v53 = vld [vmem:[#allocation210_spill] sm:$0xff]  ;;  %v9875_v8 = vld [vmem:[#allocation275_spill] sm:$0xff] }
 0xb1a   : > { %v4249_v1 = vpack.c.bf16 %v4248_v51, %v4248_v51  ;;  %v9876_v51 = vld [vmem:[#allocation240_spill] sm:$0xff] }
 0xb1c   : > { %6325 = vmatmul.msk.bf16.vlgmr.msra.gmra.mxu1 %vm2640_vm5, %v4249_v1  ;;  %v9877_v1 = vld [vmem:[#allocation279_spill] sm:$0xff] }
 0xb1d   : > { %4393 = vmatpush.bf16.msra.mxu1 %v9849_v38  ;;  %v9879_v38 = vld [vmem:[#allocation283_spill] sm:$0xff] }
 0xb21   : > { %4394 = vmatpush.bf16.msra.mxu1 %v9850_v46  ;;  %v9880_v46 = vld [vmem:[#allocation248_spill] sm:$0xff] }
 0xb25   : > { %4395 = vmatpush.bf16.msra.mxu1 %v9851_v22  ;;  %v9881_v22 = vld [vmem:[#allocation287_spill] sm:$0xff] }
 0xb29   : > { %4396 = vmatpush.bf16.msra.mxu1 %v9852_v20  ;;  %v9882_v20 = vld [vmem:[#allocation252_spill] sm:$0xff] }
 0xb2d   : > { %4397 = vmatpush.bf16.msra.mxu1 %v9853_v39 }
 0xb31   : > { %4398 = vmatpush.bf16.msra.mxu1 %v9854_v42 }
 0xb35   : > { %4399 = vmatpush.bf16.msra.mxu1 %v9855_v7  ;;  %v9883_v7 = vld [vmem:[#allocation256_spill] sm:$0xff] }
 0xb39   : > { %4400 = vmatpush.bf16.msra.mxu1 %v9856_v53  ;;  %v9884_v53 = vld [vmem:[#allocation235_spill] sm:$0xff] }
 0xb4d   : > { %v4296_v19 = vpop.xlane.xlu2 %4295 }
 0xb4e   : > { %6862 = vrcp.f32 %v4296_v19  ;;  %v9885_v19 = vld [vmem:[#allocation260_spill] sm:$0xff] }
 0xb54   : > { %v6863_v13 = vpop.eup %6862 }
 0xb55   : > { %v4298_v10 = vmul.f32 %v6863_v13, %v6855_v4  ;;  %v9861_v4 = vld [vmem:[#allocation229_spill] sm:$0xff] }
 0xb57   : > { %v4299_v43 = vpack.c.bf16 %v4298_v10, %v4298_v10  ;;  %v9886_v10 = vld [vmem:[#allocation238_spill] sm:$0xff] }
 0xb59   : > { %6326 = vmatmul.msk.bf16.vlgmr.msrb.gmra.mxu3 %vm2640_vm5, %v4299_v43  ;;  %v9887_v43 = vld [vmem:[#allocation269_spill] sm:$0xff] }
 0xb5a   : > { %4419 = vmatpush.bf16.msrb.mxu3 %v9857_v21  ;;  %v9888_v21 = vld [vmem:[#allocation241_spill] sm:$0xff] }
 0xb5e   : > { %v4165_v50 = vpop.f32.mrf.mxu1  ;;  %4420 = vmatpush.bf16.msrb.mxu3 %v9858_v32  ;;  %v9890_v32 = vld [vmem:[#allocation245_spill] sm:$0xff] }
 0xb5f   : > { %v4324_v27 = vpack.c.bf16 %v4165_v50, %v4165_v50  ;;  %v9889_v50 = vld [vmem:[#allocation273_spill] sm:$0xff] }
 0xb61   : > { %4336 = vmatmul.bf16.vlgmr.msrb.gmra.mxu0 %v4324_v27 }
 0xb62   : > { %4421 = vmatpush.bf16.msrb.mxu3 %v9859_v6  ;;  %4465 = vmatpush.bf16.msrb.mxu0 %v8276_v16  ;;  %v9867_v16 = vld [vmem:[#allocation251_spill] sm:$0xff]  ;;  %v9893_v6 = vld [vmem:[#allocation281_spill] sm:$0xff] }
 0xb66   : > { %v4167_v29 = vpop.f32.mrf.mxu1  ;;  %4422 = vmatpush.bf16.msrb.mxu3 %v9860_v9  ;;  %4466 = vmatpush.bf16.msrb.mxu0 %v8299_v59  ;;  %v9869_v59 = vld [vmem:[#allocation259_spill] sm:$0xff]  ;;  %v9895_v9 = vld [vmem:[#allocation285_spill] sm:$0xff] }
 0xb67   : > { %v9894_v29 = vld [vmem:[#allocation253_spill] sm:$0xff] }
 0xb6a   : > { %4423 = vmatpush.bf16.msrb.mxu3 %v9861_v4  ;;  %4467 = vmatpush.bf16.msrb.mxu0 %v8311_v2  ;;  %v9896_v4 = vld [vmem:[#allocation257_spill] sm:$0xff] }
 0xb6e   : > { %4424 = vmatpush.bf16.msrb.mxu3 %v9862_v34  ;;  %4468 = vmatpush.bf16.msrb.mxu0 %v9863_v24  ;;  %v9897_v34 = vld [vmem:[#allocation261_spill] sm:$0xff]  ;;  %v9898_v24 = vld [vmem:[#allocation264_spill] sm:$0xff] }
 0xb71   : > { %4388 = vmatmul.bf16.vlgmr.msra.gmra.mxu0 %v4324_v27  ;;  %v9892_v27 = vld [vmem:[#allocation249_spill] sm:$0xff] }
 0xb72   : > { %4425 = vmatpush.bf16.msrb.mxu3 %v9864_v12  ;;  %4469 = vmatpush.bf16.msrb.mxu0 %v9865_v44  ;;  %v9899_v12 = vld [vmem:[#allocation268_spill] sm:$0xff] }
 0xb73   : > { %v9900_v44 = vld [vmem:[#allocation272_spill] sm:$0xff] }
 0xb76   : > { %4426 = vmatpush.bf16.msrb.mxu3 %v9866_v31  ;;  %4470 = vmatpush.bf16.msrb.mxu0 %v9867_v16  ;;  %v9901_v31 = vld [vmem:[#allocation276_spill] sm:$0xff] }
 0xb77   : > { %v9902_v16 = vld [vmem:[#allocation280_spill] sm:$0xff] }
 0xb7a   : > { %4471 = vmatpush.bf16.msrb.mxu0 %v9868_v35  ;;  %v9903_v35 = vld [vmem:[#allocation284_spill] sm:$0xff] }
 0xb7c   : > { %v4215_v2 = vpop.f32.mrf.mxu3 }
 0xb7d   : > { %v4325_v40 = vpack.c.bf16 %v4215_v2, %v4215_v2  ;;  %v9905_v2 = vld [vmem:[#allocation239_spill] sm:$0xff] }
 0xb7e   : > { %4472 = vmatpush.bf16.msrb.mxu0 %v9869_v59 }
 0xb7f   : > { %4349 = vmatmul.bf16.vlgmr.msrb.gmra.mxu1 %v4325_v40 }
 0xb80   : > { %4478 = vmatpush.bf16.msrb.mxu1 %v9872_v18  ;;  %v9907_v18 = vld [vmem:[#allocation246_spill] sm:$0xff] }
 0xb82   : > { %4537 = vmatpush.bf16.msra.mxu0 %v9870_v36  ;;  %v9904_v36 = vld [vmem:[#allocation236_spill] sm:$0xff] }
 0xb84   : > { %v4217_v37 = vpop.f32.mrf.mxu3  ;;  %4479 = vmatpush.bf16.msrb.mxu1 %v9874_v45  ;;  %v9910_v45 = vld [vmem:[#allocation258_spill] sm:$0xff] }
 0xb85   : > { %v9908_v37 = vld [vmem:[#allocation250_spill] sm:$0xff] }
 0xb86   : > { %4538 = vmatpush.bf16.msra.mxu0 %v9871_v11 }
 0xb88   : > { %4480 = vmatpush.bf16.msrb.mxu1 %v9876_v51  ;;  %v9912_v51 = vld [vmem:[#allocation270_spill] sm:$0xff] }
 0xb8a   : > { %4539 = vmatpush.bf16.msra.mxu0 %v9873_v25 }
 0xb8c   : > { %4481 = vmatpush.bf16.msrb.mxu1 %v9878_v23  ;;  %v9914_v23 = vld [vmem:[#allocation233_spill] sm:$0xff] }
 0xb8e   : > { %4540 = vmatpush.bf16.msra.mxu0 %v9875_v8  ;;  %v9911_v8 = vld [vmem:[#allocation262_spill] sm:$0xff] }
 0xb8f   : > { %4401 = vmatmul.bf16.vlgmr.msra.gmra.mxu1 %v4325_v40  ;;  %v9906_v40 = vld [vmem:[#allocation242_spill] sm:$0xff] }
 0xb90   : > { %4482 = vmatpush.bf16.msrb.mxu1 %v9880_v46 }
 0xb92   : > { %4541 = vmatpush.bf16.msra.mxu0 %v9877_v1  ;;  %v9913_v1 = vld [vmem:[#allocation274_spill] sm:$0xff] }
 0xb94   : > { %4483 = vmatpush.bf16.msrb.mxu1 %v9882_v20 }
 0xb96   : > { %4542 = vmatpush.bf16.msra.mxu0 %v9879_v38  ;;  %v9915_v38 = vperm.slane %v9914_v23, 0 }
 0xb98   : > { %4484 = vmatpush.bf16.msrb.mxu1 %v9883_v7 }
 0xb99   : > { %v4265_v39 = vpop.f32.mrf.mxu1 }
 0xb9a   : > { %4543 = vmatpush.bf16.msra.mxu0 %v9881_v22  ;;  %v4326_v42 = vpack.c.bf16 %v4265_v39, %v4265_v39  ;;  %v9916_v39 = vld [vmem:[#allocation278_spill] sm:$0xff] }
 0xb9c   : > { %4362 = vmatmul.bf16.vlgmr.msra.gmra.mxu2 %v4326_v42  ;;  %4485 = vmatpush.bf16.msrb.mxu1 %v9885_v19  ;;  %v9919_v19 = vperm.slane %v9914_v23, 1 }
 0xb9d   : > { %4491 = vmatpush.bf16.msra.mxu2 %v9884_v53  ;;  %v9918_v53 = vld [vmem:[#allocation286_spill] sm:$0xff] }
 0xb9e   : > { %4544 = vmatpush.bf16.msra.mxu0 %v8492_v52  ;;  %v9891_v52 = vld [vmem:[#allocation277_spill] sm:$0xff] }
 0xba0   : > { %4550 = vmatpush.bf16.msra.mxu1 %v9887_v43 }
 0xba1   : > { %v4267_v13 = vpop.f32.mrf.mxu1  ;;  %4492 = vmatpush.bf16.msra.mxu2 %v9886_v10 }
 0xba4   : > { %4551 = vmatpush.bf16.msra.mxu1 %v9889_v50 }
 0xba5   : > { %4493 = vmatpush.bf16.msra.mxu2 %v9888_v21 }
 0xba8   : > { %4552 = vmatpush.bf16.msra.mxu1 %v9891_v52 }
 0xba9   : > { %4494 = vmatpush.bf16.msra.mxu2 %v9890_v32 }
 0xbac   : > { %4414 = vmatmul.bf16.vlgmr.msrb.gmra.mxu2 %v4326_v42  ;;  %4553 = vmatpush.bf16.msra.mxu1 %v9893_v6  ;;  %v9917_v42 = vld [vmem:[#allocation282_spill] sm:$0xff] }
 0xbad   : > { %4495 = vmatpush.bf16.msra.mxu2 %v9892_v27 }
 0xbb0   : > { %4554 = vmatpush.bf16.msra.mxu1 %v9895_v9 }
 0xbb1   : > { %4496 = vmatpush.bf16.msra.mxu2 %v9894_v29 }
 0xbb4   : > { %4555 = vmatpush.bf16.msra.mxu1 %v8487_v58 }
 0xbb5   : > { %4497 = vmatpush.bf16.msra.mxu2 %v9896_v4 }
 0xbb8   : > { %4556 = vmatpush.bf16.msra.mxu1 %v8498_v61 }
 0xbb9   : > { %4498 = vmatpush.bf16.msra.mxu2 %v9897_v34 }
 0xbbc   : > { %4557 = vmatpush.bf16.msra.mxu1 %v8514_v30 }
 0xbbd   : > { %4563 = vmatpush.bf16.msrb.mxu2 %v9898_v24 }
 0xbc1   : > { %4564 = vmatpush.bf16.msrb.mxu2 %v9899_v12 }
 0xbc5   : > { %4565 = vmatpush.bf16.msrb.mxu2 %v9900_v44 }
 0xbc9   : > { %4566 = vmatpush.bf16.msrb.mxu2 %v9901_v31 }
 0xbcd   : > { %4567 = vmatpush.bf16.msrb.mxu2 %v9902_v16 }
 0xbd1   : > { %4568 = vmatpush.bf16.msrb.mxu2 %v9903_v35 }
 0xbd5   : > { %4569 = vmatpush.bf16.msrb.mxu2 %v8484_v3  ;;  %v9909_v3 = vld [vmem:[#allocation254_spill] sm:$0xff] }
 0xbd9   : > { %4570 = vmatpush.bf16.msrb.mxu2 %v8495_v26 }
 0xbdc   : > { %v4315_v58 = vpop.f32.mrf.mxu3 }
 0xbdd   : > { %v4327_v61 = vpack.c.bf16 %v4315_v58, %v4315_v58 }
 0xbde   : > { %v4337_v59 = vpop.f32.mrf.mxu0 }
 0xbdf   : > { %4375 = vmatmul.bf16.vlgmr.msra.gmra.mxu3 %v4327_v61  ;;  %v4338_v46 = vadd.f32 %v4337_v59, %v9915_v38 }
 0xbe0   : > { %4504 = vmatpush.bf16.msra.mxu3 %v9904_v36 }
 0xbe4   : > { %v4317_v30 = vpop.f32.mrf.mxu3  ;;  %4505 = vmatpush.bf16.msra.mxu3 %v9905_v2 }
 0xbe6   : > { %v4339_v11 = vpop.f32.mrf.mxu0 }
 0xbe8   : > { %4506 = vmatpush.bf16.msra.mxu3 %v9906_v40 }
 0xbec   : > { %4507 = vmatpush.bf16.msra.mxu3 %v9907_v18 }
 0xbee   : > { %v4389_v25 = vpop.f32.mrf.mxu0 }
 0xbef   : > { %4427 = vmatmul.bf16.vlgmr.msrb.gmra.mxu3 %v4327_v61  ;;  %v4390_v13 = vadd.f32 %v4389_v25, %v9919_v19 }
 0xbf0   : > { %4508 = vmatpush.bf16.msra.mxu3 %v9908_v37 }
 0xbf4   : > { %4509 = vmatpush.bf16.msra.mxu3 %v9909_v3 }
 0xbf6   : > { %v4391_v26 = vpop.f32.mrf.mxu0 }
 0xbf8   : > { %4510 = vmatpush.bf16.msra.mxu3 %v9910_v45 }
 0xbfc   : > { %4511 = vmatpush.bf16.msra.mxu3 %v9911_v8  ;;  %v4350_v22 = vpop.f32.mrf.mxu1  ;;  %v9920_v8 = vld [vmem:[#allocation265_spill] sm:$0xff] }
 0xbfd   : > { %v4351_v20 = vadd.f32 %v4350_v22, %v4338_v46  ;;  %v9922_v23 = vperm.slane %v9920_v8, 1  ;;  %v9923_v46 = vld [vmem:[#allocation266_spill] sm:$0xff] }
 0xbfe   : > { %v9924_v22 = vperm.slane %v9923_v46, 0 }
 0xc00   : > { %4576 = vmatpush.bf16.msrb.mxu3 %v9912_v51  ;;  %v9921_v51 = vperm.slane %v9920_v8, 0 }
 0xc04   : > { %4577 = vmatpush.bf16.msrb.mxu3 %v9913_v1  ;;  %v4352_v7 = vpop.f32.mrf.mxu1 }
 0xc08   : > { %4578 = vmatpush.bf16.msrb.mxu3 %v9916_v39  ;;  %v9925_v39 = vperm.slane %v9923_v46, 1 }
 0xc0c   : > { %4579 = vmatpush.bf16.msrb.mxu3 %v9917_v42  ;;  %v4402_v10 = vpop.f32.mrf.mxu1 }
 0xc0d   : > { %v4403_v43 = vadd.f32 %v4402_v10, %v4390_v13 }
 0xc10   : > { %4580 = vmatpush.bf16.msrb.mxu3 %v9918_v53 }
 0xc14   : > { %4581 = vmatpush.bf16.msrb.mxu3 %v8490_v0  ;;  %v4404_v21 = vpop.f32.mrf.mxu1 }
 0xc18   : > { %4582 = vmatpush.bf16.msrb.mxu3 %v8500_v57 }
 0xc1c   : > { %4583 = vmatpush.bf16.msrb.mxu3 %v8516_v55 }
 0xc1f   : > { %v4363_v50 = vpop.f32.mrf.mxu2 }
 0xc20   : > { %v4364_v32 = vadd.f32 %v4363_v50, %v4351_v20 }
 0xc27   : > { %v4365_v52 = vpop.f32.mrf.mxu2 }
 0xc2f   : > { %v4415_v27 = vpop.f32.mrf.mxu2 }
 0xc30   : > { %v4416_v4 = vadd.f32 %v4415_v27, %v4403_v43 }
 0xc37   : > { %v4417_v6 = vpop.f32.mrf.mxu2 }
 0xc62   : > { %v4376_v29 = vpop.f32.mrf.mxu3 }
 0xc63   : > { %v4377_v34 = vadd.f32 %v4376_v29, %v4364_v32 }
 0xc65   : > { %v4432_v12 = vadd.f32 %v4377_v34, %v8622_v56 }
 0xc6a   : > { %v4378_v9 = vpop.f32.mrf.mxu3 }
 0xc72   : > { %v4428_v0 = vpop.f32.mrf.mxu3 }
 0xc73   : > { %v4429_v24 = vadd.f32 %v4428_v0, %v4416_v4 }
 0xc75   : > { %v4433_v44 = vadd.f32 %v4429_v24, %v8626_v41 }
 0xc77   : > { %v4434_v31 = vadd.f32 %v4433_v44, %v4432_v12 }
 0xc79   : > { %4435 = vadd.xlane.f32.xlu1 %v4434_v31 }
 0xc7a   : > { %v4430_v57 = vpop.f32.mrf.mxu3 }
 0xcec   : > { %v4436_v55 = vpop.xlane.xlu1 %4435 }
 0xced   : > { %v4437_v16 = vmul.f32 %v4436_v55, %v8288_v17 }
 0xcef   : > { %v4438_v35 = vsub.f32 %v4432_v12, %v4437_v16  ;;  %v4439_v58 = vsub.f32 %v4433_v44, %v4437_v16 }
 0xcf1   : > { %v4440_v61 = vmul.f32 %v4438_v35, %v4438_v35  ;;  %v4441_v59 = vmul.f32 %v4439_v58, %v4439_v58 }
 0xcf3   : > { %v4442_v36 = vadd.f32 %v4441_v59, %v4440_v61 }
 0xcf5   : > { %4443 = vadd.xlane.f32.xlu2 %v4442_v36 }
 0xd68   : > { %v4444_v30 = vpop.xlane.xlu2 %4443 }
 0xd69   : > { %v4445_v2 = vmul.f32 %v4444_v30, %v8288_v17 }
 0xd6b   : > { %v4446_v11 = vadd.f32 1e-12, %v4445_v2 }
 0xd6d   : > { %6864 = vrsqrt.f32 %v4446_v11  ;;  %vm4453_vm14 = vweird.f32 %v4446_v11 }
 0xd73   : > { %v6865_v56 = vpop.eup %6864 }
 0xd74   : > { %v4448_v40 = vmul.f32 %v6865_v56, %v4446_v11  ;;  %vm4454_vm13 = vweird.f32 %v6865_v56 }
 0xd75   : > { %vm4455_vm15 = vmor %vm4453_vm14, %vm4454_vm13 }
 0xd76   : > { %v4449_v41 = vmul.f32 %v6865_v56, %v4448_v40 }
 0xd78   : > { %v4450_v18 = vmul.f32 0.5, %v4449_v41 }
 0xd7a   : > { %v4451_v25 = vsub.f32 1.5, %v4450_v18 }
 0xd7c   : > { %v4452_v37 = vmul.f32 %v6865_v56, %v4451_v25 }
 0xd7e   : > { %v4456_v3 = vsel %vm4455_vm15, %v6865_v56, %v4452_v37 }
 0xd7f   : > { %v4457_v26 = vmul.f32 %v4456_v3, %v4438_v35  ;;  %v4458_v45 = vmul.f32 %v4456_v3, %v4439_v58 }
 0xd81   : > { %v4459_v1 = vmul.f32 %v4457_v26, %v9921_v51  ;;  %v4460_v38 = vmul.f32 %v4458_v45, %v9922_v23 }
 0xd83   : > { %v4461_v20 = vadd.f32 %v4459_v1, %v9924_v22  ;;  %v4462_v42 = vadd.f32 %v4460_v38, %v9925_v39 }
 0xd85   : > { %v4463_v7 = vpack.c.bf16 %v4461_v20, %v4461_v20  ;;  %v4464_v53 = vpack.c.bf16 %v4462_v42, %v4462_v42 }
 0xd87   : > { %4473 = vmatmul.bf16.vlgmr.msrb.gmra.mxu0 %v4463_v7  ;;  %4486 = vmatmul.bf16.vlgmr.msrb.gmra.mxu1 %v4464_v53 }
 0xd88   : > { %4499 = vmatmul.bf16.vlgmr.msra.gmra.mxu2 %v4463_v7  ;;  %4512 = vmatmul.bf16.vlgmr.msra.gmra.mxu3 %v4464_v53 }
 0xe04   : > { %v4474_v19 = vpop.f32.mrf.mxu0  ;;  %v4487_v13 = vpop.f32.mrf.mxu1 }
 0xe05   : > { %v4475_v10 = vadd.f32 %v4474_v19, %v3312_v54 }
 0xe07   : > { %v4488_v43 = vadd.f32 %v4487_v13, %v4475_v10 }
 0xe09   : > { %v4519_v21 = vmul.f32 %v4488_v43, %v4488_v43  ;;  %v4517_v35 = vmul.f32 0.5, %v4488_v43 }
 0xe0b   : > { %v4521_v50 = vmul.f32 %v4519_v21, %v4488_v43  ;;  %v4500_v32 = vpop.f32.mrf.mxu2  ;;  %v4513_v52 = vpop.f32.mrf.mxu3 }
 0xe0c   : > { %v4501_v27 = vadd.f32 %v4500_v32, %v3313_v14  ;;  %v4476_v6 = vpop.f32.mrf.mxu0  ;;  %v4489_v29 = vpop.f32.mrf.mxu1 }
 0xe0d   : > { %v4523_v9 = vmul.f32 0.044715, %v4521_v50 }
 0xe0e   : > { %v4514_v4 = vadd.f32 %v4513_v52, %v4501_v27  ;;  %v4620_v52 = vld [vmem:[%s9038_s19] sm:$0x3] }
 0xe0f   : > { %v4525_v34 = vadd.f32 %v4523_v9, %v4488_v43  ;;  %v4622_v9 = vperm.slane %v4620_v52, 0 }
 0xe10   : > { %v4520_v0 = vmul.f32 %v4514_v4, %v4514_v4  ;;  %v4518_v59 = vmul.f32 0.5, %v4514_v4 }
 0xe11   : > { %v4527_v24 = vmul.f32 0.7978846, %v4525_v34 }
 0xe12   : > { %v4522_v12 = vmul.f32 %v4520_v0, %v4514_v4 }
 0xe13   : > { %6866 = vtanh.f32 %v4527_v24  ;;  %v4502_v44 = vpop.f32.mrf.mxu2  ;;  %v4515_v31 = vpop.f32.mrf.mxu3 }
 0xe14   : > { %v4524_v54 = vmul.f32 0.044715, %v4522_v12 }
 0xe16   : > { %v4526_v57 = vadd.f32 %v4524_v54, %v4514_v4  ;;  %v4623_v4 = vperm.slane %v4620_v52, 1  ;;  %v7062_v54 = vmov 0  }
 0xe17   : > { %6813 = vset.pattern.permute.xlu0 %v7062_v54 }
 0xe18   : > { %v4528_v55 = vmul.f32 0.7978846, %v4526_v57 }
 0xe19   : > { %v6867_v16 = vpop.eup %6866 }
 0xe1a   : > { %v4531_v58 = vadd.f32 1.0, %v6867_v16  ;;  %6868 = vtanh.f32 %v4528_v55 }
 0xe1c   : > { %v4533_v49 = vmul.f32 %v4531_v58, %v4517_v35 }
 0xe1e   : > { %v4535_v14 = vpack.c.bf16 %v4533_v49, %v4533_v49 }
 0xe20   : > { %v6869_v61 = vpop.eup %6868  ;;  %4545 = vmatmul.bf16.vlgmr.msra.gmra.mxu0 %v4535_v14  ;;  %4571 = vmatmul.bf16.vlgmr.msrb.gmra.mxu2 %v4535_v14  ;;  %v6736_v14 = vld [vmem:[#allocation11 + $0x38] sm:$0xff] }
 0xe21   : > { %v4532_v36 = vadd.f32 1.0, %v6869_v61  ;;  %v6744_v61 = vld [vmem:[#allocation11 + $0x78] sm:$0xff]  ;;  %4807 = vmatpush.bf16.msrb.mxu0 %v6736_v14 }
 0xe22   : > { %4820 = vmatpush.bf16.msrb.mxu1 %v6744_v61 }
 0xe23   : > { %v4534_v30 = vmul.f32 %v4532_v36, %v4518_v59  ;;  %v6735_v36 = vld [vmem:[#allocation11 + $0x30] sm:$0xff] }
 0xe25   : > { %v4536_v2 = vpack.c.bf16 %v4534_v30, %v4534_v30  ;;  %v6743_v30 = vld [vmem:[#allocation11 + $0x70] sm:$0xff]  ;;  %4808 = vmatpush.bf16.msrb.mxu0 %v6735_v36 }
 0xe26   : > { %4821 = vmatpush.bf16.msrb.mxu1 %v6743_v30 }
 0xe27   : > { %4558 = vmatmul.bf16.vlgmr.msra.gmra.mxu1 %v4536_v2  ;;  %4584 = vmatmul.bf16.vlgmr.msrb.gmra.mxu3 %v4536_v2  ;;  %v6734_v2 = vld [vmem:[#allocation11 + $0x28] sm:$0xff] }
 0xe29   : > { %4809 = vmatpush.bf16.msrb.mxu0 %v6734_v2 }
 0xe9d   : > { %v4546_v11 = vpop.f32.mrf.mxu0 }
 0xe9e   : > { %v4547_v18 = vadd.f32 %v4546_v11, %v3549_v5  ;;  %v6742_v11 = vld [vmem:[#allocation11 + $0x68] sm:$0xff] }
 0xe9f   : > { %4822 = vmatpush.bf16.msrb.mxu1 %v6742_v11 }
 0xea3   : > { %v4572_v56 = vpop.f32.mrf.mxu2 }
 0xea4   : > { %v4559_v40 = vpop.f32.mrf.mxu1  ;;  %v4573_v37 = vadd.f32 %v4572_v56, %v3550_v28 }
 0xea5   : > { %v4548_v41 = vpop.f32.mrf.mxu0  ;;  %v4560_v25 = vadd.f32 %v4559_v40, %v4547_v18  ;;  %v6741_v18 = vld [vmem:[#allocation11 + $0x60] sm:$0xff] }
 0xea6   : > { %v6733_v41 = vld [vmem:[#allocation11 + $0x20] sm:$0xff]  ;;  %4823 = vmatpush.bf16.msrb.mxu1 %v6741_v18 }
 0xea7   : > { %v4589_v51 = vadd.f32 %v4560_v25, %v4461_v20  ;;  %4810 = vmatpush.bf16.msrb.mxu0 %v6733_v41 }
 0xeaa   : > { %v4585_v3 = vpop.f32.mrf.mxu3 }
 0xeab   : > { %v4586_v26 = vadd.f32 %v4585_v3, %v4573_v37  ;;  %v4574_v45 = vpop.f32.mrf.mxu2 }
 0xeac   : > { %v4561_v8 = vpop.f32.mrf.mxu1 }
 0xead   : > { %v4590_v1 = vadd.f32 %v4586_v26, %v4462_v42 }
 0xeaf   : > { %v4591_v23 = vadd.f32 %v4590_v1, %v4589_v51 }
 0xeb1   : > { %4592 = vadd.xlane.f32.xlu0 %v4591_v23  ;;  %v6732_v23 = vld [vmem:[#allocation11 + $0x18] sm:$0xff] }
 0xeb2   : > { %v4587_v38 = vpop.f32.mrf.mxu3  ;;  %4811 = vmatpush.bf16.msrb.mxu0 %v6732_v23 }
 0xeb3   : > { %v6740_v38 = vld [vmem:[#allocation11 + $0x58] sm:$0xff] }
 0xeb4   : > { %4824 = vmatpush.bf16.msrb.mxu1 %v6740_v38 }
 0xf24   : > { %v4593_v46 = vpop.xlane.xlu0 %4592 }
 0xf25   : > { %v4594_v22 = vmul.f32 %v4593_v46, %v8288_v17  ;;  %v6731_v46 = vld [vmem:[#allocation11 + $0x10] sm:$0xff] }
 0xf26   : > { %4812 = vmatpush.bf16.msrb.mxu0 %v6731_v46 }
 0xf27   : > { %v4595_v39 = vsub.f32 %v4589_v51, %v4594_v22  ;;  %v4596_v7 = vsub.f32 %v4590_v1, %v4594_v22  ;;  %v6739_v22 = vld [vmem:[#allocation11 + $0x50] sm:$0xff] }
 0xf28   : > { %4825 = vmatpush.bf16.msrb.mxu1 %v6739_v22 }
 0xf29   : > { %v4597_v53 = vmul.f32 %v4595_v39, %v4595_v39  ;;  %v4598_v5 = vmul.f32 %v4596_v7, %v4596_v7 }
 0xf2b   : > { %v4599_v19 = vadd.f32 %v4598_v5, %v4597_v53  ;;  %v6729_v53 = vld [vmem:[#allocation11] sm:$0xff] }
 0xf2c   : > { %v6737_v5 = vld [vmem:[#allocation11 + $0x40] sm:$0xff] }
 0xf2d   : > { %4600 = vadd.xlane.f32.xlu1 %v4599_v19 }
 0xfa0   : > { %v4601_v62 = vpop.xlane.xlu1 %4600 }
 0xfa1   : > { %v4602_v28 = vmul.f32 %v4601_v62, %v8288_v17 }
 0xfa3   : > { %v4603_v13 = vadd.f32 1e-12, %v4602_v28 }
 0xfa5   : > { %6870 = vrsqrt.f32 %v4603_v13  ;;  %vm4610_vm1 = vweird.f32 %v4603_v13 }
 0xfab   : > { %v6871_v10 = vpop.eup %6870 }
 0xfac   : > { %v4605_v20 = vmul.f32 %v6871_v10, %v4603_v13  ;;  %vm4611_vm0 = vweird.f32 %v6871_v10 }
 0xfad   : > { %vm4612_vm2 = vmor %vm4610_vm1, %vm4611_vm0 }
 0xfae   : > { %v4606_v42 = vmul.f32 %v6871_v10, %v4605_v20 }
 0xfb0   : > { %v4607_v43 = vmul.f32 0.5, %v4606_v42 }
 0xfb2   : > { %v4608_v21 = vsub.f32 1.5, %v4607_v43 }
 0xfb4   : > { %v4609_v50 = vmul.f32 %v6871_v10, %v4608_v21 }
 0xfb6   : > { %v4613_v32 = vsel %vm4612_vm2, %v6871_v10, %v4609_v50 }
 0xfb7   : > { %v4614_v27 = vmul.f32 %v4613_v32, %v4595_v39  ;;  %v4615_v6 = vmul.f32 %v4613_v32, %v4596_v7  ;;  %v6730_v39 = vld [vmem:[#allocation11 + $0x8] sm:$0xff] }
 0xfb8   : > { %v6738_v7 = vld [vmem:[#allocation11 + $0x48] sm:$0xff]  ;;  %4813 = vmatpush.bf16.msrb.mxu0 %v6730_v39 }
 0xfb9   : > { %v4616_v17 = vmul.f32 %v4614_v27, %v3793_v60  ;;  %v4617_v29 = vmul.f32 %v4615_v6, %v3794_v47  ;;  %v823_v60 = vld [vmem:[%s816_s2] sm:$0xff]  ;;  %4826 = vmatpush.bf16.msrb.mxu1 %v6738_v7 }
 0xfbb   : > { %v8992_v34 = vadd.f32 %v4616_v17, %v3800_v63  ;;  %v8996_v0 = vadd.f32 %v4617_v29, %v3801_v15 }
 0xfbc   : > { %4814 = vmatpush.bf16.msrb.mxu0 %v6729_v53 }
 0xfbd   : > { %v4626_v24 = vmul.f32 %v4622_v9, %v8992_v34  ;;  %v4627_v12 = vmul.f32 %v4623_v4, %v8996_v0  ;;  %4827 = vmatpush.bf16.msrb.mxu1 %v6737_v5  ;;  %v4710_v4 = vld [vmem:[%s9927_s4] sm:$0x1] }
 0xfbf   : > { %v4628_v44 = vadd.f32 %v4627_v12, %v4626_v24 }
 0xfc1   : > { %4629 = vadd.xlane.f32.xlu2 %v4628_v44  ;;  %v4833_v44 = vlaneseq }
0x1034   : > { %v4630_v47 = vpop.xlane.xlu2 %4629 }
0x1035   : > { %v4635_v63 = vadd.f32 %v6817_v48, %v4630_v47 }
0x1037   : > { %v4636_v31 = vadd.f32 %v4635_v63, %v823_v60  ;;  %v4834_v60 = vand.u32 127, %v4833_v44 }
0x1039   : > { %v4638_v33 = vsel %vm4637_vm3, %v4636_v31, -inf  ;;  %vm4835_vm4 = vcmp.eq.s32.totalorder %v4834_v60, 100 }
0x103a   : > { %v4639_v15 = vrot.slane %v4638_v33, 4 }
0x103c   : > { %v4640_v57 = vmax.f32 %v4638_v33, %v4639_v15 }
0x103e   : > { %v4641_v55 = vrot.slane %v4640_v57, 2 }
0x1040   : > { %v4642_v16 = vmax.f32 %v4640_v57, %v4641_v55 }
0x1042   : > { %v4643_v35 = vrot.slane %v4642_v16, 1 }
0x1044   : > { %v4644_v58 = vmax.f32 %v4642_v16, %v4643_v35 }
0x1046   : > { %v4645_v49 = vsub.f32 %v4636_v31, %v4644_v58 }
0x1048   : > { %v4646_v59 = vmul.f32 1.442695, %v4645_v49 }
0x104a   : > { %6872 = vpow2.f32 %v4646_v59 }
0x1050   : > { %v6873_v56 = vpop.eup %6872 }
0x1051   : > { %v4648_v40 = vsel %vm4637_vm3, %v6873_v56, 0.0 }
0x1052   : > { %v4649_v25 = vrot.slane %v4648_v40, 4 }
0x1054   : > { %v4650_v37 = vadd.f32 %v4649_v25, %v4648_v40 }
0x1056   : > { %v4651_v3 = vrot.slane %v4650_v37, 2 }
0x1058   : > { %v4652_v26 = vadd.f32 %v4651_v3, %v4650_v37 }
0x105a   : > { %v4653_v45 = vrot.slane %v4652_v26, 1 }
0x105c   : > { %v4654_v8 = vadd.f32 %v4653_v45, %v4652_v26 }
0x105e   : > { %6874 = vrcp.f32 %v4654_v8 }
0x1064   : > { %v6875_v51 = vpop.eup %6874 }
0x1065   : > { %v4656_v1 = vmul.f32 %v6875_v51, %v6873_v56 }
0x1067   : > { %4659 = vperm.xlu0 %6813, %v4656_v1  }
0x10d9   : > { %v4660_v19 = vpop.permute.xlu0 %4659 }
0x10da   : > { %v4662_v62 = vmul.f32 %v4660_v19, %v8992_v34  ;;  %v4663_v28 = vmul.f32 %v4660_v19, %v8996_v0 }
0x10dc   : > { %v4664_v13 = vrot.slane %v4662_v62, 4  ;;  %v4670_v10 = vrot.slane %v4663_v28, 4 }
0x10de   : > { %v4665_v20 = vadd.f32 %v4664_v13, %v4662_v62  ;;  %v4671_v42 = vadd.f32 %v4670_v10, %v4663_v28 }
0x10e0   : > { %v4666_v43 = vrot.slane %v4665_v20, 2  ;;  %v4672_v21 = vrot.slane %v4671_v42, 2 }
0x10e2   : > { %v4667_v50 = vadd.f32 %v4666_v43, %v4665_v20  ;;  %v4673_v32 = vadd.f32 %v4672_v21, %v4671_v42 }
0x10e4   : > { %v4668_v52 = vrot.slane %v4667_v50, 1  ;;  %v4674_v27 = vrot.slane %v4673_v32, 1 }
0x10e6   : > { %v4669_v6 = vadd.f32 %v4668_v52, %v4667_v50  ;;  %v4675_v17 = vadd.f32 %v4674_v27, %v4673_v32 }
0x10e8   : > { %v4676_v29 = vpack.c.bf16 %v4669_v6, %v4669_v6  ;;  %v4677_v9 = vpack.c.bf16 %v4675_v17, %v4675_v17 }
0x10ea   : > { %4815 = vmatmul.bf16.vlgmr.msrb.gmra.mxu0 %v4676_v29  ;;  %4828 = vmatmul.bf16.vlgmr.msrb.gmra.mxu1 %v4677_v9 }
0x1167   : > { %v4816_v34 = vpop.f32.mrf.mxu0  ;;  %v4829_v0 = vpop.f32.mrf.mxu1 }
0x1168   : > { %v4817_v24 = vadd.f32 %v4816_v34, %v4710_v4 }
0x116a   : > { %v4830_v12 = vadd.f32 %v4829_v0, %v4817_v24 }
0x116c   : > { %v4836_v48 = vmul.f32 1.442695, %v4830_v12 }
0x116e   : > { %6876 = vpow2.f32 %v4836_v48 }
0x116f   : > { %v4818_v47 = vpop.f32.mrf.mxu0  ;;  %v4831_v63 = vpop.f32.mrf.mxu1 }
0x1174   : > { %v6877_v31 = vpop.eup %6876 }
0x1175   : > { %v4838_v33 = vsel %vm4835_vm4, %v6877_v31, %v4830_v12 }
0x1176   : > { %4839 = vst [vmem:[%s819_s28] sm:$0x1] %v4838_v33 }
0x1177 PF: > { %s9929_s0 = sld [smem:[#allocation15_spill]] }
0x117d   : > { %s38_s24 = sadd.s32 1, %s9929_s0  }
0x117e   : > { %p35_p7 = scmp.ge.s32.totalorder %s38_s24, 4  }
0x1180   :  { %37 = sbr.rel (!%p35_p7) target bundleno = 16 (0x10), region = 169 }
0x1185   :  { %4857 = vsyncpa [#allocation5], 1 }
0x1186   :  { %4859 = vsyncpa [#allocation5 + $0x1], 1 }
0x1187   :  { %4860 = vsyncpa [#allocation7], 1 }
0x1188   :  { %4861 = vsyncpa [#allocation10], 1 }

</bundles_post_ra>
